<compile_context>
chip_gen: v6e
topology: v6e:2x2x1
jax: 0.10.0
libtpu: 0.0.40
codegen_flags: <defaults>
</compile_context>

<pallas_src>
import functools

import jax
import jax.numpy as jnp
from jax.experimental import pallas as pl
from jax.experimental.pallas import tpu as pltpu

D_IN = 256 * 256     # 65536
D_H = 400            # logical hidden width (nn.Linear(..., 400))
D_H_PAD = 512        # padded hidden width (lane-friendly multiple of 128)
D_Z = 20


# ----------------------------------------------------------------------------
# Fused linear kernel: y = act(x @ W + b), tiled over (N, K) with a VMEM
# accumulator that lives across the K (reduction) grid axis.
# ----------------------------------------------------------------------------
def _fused_linear_kernel(x_ref, w_ref, b_ref, o_ref, acc_ref, *, activation):
    k = pl.program_id(1)

    @pl.when(k == 0)
    def _():
        acc_ref[...] = jnp.zeros_like(acc_ref)

    x = x_ref[...]
    w = w_ref[...]
    if x.dtype != w.dtype:           # bf16 weights: run the MXU in bf16 x bf16
        x = x.astype(w.dtype)
    acc_ref[...] += jnp.dot(x, w, preferred_element_type=jnp.float32)

    @pl.when(k == pl.num_programs(1) - 1)
    def _():
        y = acc_ref[...] + b_ref[...].astype(jnp.float32)
        if activation == "relu":
            y = jnp.maximum(y, 0.0)
        elif activation == "sigmoid":
            y = jax.nn.sigmoid(y)
        o_ref[...] = y.astype(o_ref.dtype)


def pallas_linear(x, w, b, *, activation="none", tn=None, tk=None,
                  out_dtype=jnp.float32):
    """x: (B, K), w: (K, N) [f32 or bf16], b: (1, N) -> (B, N) in out_dtype."""
    B, K = x.shape
    K2, N = w.shape
    assert K == K2
    tn = N if tn is None else tn
    tk = K if tk is None else tk
    assert N % tn == 0 and K % tk == 0

    kernel = functools.partial(_fused_linear_kernel, activation=activation)
    return pl.pallas_call(
        kernel,
        out_shape=jax.ShapeDtypeStruct((B, N), out_dtype),
        grid_spec=pltpu.PrefetchScalarGridSpec(
            num_scalar_prefetch=0,
            grid=(N // tn, K // tk),
            in_specs=[
                pl.BlockSpec((B, tk), lambda n, k: (0, k)),
                pl.BlockSpec((tk, tn), lambda n, k: (k, n)),
                pl.BlockSpec((1, tn), lambda n, k: (0, n)),
            ],
            out_specs=pl.BlockSpec((B, tn), lambda n, k: (0, n)),
            scratch_shapes=[pltpu.VMEM((B, tn), jnp.float32)],
        ),
        compiler_params=pltpu.CompilerParams(
            dimension_semantics=("parallel", "arbitrary"),
            # 32 MiB: raises v5e's 16 MiB default (fc4 needs ~16.3 MiB),
            # equal to the v6e/v7x defaults so it is safe everywhere.
            vmem_limit_bytes=32 * 1024 * 1024),
    )(x, w, b)


# ----------------------------------------------------------------------------
# Fused middle kernel: fc21, fc22, reparameterize, fc3 + relu in ONE launch.
#   mu     = h1 @ W21 + b21
#   logvar = h1 @ W22 + b22
#   z      = mu + eps * exp(0.5 * logvar)
#   h3     = relu(z @ W3 + b3)
# ----------------------------------------------------------------------------
def _vae_middle_kernel(h1_ref, w21_ref, b21_ref, w22_ref, b22_ref,
                       eps_ref, w3_ref, b3_ref,
                       mu_ref, logvar_ref, h3_ref):
    h1 = h1_ref[...]
    mu = jnp.dot(h1, w21_ref[...], preferred_element_type=jnp.float32) + b21_ref[...]
    logvar = jnp.dot(h1, w22_ref[...], preferred_element_type=jnp.float32) + b22_ref[...]
    std = jnp.exp(0.5 * logvar)
    z = mu + eps_ref[...] * std
    h3 = jnp.dot(z, w3_ref[...], preferred_element_type=jnp.float32) + b3_ref[...]
    h3 = jnp.maximum(h3, 0.0)
    mu_ref[...] = mu.astype(mu_ref.dtype)
    logvar_ref[...] = logvar.astype(logvar_ref.dtype)
    h3_ref[...] = h3.astype(h3_ref.dtype)


def pallas_vae_middle(h1, w21, b21, w22, b22, eps, w3, b3):
    B, H = h1.shape
    Z = w21.shape[1]

    def full(shape):
        return pl.BlockSpec(shape, lambda i, _s=len(shape): (0,) * _s)

    return pl.pallas_call(
        _vae_middle_kernel,
        out_shape=(jax.ShapeDtypeStruct((B, Z), jnp.float32),
                   jax.ShapeDtypeStruct((B, Z), jnp.float32),
                   jax.ShapeDtypeStruct((B, H), jnp.float32)),
        grid=(1,),
        in_specs=[full((B, H)),
                  full((H, Z)), full((1, Z)),
                  full((H, Z)), full((1, Z)),
                  full((B, Z)),
                  full((Z, H)), full((1, H))],
        out_specs=(full((B, Z)), full((B, Z)), full((B, H))),
    )(h1, w21, b21, w22, b22, eps, w3, b3)


# ----------------------------------------------------------------------------
# Parameter init (PyTorch-Linear-like uniform(-1/sqrt(fan_in), 1/sqrt(fan_in)))
# and preparation (pad 400 -> 512, cast big weights to bf16).
# ----------------------------------------------------------------------------
def init_linear(key, fan_in, fan_out):
    kw, kb = jax.random.split(key)
    bound = 1.0 / float(fan_in) ** 0.5
    w = jax.random.uniform(kw, (fan_in, fan_out), jnp.float32, -bound, bound)
    b = jax.random.uniform(kb, (1, fan_out), jnp.float32, -bound, bound)
    return w, b


def init_params(key):
    k1, k21, k22, k3, k4 = jax.random.split(key, 5)
    p = {}
    p["w1"], p["b1"] = init_linear(k1, D_IN, D_H)
    p["w21"], p["b21"] = init_linear(k21, D_H, D_Z)
    p["w22"], p["b22"] = init_linear(k22, D_H, D_Z)
    p["w3"], p["b3"] = init_linear(k3, D_Z, D_H)
    p["w4"], p["b4"] = init_linear(k4, D_H, D_IN)
    return p


def prepare_params(p):
    """Zero-pad the hidden dim 400 -> 512 (semantically transparent) and cast
    the two large weight matrices (fc1, fc4) to bfloat16 to halve HBM bytes."""
    pad = D_H_PAD - D_H
    q = {}
    q["w1"] = jnp.pad(p["w1"], ((0, 0), (0, pad))).astype(jnp.bfloat16)
    q["b1"] = jnp.pad(p["b1"], ((0, 0), (0, pad)))
    q["w21"] = jnp.pad(p["w21"], ((0, pad), (0, 0)))
    q["b21"] = p["b21"]
    q["w22"] = jnp.pad(p["w22"], ((0, pad), (0, 0)))
    q["b22"] = p["b22"]
    q["w3"] = jnp.pad(p["w3"], ((0, 0), (0, pad)))
    q["b3"] = jnp.pad(p["b3"], ((0, 0), (0, pad)))
    q["w4"] = jnp.pad(p["w4"], ((0, pad), (0, 0))).astype(jnp.bfloat16)
    q["b4"] = p["b4"]
    return q


# ----------------------------------------------------------------------------
# Forward pass (Pallas) and pure-JAX reference (same bf16 weights)
# ----------------------------------------------------------------------------
def vae_forward_pallas(params, x, eps):
    B = x.shape[0]
    xf = x.reshape(B, D_IN)                                    # x.view(-1, 256*256)
    # fc1 + relu: (B, 65536) @ (65536, 512). tn=256 -> grid (2, 8) with a real
    # parallel axis (v7x megacore); tk=8192 keeps the bf16 weight double-buffer
    # at 2 x 4 MiB (safe on v7x's 64 MiB VMEM) while cutting per-step overhead.
    h1 = pallas_linear(xf, params["w1"], params["b1"],
                       activation="relu", tn=256, tk=8192)
    # fc21 / fc22 / reparameterize / fc3+relu fused into a single tiny kernel.
    mu, logvar, h3 = pallas_vae_middle(h1, params["w21"], params["b21"],
                                       params["w22"], params["b22"],
                                       eps, params["w3"], params["b3"])
    # fc4 + sigmoid: (B, 512) @ (512, 65536). tn=8192 -> grid (8, 1); bf16
    # weight tile 512x8192 = 8 MiB, double-buffered 16 MiB (fits 32 MiB limit).
    recon = pallas_linear(h3, params["w4"], params["b4"],
                          activation="sigmoid", tn=8192)
    return recon, mu, logvar


def vae_forward_ref(params, x, eps):
    B = x.shape[0]
    xf = x.reshape(B, D_IN)
    h1 = jnp.maximum(
        jnp.dot(xf.astype(params["w1"].dtype), params["w1"],
                preferred_element_type=jnp.float32) + params["b1"], 0.0)
    mu = h1 @ params["w21"] + params["b21"]
    logvar = h1 @ params["w22"] + params["b22"]
    z = mu + eps * jnp.exp(0.5 * logvar)
    h3 = jnp.maximum(z @ params["w3"] + params["b3"], 0.0)
    recon = jax.nn.sigmoid(
        jnp.dot(h3.astype(params["w4"].dtype), params["w4"],
                preferred_element_type=jnp.float32) + params["b4"])
    return recon, mu, logvar


if __name__ == "__main__":
    key = jax.random.PRNGKey(0)
    k_param, k_x, k_eps = jax.random.split(key, 3)

    B = 2
    params = prepare_params(init_params(k_param))
    x = jax.random.uniform(k_x, (B, 1, 256, 256), jnp.float32)   # NCHW image
    # eps corresponds to torch.randn_like(std); drawn once, deterministically.
    eps = jax.random.normal(k_eps, (B, D_Z), jnp.float32)

    recon, mu, logvar = jax.block_until_ready(vae_forward_pallas(params, x, eps))

    r_recon, r_mu, r_logvar = vae_forward_ref(params, x, eps)
    assert recon.shape == (B, D_IN) and mu.shape == (B, D_Z) and logvar.shape == (B, D_Z)
    # bf16 weights on fc1/fc4 -> compare against a reference using the SAME
    # bf16 weights; residual differences are only f32 accumulation ordering.
    assert jnp.allclose(recon, r_recon, atol=1e-2, rtol=1e-2)
    assert jnp.allclose(mu, r_mu, atol=1e-2, rtol=1e-2)
    assert jnp.allclose(logvar, r_logvar, atol=1e-2, rtol=1e-2)

    print("KERNEL_OK")
</pallas_src>

<mosaic_0001>
module attributes {stable_mosaic.version = 11 : i64} {
  func.func @_fused_linear_kernel(%arg0: i32, %arg1: i32, %arg2: memref<2x8192xf32, #tpu.memory_space<vmem>>, %arg3: memref<8192x256xbf16, #tpu.memory_space<vmem>>, %arg4: memref<1x256xf32, #tpu.memory_space<vmem>>, %arg5: memref<2x256xf32, #tpu.memory_space<vmem>>, %arg6: memref<2x256xf32, #tpu.memory_space<vmem>>) attributes {dimension_semantics = [#tpu.dimension_semantics<parallel>, #tpu.dimension_semantics<arbitrary>], iteration_bounds = array<i64: 2, 8>, scalar_prefetch = 0 : i64, scratch_operands = 1 : i64, tpu.core_type = #tpu.core_type<tc>, window_params = [{transform_indices = @transform_0, window_bounds = array<i64: 2, 8192>}, {transform_indices = @transform_1, window_bounds = array<i64: 8192, 256>}, {transform_indices = @transform_2, window_bounds = array<i64: 1, 256>}, {transform_indices = @transform_3, window_bounds = array<i64: 2, 256>}]} {
    %c0_i32 = arith.constant 0 : i32
    %0 = arith.cmpi eq, %arg1, %c0_i32 : i32
    %1 = arith.extui %0 : i1 to i32
    %c0_i32_0 = arith.constant 0 : i32
    %2 = arith.cmpi ne, %1, %c0_i32_0 : i32
    scf.if %2 {
      %cst_9 = arith.constant 0.000000e+00 : f32
      %13 = vector.broadcast %cst_9 : f32 to vector<2x256xf32>
      %c0_10 = arith.constant 0 : index
      %c0_11 = arith.constant 0 : index
      %14 = vector.load %arg6[%c0_10, %c0_11] : memref<2x256xf32, #tpu.memory_space<vmem>>, vector<2x256xf32>
      tpu.vector_store %arg6[%c0_10, %c0_11], %13 {strides = array<i32>} : memref<2x256xf32, #tpu.memory_space<vmem>>, vector<2x256xf32>,
    } else {
    }
    %c0 = arith.constant 0 : index
    %c0_1 = arith.constant 0 : index
    %3 = vector.load %arg2[%c0, %c0_1] : memref<2x8192xf32, #tpu.memory_space<vmem>>, vector<2x8192xf32>
    %c0_2 = arith.constant 0 : index
    %c0_3 = arith.constant 0 : index
    %4 = vector.load %arg3[%c0_2, %c0_3] : memref<8192x256xbf16, #tpu.memory_space<vmem>>, vector<8192x256xbf16>
    %5 = arith.truncf %3 : vector<2x8192xf32> to vector<2x8192xbf16>
    %c0_4 = arith.constant 0 : index
    %c0_5 = arith.constant 0 : index
    %6 = vector.load %arg6[%c0_4, %c0_5] : memref<2x256xf32, #tpu.memory_space<vmem>>, vector<2x256xf32>
    %cst = arith.constant dense<0.000000e+00> : vector<2x256xf32>
    %7 = tpu.matmul %5, %4, %cst {dimension_numbers = #tpu.dot_dimension_numbers<[1], [0], [0], [1], [0, 0, 1, 1], [], []>} : vector<2x8192xbf16>, vector<8192x256xbf16>, vector<2x256xf32> -> vector<2x256xf32>
    %8 = arith.addf %6, %7 : vector<2x256xf32>
    %c0_6 = arith.constant 0 : index
    %c0_7 = arith.constant 0 : index
    %9 = vector.load %arg6[%c0_6, %c0_7] : memref<2x256xf32, #tpu.memory_space<vmem>>, vector<2x256xf32>
    tpu.vector_store %arg6[%c0_6, %c0_7], %8 {strides = array<i32>} : memref<2x256xf32, #tpu.memory_space<vmem>>, vector<2x256xf32>,
    %c7_i32 = arith.constant 7 : i32
    %10 = arith.cmpi eq, %arg1, %c7_i32 : i32
    %11 = arith.extui %10 : i1 to i32
    %c0_i32_8 = arith.constant 0 : i32
    %12 = arith.cmpi ne, %11, %c0_i32_8 : i32
    scf.if %12 {
      %c0_9 = arith.constant 0 : index
      %c0_10 = arith.constant 0 : index
      %13 = vector.load %arg6[%c0_9, %c0_10] : memref<2x256xf32, #tpu.memory_space<vmem>>, vector<2x256xf32>
      %c0_11 = arith.constant 0 : index
      %c0_12 = arith.constant 0 : index
      %14 = vector.load %arg4[%c0_11, %c0_12] : memref<1x256xf32, #tpu.memory_space<vmem>>, vector<1x256xf32>
      %15 = vector.broadcast %14 : vector<1x256xf32> to vector<2x256xf32>
      %16 = arith.addf %13, %15 : vector<2x256xf32>
      %cst_13 = arith.constant 0.000000e+00 : f32
      %17 = vector.broadcast %cst_13 : f32 to vector<2x256xf32>
      %18 = arith.maximumf %16, %17 : vector<2x256xf32>
      %c0_14 = arith.constant 0 : index
      %c0_15 = arith.constant 0 : index
      %19 = vector.load %arg5[%c0_14, %c0_15] : memref<2x256xf32, #tpu.memory_space<vmem>>, vector<2x256xf32>
      tpu.vector_store %arg5[%c0_14, %c0_15], %18 {strides = array<i32>} : memref<2x256xf32, #tpu.memory_space<vmem>>, vector<2x256xf32>,
    } else {
    }
    return
  }
  func.func @transform_0(%arg0: i32, %arg1: i32) -> (i32, i32) {
    %c0_i32 = arith.constant 0 : i32
    %c0_i32_0 = arith.constant 0 : i32
    return %c0_i32, %arg1 : i32, i32
  }
  func.func @transform_1(%arg0: i32, %arg1: i32) -> (i32, i32) {
    %c0_i32 = arith.constant 0 : i32
    return %arg1, %arg0 : i32, i32
  }
  func.func @transform_2(%arg0: i32, %arg1: i32) -> (i32, i32) {
    %c0_i32 = arith.constant 0 : i32
    %c0_i32_0 = arith.constant 0 : i32
    return %c0_i32, %arg0 : i32, i32
  }
  func.func @transform_3(%arg0: i32, %arg1: i32) -> (i32, i32) {
    %c0_i32 = arith.constant 0 : i32
    %c0_i32_0 = arith.constant 0 : i32
    return %c0_i32, %arg0 : i32, i32
  }
}

</mosaic_0001>

<bundles_post_ra>
// kernel: tpu_custom_call.1
= control target key start
LH: loop header
LB: loop body
LE: loop exit
PB: predicated region body
PF: predicated region fallthrough
CT: control target
= control target key end

     0   :  { %s13039_s0 = inlined_call_operand.hbm [shape: f32[2,65536], index: 0, kind: input, shape index: {}]   ;;  %s13040_s1 = inlined_call_operand.hbm [shape: bf16[65536,512], index: 1, kind: input, shape index: {}]   ;;  %s13041_s2 = inlined_call_operand.hbm [shape: f32[1,512], index: 2, kind: input, shape index: {}]   ;;  %s13042_s3 = inlined_call_operand.hbm [shape: f32[2,512], index: 3, kind: output, shape index: {}]  }
   0x1   :  { %13051 = sst [smem:[#allocation21_spill]] %s13039_s0 }
   0x2   :  { %13052 = sst [smem:[#allocation22_spill]] %s13040_s1 }
   0x3   :  { %13053 = sst [smem:[#allocation23_spill]] %s13042_s3 }
   0x4   :  { %8 = vsyncpa [#allocation4], 0 }
   0x5   :  { %10 = vsyncpa [#allocation4 + $0x1], 0 }
   0x6   :  { %11 = vsyncpa [#allocation7], 0 }
   0x7   :  { %13 = vsyncpa [#allocation7 + $0x1], 0 }
   0x8   :  { %14 = vsyncpa [#allocation5], 0 }
   0x9   :  { %16 = vsyncpa [#allocation5 + $0x1], 0  ;;  %s11375_s12 = smov 0   ;;  %s11377_s13 = smov 0  }
   0xa   :  { %s11379_s14 = smov 0   ;;  %s11381_s15 = smov 0  }
   0xb   :  { %s11383_s16 = smov 0   ;;  %s11385_s17 = smov 0  }
   0xc   :  { %s11387_s18 = smov 0   ;;  %s11389_s19 = smov 0  }
   0xd   :  { %s11391_s20 = smov 0   ;;  %s11393_s21 = smov 0  }
   0xe   :  { %s11395_s22 = smov 0   ;;  %s11397_s23 = smov 0  }
   0xf   :  { %s11399_s24 = smov 0   ;;  %s11401_s25 = smov 0  }
  0x10 LB: > { %13054 = sst [smem:[#allocation14_spill]] %s11324_s20  ;;  %p49_p0 = scmp.eq.s32.totalorder %s11344_s25, 0  ;;  %s11344_s25 = sphi %s11401_s25, %s22_s25   ;;  %s11340_s24 = sphi %s11399_s24, %s13089_s24   ;;  %s11336_s23 = sphi %s11397_s23, %s13100_s23   ;;  %s11332_s22 = sphi %s11395_s22, %s13099_s22   ;;  %s11328_s21 = sphi %s11393_s21, %s13098_s21   ;;  %s11324_s20 = sphi %s11391_s20, %s13086_s20   ;;  %s11320_s19 = sphi %s11389_s19, %s13097_s19   ;;  %s11316_s18 = sphi %s11387_s18, %s13096_s18   ;;  %s11312_s17 = sphi %s11385_s17, %s13095_s17   ;;  %s11308_s16 = sphi %s11383_s16, %s13094_s16   ;;  %s11304_s15 = sphi %s11381_s15, %s13093_s15   ;;  %s11300_s14 = sphi %s11379_s14, %s13092_s14   ;;  %s11296_s13 = sphi %s11377_s13, %s13091_s13   ;;  %s11292_s12 = sphi %s11375_s12, %s13090_s12  }
  0x11   : > { %13055 = sst [smem:[#allocation15_spill]] %s11328_s21  ;;  %p76_p1 = scmp.ne.s32.totalorder %s11312_s17, %s11308_s16 }
  0x12   : > { %13056 = sst [smem:[#allocation16_spill]] %s11332_s22  ;;  %p82_p2 = scmp.ne.s32.totalorder %s11308_s16, %s11304_s15 }
  0x13   : > { %13057 = sst [smem:[#allocation17_spill]] %s11340_s24  ;;  %p78_p3 = por %p76_p1, %p49_p0 }
  0x14   : > { %p9437_p4 = scmp.lt.s32.totalorder %s11344_s25, 16  ;;  %s177_s28 = sand.u32 1, %s11344_s25  }
  0x15   : > { %s179_s29 = sand.u32 1, %s11312_s17   ;;  %s8369_s4 = sshll.u32 %s11340_s24, 1 }
  0x16   : > { %s8367_s30 = sshll.u32 %s179_s29, 13  ;;  %s9412_s5 = sshll.u32 %s11336_s23, 12 }
  0x17   : > { %s181_s6 = scalar_lea.vmem [#allocation6], %s8367_s30  ;;  %s188_s8 = sadd.s32 %s9412_s5, %s8369_s4 }
  0x18   : > { %s191_s7 = sshll.u32 %s181_s6, 4  ;;  %s8371_s9 = sshll.u32 %s188_s8, 6  ;;  %s192_s7 = int_to_ptr.vmem [resolvable:$true] %s191_s7 }
  0x19   : > { %p11461_p5 = pnand %p9437_p4, %p78_p3  ;;  %s13059_s1 = sld [smem:[#allocation22_spill]] }
  0x1a   : > { %p8375_p6 = scmp.ge.s32.totalorder %s11344_s25, 1  ;;  %s11469_s3 = scalar_lea.sflag [#allocation7], %s177_s28 }
  0x1b   : > { %p11110_p7 = pneg %p11461_p5  ;;  %s11121_s29 = scalar_lea.vmem %s192_s7, 131072 }
  0x1c   : > { %p11122_p8 = scmp.ne.s32.totalorder %s192_s7, %s11121_s29  ;;  %s11346_s30 = smov [#allocation6]  }
  0x1d   : > { %s11126_s4 = sshll.u32 %s11346_s30, 4  ;;  %s11127_s4 = int_to_ptr.vmem [resolvable:$false] %s11126_s4 }
  0x1e   : > { %p11124_p9 = pnand %p11122_p8, %p11110_p7  ;;  %s11128_s5 = scalar_lea.vmem %s11127_s4, 262144 }
  0x1f   : > { %s190_s26 = scalar_lea.hbm %s13059_s1, %s8371_s9  ;;  %p11129_p11 = scmp.lt.s32.totalorder %s192_s7, %s11127_s4 }
  0x20   : > { %p11125_p10 = pneg %p11124_p9  ;;  %p11130_p12 = scmp.lt.s32.totalorder %s11128_s5, %s11121_s29 }
  0x22   : > { %p11131_p13 = por %p11130_p12, %p11129_p11 }
  0x24   : > { %p11132_p1 = pnand %p11131_p13, %p11125_p10 }
  0x26   : > { %11135 = shalt.err (!%p11132_p1)
}
  0x27   : > { %s11347_s27 = smov 256   ;;  %s11348_s28 = smov 128  }
  0x28   : > { %s11349_s6 = smov 8   ;;  %p218_p3 = scmp.lt.s32.totalorder %s11344_s25, 17 }
  0x29   : > { %9429 = dma.hbm_to_vmem [thread:$0]  (!%p11461_p5), %s190_s26, 131072, %s192_s7, %s11469_s3, %s11347_s27, %s11348_s28, %s11349_s6  }
  0x2a   : > { %p11479_p7 = pnand %p8375_p6, %p218_p3  ;;  %s11484_s9 = sadd.s32 4294967295, %s11344_s25  }
  0x2b   : > { %s31_s11 = sadd.s32 1, %s11336_s23  ;;  %s41_s29 = sadd.s32 1, %s11324_s20 }
  0x2c   : > { %p32_p8 = scmp.ge.s32.totalorder %s31_s11, 8  ;;  %p48_p5 = scmp.ne.s32.totalorder %s11324_s20, %s11320_s19 }
  0x2d   : > { %p54_p9 = scmp.ne.s32.totalorder %s11320_s19, %s11316_s18  ;;  %s13062_s26 = sadd.s32 1, %s11340_s24 }
  0x2e   : > { %s13102_s11 = smov (%p32_p8, %s31_s11), 0  ;;  %s13104_s26 = smov (!%p32_p8, %s13062_s26), %s11340_s24 }
  0x2f   : > { %13061 = sst [smem:[#allocation18_spill]] %s13102_s11  ;;  %s38_s7 = ssub.s32 %s11336_s23, %s13102_s11 }
  0x30   : > { %p11501_p6 = por %p49_p0, %p48_p5  ;;  %p36_p10 = scmp.ge.s32.totalorder %s13104_s26, 2 }
  0x31   : > { %p39_p11 = scmp.eq.s32.totalorder %s38_s7, 0  ;;  %p13047_p12 = scmp.eq.s32.totalorder %s11484_s9, 0 }
  0x32   : > { %s158_s18 = sand.u32 1, %s11324_s20   ;;  %s13106_s26 = smov (%p36_p10, %s13104_s26), 0 }
  0x33   : > { %13064 = sst [smem:[#allocation19_spill]] %s13106_s26  ;;  %p11514_p13 = por %p13047_p12, %p54_p9 }
  0x34   : > { %s11510_s30 = scalar_select %p39_p11, %s11324_s20, %s41_s29  }
  0x35   : > { %s11520_s5 = ssub.s32 %s11340_s24, %s13106_s26  ;;  %p11528_p1 = por %p82_p2, %p13047_p12 }
  0x36   : > { %13065 = sst [smem:[#allocation20_spill]] %s11510_s30  ;;  %s66_s27 = sor.u32 %s11520_s5, %s38_s7 }
  0x37   : > { %p67_p3 = scmp.eq.s32.totalorder %s66_s27, 0  ;;  %s8364_s6 = sshll.u32 %s158_s18, 7 }
  0x38   : > { %s9411_s1 = sshll.u32 %s11336_s23, 11  ;;  %s13068_s29 = sadd.s32 1, %s11312_s17 }
  0x39   : > { %s11536_s11 = scalar_select %p67_p3, %s11312_s17, %s13068_s29  }
  0x3a   : > { %s13069_s0 = sld [smem:[#allocation21_spill]]  ;;  %s162_s26 = scalar_lea.vmem [#allocation3], %s8364_s6 }
  0x3b   : > { %s170_s21 = sshll.u32 %s162_s26, 4  ;;  %p11545_p8 = pnand %p9437_p4, %p11501_p6  ;;  %s171_s21 = int_to_ptr.vmem [resolvable:$true] %s170_s21 }
  0x3c   : > { %s159_s7 = scalar_lea.sflag [#allocation4], %s158_s18  ;;  %s11149_s27 = scalar_lea.vmem %s171_s21, 2048 }
  0x3d   : > { %p11138_p2 = pneg %p11545_p8  ;;  %p11150_p5 = scmp.ne.s32.totalorder %s171_s21, %s11149_s27 }
  0x3e   : > { %s11350_s29 = smov [#allocation3]  }
  0x3f   : > { %p11152_p9 = pnand %p11150_p5, %p11138_p2  ;;  %s11154_s20 = sshll.u32 %s11350_s29, 4  ;;  %s11155_s20 = int_to_ptr.vmem [resolvable:$false] %s11154_s20 }
  0x40   : > { %s168_s22 = scalar_lea.hbm %s13069_s0, %s9411_s1  ;;  %s11156_s1 = scalar_lea.vmem %s11155_s20, 4096 }
  0x41   : > { %p11153_p10 = pneg %p11152_p9  ;;  %p11157_p11 = scmp.lt.s32.totalorder %s171_s21, %s11155_s20 }
  0x42   : > { %p11158_p3 = scmp.lt.s32.totalorder %s11156_s1, %s11149_s27 }
  0x44   : > { %p11159_p12 = por %p11158_p3, %p11157_p11 }
  0x46   : > { %p11160_p6 = pnand %p11159_p12, %p11153_p10 }
  0x48   : > { %11163 = shalt.err (!%p11160_p6)
}
  0x49   : > { %9426 = dma.hbm_to_vmem [thread:$0]  (!%p11545_p8), %s168_s22, 2048, %s171_s21, %s159_s7  }
  0x4a   : > { %s8361_s26 = sadd.s32 4294967294, %s11344_s25   ;;  %p93_p2 = scmp.eq.s32.totalorder %s11520_s5, 0 }
  0x4b   : > { %s95_s10 = sadd.s32 1, %s11300_s14  ;;  %p102_p12 = scmp.ne.s32.totalorder %s11300_s14, %s11296_s13 }
  0x4c   : > { %s11559_s18 = scalar_select %p93_p2, %s11300_s14, %s95_s10  }
  0x4d   : > { %p11563_p5 = por %p102_p12, %p49_p0  ;;  %p108_p9 = scmp.ne.s32.totalorder %s11296_s13, %s11292_s12 }
  0x4e   : > { %p132_p10 = scmp.eq.s32.totalorder %s11484_s9, 15  ;;  %p138_p11 = scmp.eq.s32.totalorder %s8361_s26, 15 }
  0x4f   : > { %p13072_p3 = scmp.eq.s32.totalorder %s11484_s9, 0  ;;  %s203_s21 = sand.u32 1, %s11300_s14  }
  0x50   : > { %p11577_p8 = por %p132_p10, %p102_p12  ;;  %p11581_p2 = por %p138_p11, %p108_p9 }
  0x51   : > { %p11572_p6 = por %p108_p9, %p13072_p3  ;;  %s8372_s15 = sshll.u32 %s203_s21, 1 }
  0x52   : > { %s13074_s22 = scalar_select %p11577_p8, 1, 0 }
  0x53   : > { %s13073_s6 = scalar_select %p11572_p6, 1, 0 }
  0x54   : > { %s13075_s5 = scalar_select %p11581_p2, 1, 0 }
  0x55   : > { %s9413_s7 = sshll.u32 %s11340_s24, 5  ;;  %s205_s1 = scalar_lea.vmem [#allocation8], %s8372_s15 }
  0x56   : > { %s211_s20 = scalar_lea.hbm %s13041_s2, %s9413_s7  ;;  %s213_s26 = sshll.u32 %s205_s1, 4  ;;  %s214_s26 = int_to_ptr.vmem [resolvable:$true] %s213_s26 }
  0x57   : > { %p11593_p0 = pnand %p9437_p4, %p11563_p5  ;;  %s11177_s0 = scalar_lea.vmem %s214_s26, 32 }
  0x58   : > { %p11178_p9 = scmp.ne.s32.totalorder %s214_s26, %s11177_s0  ;;  %s11351_s21 = smov [#allocation8]  }
  0x59   : > { %p11166_p12 = pneg %p11593_p0  ;;  %s11182_s24 = sshll.u32 %s11351_s21, 4  ;;  %s11183_s24 = int_to_ptr.vmem [resolvable:$false] %s11182_s24 }
  0x5a   : > { %s11184_s7 = scalar_lea.vmem %s11183_s24, 64  ;;  %p11185_p3 = scmp.lt.s32.totalorder %s214_s26, %s11183_s24 }
  0x5b   : > { %p11180_p10 = pnand %p11178_p9, %p11166_p12  ;;  %p11186_p2 = scmp.lt.s32.totalorder %s11184_s7, %s11177_s0 }
  0x5d   : > { %p11181_p11 = pneg %p11180_p10  ;;  %p11187_p8 = por %p11186_p2, %p11185_p3 }
  0x5f   : > { %p11188_p6 = pnand %p11187_p8, %p11181_p11 }
  0x61   : > { %11191 = shalt.err (!%p11188_p6)
}
  0x62   : > { %9432 = dma.hbm_to_vmem [thread:$0]  (!%p11593_p0), %s211_s20, 32, %s214_s26, %s11469_s3  }
  0x63   : > { %222 = sbr.rel (%p11479_p7) target bundleno = 1398 (0x576), region = 32  ;;  %s224_s30 = sand.u32 (!%p11479_p7), 1, %s11320_s19  }
  0x64   : > { %s8376_s15 = sshll.u32 (!%p11479_p7), %s224_s30, 7  ;;  %s225_s27 = scalar_lea.sflag (!%p11479_p7), [#allocation4], %s224_s30 }
  0x65   : > { %s11605_s29 = scalar_lea.vmem (!%p11479_p7), [#allocation3], %s8376_s15 }
  0x68   : > { %11275 = dma.done.wait (%p11514_p13), %s225_s27, 2048  }
  0x69   : > { %11277 = vsyncadd (%p11514_p13), %s225_s27, 4294965248  ;;  %s233_s0 = sand.u32 1, %s11484_s9   ;;  %s235_s3 = sand.u32 1, %s11308_s16  }
  0x6a   : > { %s8377_s24 = sshll.u32 %s235_s3, 13  ;;  %s234_s8 = scalar_lea.sflag [#allocation7], %s233_s0 }
  0x6b   : > { %s11613_s20 = scalar_lea.vmem [#allocation6], %s8377_s24 }
  0x6c   : > { %11279 = dma.done.wait (%p11528_p1), %s234_s8, 131072  }
  0x6d   : > { %11281 = vsyncadd (%p11528_p1), %s234_s8, 4294836224  ;;  %s11620_s1 = sand.u32 1, %s11296_s13   ;;  %p13077_p4 = scmp.ne.s32.totalorder %s13073_s6, 0 }
  0x6e   : > { %s8378_s4 = sshll.u32 %s11620_s1, 1 }
  0x6f   : > { %s11623_s26 = scalar_lea.vmem [#allocation8], %s8378_s4 }
  0x70   : > { %11283 = dma.done.wait (%p13077_p4), %s234_s8, 32  }
  0x71   : > { %11285 = vsyncadd (%p13077_p4), %s234_s8, 4294967264  ;;  %s8379_s9 = sshll.u32 %s11620_s1, 2  ;;  %s13078_s21 = sld [smem:[#allocation15_spill]] }
  0x72   : > { %s11630_s10 = scalar_lea.vmem [#allocation9], %s8379_s9 }
  0x77   : > { %p8380_p7 = scmp.ne.s32.totalorder %s13078_s21, 0 }
  0x79   : > { %287 = sbr.rel (%p8380_p7) target bundleno = 128 (0x80), region = 48 }
  0x7e   : > { %v11352_v0 = vmov 0.0  }
  0x7f   : > { %288 = vst [vmem:[#allocation2] sm:$0xf] %v11352_v0 }
  0x80 PF: > { %v9556_v1 = vld [vmem:[%s11613_s20 + $0x74] ss:$8 sps:$4 sm:$0xff]   ;;  %v9560_v3 = vld [vmem:[%s11613_s20 + $0x70] ss:$8 sps:$4 sm:$0xff]   ;;  %v9562_v5 = vld [vmem:[%s11613_s20 + $0x64] ss:$8 sps:$4 sm:$0xff]   ;;  %v1349_v39 = vlaneseq }
  0x81   : > { %v9558_v2 = vld [vmem:[%s11613_s20 + $0x174] ss:$8 sps:$4 sm:$0xff]   ;;  %6866 = vmatprep.subr.bf16.mxu0 %v9556_v1  ;;  %v9561_v4 = vld [vmem:[%s11613_s20 + $0x170] ss:$8 sps:$4 sm:$0xff]   ;;  %v9564_v6 = vld [vmem:[%s11613_s20 + $0x164] ss:$8 sps:$4 sm:$0xff]  }
  0x82   : > { %6907 = vmatprep.subr.bf16.mxu1 %v9558_v2  ;;  %6867 = vmatpush1.bf16.msra.mxu0 %v9560_v3  ;;  %v9566_v7 = vld [vmem:[%s11613_s20 + $0x60] ss:$8 sps:$4 sm:$0xff]   ;;  %v9568_v9 = vld [vmem:[%s11613_s20 + $0x54] ss:$8 sps:$4 sm:$0xff]   ;;  %v9572_v11 = vld [vmem:[%s11613_s20 + $0x50] ss:$8 sps:$4 sm:$0xff]  }
  0x83   : > { %6908 = vmatpush1.bf16.msra.mxu1 %v9561_v4  ;;  %6868 = vmatprep.subr.bf16.mxu0 %v9562_v5  ;;  %v9567_v8 = vld [vmem:[%s11613_s20 + $0x160] ss:$8 sps:$4 sm:$0xff]   ;;  %v9570_v10 = vld [vmem:[%s11613_s20 + $0x154] ss:$8 sps:$4 sm:$0xff]   ;;  %v9573_v12 = vld [vmem:[%s11613_s20 + $0x150] ss:$8 sps:$4 sm:$0xff]  }
  0x84   : > { %6909 = vmatprep.subr.bf16.mxu1 %v9564_v6  ;;  %v9574_v13 = vld [vmem:[%s11613_s20 + $0x44] ss:$8 sps:$4 sm:$0xff]   ;;  %v9578_v15 = vld [vmem:[%s11613_s20 + $0x40] ss:$8 sps:$4 sm:$0xff]   ;;  %v9580_v17 = vld [vmem:[%s11613_s20 + $0x34] ss:$8 sps:$4 sm:$0xff]  }
  0x85   : > { %v9576_v14 = vld [vmem:[%s11613_s20 + $0x144] ss:$8 sps:$4 sm:$0xff]   ;;  %v9579_v16 = vld [vmem:[%s11613_s20 + $0x140] ss:$8 sps:$4 sm:$0xff]   ;;  %v9582_v18 = vld [vmem:[%s11613_s20 + $0x134] ss:$8 sps:$4 sm:$0xff]  }
  0x86   : > { %6869 = vmatpush1.bf16.msra.mxu0 %v9566_v7  ;;  %v9584_v19 = vld [vmem:[%s11613_s20 + $0x30] ss:$8 sps:$4 sm:$0xff]   ;;  %v9586_v21 = vld [vmem:[%s11613_s20 + $0x24] ss:$8 sps:$4 sm:$0xff]   ;;  %v9590_v23 = vld [vmem:[%s11613_s20 + $0x20] ss:$8 sps:$4 sm:$0xff]  }
  0x87   : > { %6910 = vmatpush1.bf16.msra.mxu1 %v9567_v8  ;;  %6870 = vmatprep.subr.bf16.mxu0 %v9568_v9  ;;  %v9585_v20 = vld [vmem:[%s11613_s20 + $0x130] ss:$8 sps:$4 sm:$0xff]   ;;  %v9588_v22 = vld [vmem:[%s11613_s20 + $0x124] ss:$8 sps:$4 sm:$0xff]   ;;  %v9591_v24 = vld [vmem:[%s11613_s20 + $0x120] ss:$8 sps:$4 sm:$0xff]  }
  0x88   : > { %6911 = vmatprep.subr.bf16.mxu1 %v9570_v10  ;;  %v9592_v25 = vld [vmem:[%s11613_s20 + $0x14] ss:$8 sps:$4 sm:$0xff]   ;;  %v9596_v27 = vld [vmem:[%s11613_s20 + $0x10] ss:$8 sps:$4 sm:$0xff]   ;;  %v9598_v29 = vld [vmem:[%s11613_s20 + $0x4] ss:$8 sps:$4 sm:$0xff]  }
  0x89   : > { %v9594_v26 = vld [vmem:[%s11613_s20 + $0x114] ss:$8 sps:$4 sm:$0xff]   ;;  %v9597_v28 = vld [vmem:[%s11613_s20 + $0x110] ss:$8 sps:$4 sm:$0xff]   ;;  %v9600_v30 = vld [vmem:[%s11613_s20 + $0x104] ss:$8 sps:$4 sm:$0xff]  }
  0x8a   : > { %6871 = vmatpush1.bf16.msra.mxu0 %v9572_v11  ;;  %v9602_v31 = vld [vmem:[%s11613_s20] ss:$8 sps:$4 sm:$0xff]   ;;  %v9604_v33 = vld [vmem:[%s11613_s20 + $0xf4] ss:$8 sps:$4 sm:$0xff]   ;;  %v9608_v35 = vld [vmem:[%s11613_s20 + $0xf0] ss:$8 sps:$4 sm:$0xff]  }
  0x8b   : > { %6912 = vmatpush1.bf16.msra.mxu1 %v9573_v12  ;;  %6872 = vmatprep.subr.bf16.mxu0 %v9574_v13  ;;  %v9603_v32 = vld [vmem:[%s11613_s20 + $0x100] ss:$8 sps:$4 sm:$0xff]   ;;  %v9606_v34 = vld [vmem:[%s11613_s20 + $0x1f4] ss:$8 sps:$4 sm:$0xff]   ;;  %v9609_v36 = vld [vmem:[%s11613_s20 + $0x1f0] ss:$8 sps:$4 sm:$0xff]  }
  0x8c   : > { %6913 = vmatprep.subr.bf16.mxu1 %v9576_v14  ;;  %v11353_v37 = vmov 1983009808   ;;  %v9610_v40 = vld [vmem:[%s11613_s20 + $0xe4] ss:$8 sps:$4 sm:$0xff]   ;;  %v9614_v42 = vld [vmem:[%s11613_s20 + $0xe0] ss:$8 sps:$4 sm:$0xff]  }
  0x8d   : > { %v1347_v38 = vunpack.c.l.s4 %v11353_v37  ;;  %v9612_v41 = vld [vmem:[%s11613_s20 + $0x1e4] ss:$8 sps:$4 sm:$0xff]   ;;  %v11672_v44 = vshrl.u32 %v1349_v39, 7  ;;  %v9615_v45 = vld [vmem:[%s11613_s20 + $0x1e0] ss:$8 sps:$4 sm:$0xff]   ;;  %s13079_s28 = sld [smem:[#allocation15_spill]] }
  0x8e   : > { %6873 = vmatpush1.bf16.msra.mxu0 %v9578_v15  ;;  %v9616_v46 = vld [vmem:[%s11613_s20 + $0xd4] ss:$8 sps:$4 sm:$0xff]   ;;  %v9620_v48 = vld [vmem:[%s11613_s20 + $0xd0] ss:$8 sps:$4 sm:$0xff]   ;;  %v9622_v51 = vld [vmem:[%s11613_s20 + $0xc4] ss:$8 sps:$4 sm:$0xff]  }
  0x8f   : > { %6914 = vmatpush1.bf16.msra.mxu1 %v9579_v16  ;;  %6874 = vmatprep.subr.bf16.mxu0 %v9580_v17  ;;  %v1348_v43 = vunpack.c.0.s8 %v1347_v38  ;;  %v9618_v47 = vld [vmem:[%s11613_s20 + $0x1d4] ss:$8 sps:$4 sm:$0xff]   ;;  %v9621_v49 = vld [vmem:[%s11613_s20 + $0x1d0] ss:$8 sps:$4 sm:$0xff]   ;;  %v9624_v52 = vld [vmem:[%s11613_s20 + $0x1c4] ss:$8 sps:$4 sm:$0xff]  }
  0x90   : > { %6915 = vmatprep.subr.bf16.mxu1 %v9582_v18  ;;  %v289_v53 = vld [vmem:[%s11605_s29] sm:$0xff]  ;;  %v9628_v58 = vld [vmem:[%s11613_s20 + $0xb4] ss:$8 sps:$4 sm:$0xff]   ;;  %v9632_v62 = vld [vmem:[%s11613_s20 + $0xb0] ss:$8 sps:$4 sm:$0xff]  }
  0x91   : > { %v11680_v50 = vsub.s32 %v1348_v43, %v11672_v44  ;;  %v9626_v54 = vld [vmem:[%s11613_s20 + $0xc0] ss:$8 sps:$4 sm:$0xff]   ;;  %v1345_v56 = vcombine.high %v289_v53, %v289_v53  ;;  %v9630_v59 = vld [vmem:[%s11613_s20 + $0x1b4] ss:$8 sps:$4 sm:$0xff]   ;;  %v9633_v1 = vld [vmem:[%s11613_s20 + $0x1b0] ss:$8 sps:$4 sm:$0xff]  }
  0x92   : > { %6875 = vmatpush1.bf16.msra.mxu0 %v9584_v19  ;;  %v9627_v57 = vld [vmem:[%s11613_s20 + $0x1c0] ss:$8 sps:$4 sm:$0xff]   ;;  %v9634_v2 = vld [vmem:[%s11613_s20 + $0xa4] ss:$8 sps:$4 sm:$0xff]   ;;  %v9640_v7 = vld [vmem:[%s11613_s20 + $0x94] ss:$8 sps:$4 sm:$0xff]  }
  0x93   : > { %6916 = vmatpush1.bf16.msra.mxu1 %v9585_v20  ;;  %6876 = vmatprep.subr.bf16.mxu0 %v9586_v21  ;;  %v1352_v55 = vrot.slane %v289_v53, %v11680_v50  ;;  %v1359_v61 = vrot.slane %v1345_v56, %v11680_v50  ;;  %v9636_v3 = vld [vmem:[%s11613_s20 + $0x1a4] ss:$8 sps:$4 sm:$0xff]   ;;  %v9638_v5 = vld [vmem:[%s11613_s20 + $0xa0] ss:$8 sps:$4 sm:$0xff]   ;;  %v9642_v8 = vld [vmem:[%s11613_s20 + $0x194] ss:$8 sps:$4 sm:$0xff]  }
  0x94   : > { %6917 = vmatprep.subr.bf16.mxu1 %v9588_v22  ;;  %v9639_v6 = vld [vmem:[%s11613_s20 + $0x1a0] ss:$8 sps:$4 sm:$0xff]   ;;  %v9644_v9 = vld [vmem:[%s11613_s20 + $0x90] ss:$8 sps:$4 sm:$0xff]   ;;  %v9646_v11 = vld [vmem:[%s11613_s20 + $0x84] ss:$8 sps:$4 sm:$0xff]  }
  0x95   : > { %v1360_v60 = vcombine.high %v1352_v55, %v1352_v55  ;;  %v1361_v0 = vcombine.high %v1359_v61, %v1359_v61  ;;  %v9645_v10 = vld [vmem:[%s11613_s20 + $0x190] ss:$8 sps:$4 sm:$0xff]   ;;  %v9648_v12 = vld [vmem:[%s11613_s20 + $0x184] ss:$8 sps:$4 sm:$0xff]   ;;  %v9650_v13 = vld [vmem:[%s11613_s20 + $0x80] ss:$8 sps:$4 sm:$0xff]   ;;  %v1681_v17 = vpack.c.bf16 %v1352_v55, %v1352_v55  ;;  %v1683_v18 = vpack.c.bf16 %v1359_v61, %v1359_v61 }
  0x96   : > { %6877 = vmatpush1.bf16.msra.mxu0 %v9590_v23  ;;  %v9651_v14 = vld [vmem:[%s11613_s20 + $0x180] ss:$8 sps:$4 sm:$0xff]   ;;  %v9655_v15 = vld [vmem:[%s11613_s20 + $0x274] ss:$8 sps:$4 sm:$0xff]   ;;  %v9653_v19 = vld [vmem:[%s11613_s20 + $0x270] ss:$8 sps:$4 sm:$0xff]  }
  0x97   : > { %6918 = vmatpush1.bf16.msra.mxu1 %v9591_v24  ;;  %6878 = vmatprep.subr.bf16.mxu0 %v9592_v25  ;;  %v1682_v63 = vpack.c.bf16 %v1360_v60, %v1360_v60  ;;  %v1684_v4 = vpack.c.bf16 %v1361_v0, %v1361_v0  ;;  %v9658_v16 = vld [vmem:[%s11613_s20 + $0x374] ss:$8 sps:$4 sm:$0xff]   ;;  %v9656_v20 = vld [vmem:[%s11613_s20 + $0x370] ss:$8 sps:$4 sm:$0xff]   ;;  %v9661_v21 = vld [vmem:[%s11613_s20 + $0x264] ss:$8 sps:$4 sm:$0xff]  }
  0x98   : > { %6919 = vmatprep.subr.bf16.mxu1 %v9594_v26  ;;  %v9664_v22 = vld [vmem:[%s11613_s20 + $0x364] ss:$8 sps:$4 sm:$0xff]   ;;  %v9659_v23 = vld [vmem:[%s11613_s20 + $0x260] ss:$8 sps:$4 sm:$0xff]   ;;  %v9667_v25 = vld [vmem:[%s11613_s20 + $0x254] ss:$8 sps:$4 sm:$0xff]  }
  0x99   : > { %6898 = vmatprep.mubr.bf16.mxu0 %v1682_v63  ;;  %6939 = vmatprep.mubr.bf16.mxu1 %v1684_v4  ;;  %v9662_v24 = vld [vmem:[%s11613_s20 + $0x360] ss:$8 sps:$4 sm:$0xff]   ;;  %v9670_v26 = vld [vmem:[%s11613_s20 + $0x354] ss:$8 sps:$4 sm:$0xff]   ;;  %v9685_v37 = vld [vmem:[%s11613_s20 + $0x224] ss:$8 sps:$4 sm:$0xff]  }
  0x9a   : > { %6879 = vmatpush1.bf16.msra.mxu0 %v9596_v27  ;;  %v9665_v27 = vld [vmem:[%s11613_s20 + $0x250] ss:$8 sps:$4 sm:$0xff]   ;;  %v9688_v38 = vld [vmem:[%s11613_s20 + $0x324] ss:$8 sps:$4 sm:$0xff]   ;;  %v9683_v39 = vld [vmem:[%s11613_s20 + $0x220] ss:$8 sps:$4 sm:$0xff]  }
  0x9b   : > { %6920 = vmatpush1.bf16.msra.mxu1 %v9597_v28  ;;  %6880 = vmatprep.subr.bf16.mxu0 %v9598_v29  ;;  %v9668_v28 = vld [vmem:[%s11613_s20 + $0x350] ss:$8 sps:$4 sm:$0xff]   ;;  %v9673_v29 = vld [vmem:[%s11613_s20 + $0x244] ss:$8 sps:$4 sm:$0xff]   ;;  %v9695_v56 = vld [vmem:[%s11613_s20 + $0x200] ss:$8 sps:$4 sm:$0xff]  }
  0x9c   : > { %6921 = vmatprep.subr.bf16.mxu1 %v9600_v30  ;;  %v9676_v30 = vld [vmem:[%s11613_s20 + $0x344] ss:$8 sps:$4 sm:$0xff]   ;;  %v9706_v60 = vld [vmem:[%s11613_s20 + $0x3f4] ss:$8 sps:$4 sm:$0xff]   ;;  %v9701_v61 = vld [vmem:[%s11613_s20 + $0x2f0] ss:$8 sps:$4 sm:$0xff]  }
  0x9d   : > { %v290_v43 = vld [vmem:[%s11605_s29 + $0x8] sm:$0xff]  ;;  %v9718_v4 = vld [vmem:[%s11613_s20 + $0x3d4] ss:$8 sps:$4 sm:$0xff]   ;;  %p9405_p13 = scmp.ne.s32.totalorder %s13079_s28, 7 }
  0x9e   : > { %6881 = vmatpush1.bf16.msra.mxu0 %v9602_v31  ;;  %v9671_v31 = vld [vmem:[%s11613_s20 + $0x240] ss:$8 sps:$4 sm:$0xff]   ;;  %v9700_v53 = vld [vmem:[%s11613_s20 + $0x304] ss:$8 sps:$4 sm:$0xff]  }
  0x9f   : > { %6922 = vmatpush1.bf16.msra.mxu1 %v9603_v32  ;;  %6882 = vmatprep.subr.bf16.mxu0 %v9604_v33  ;;  %v9674_v32 = vld [vmem:[%s11613_s20 + $0x340] ss:$8 sps:$4 sm:$0xff]   ;;  %v9679_v33 = vld [vmem:[%s11613_s20 + $0x234] ss:$8 sps:$4 sm:$0xff]   ;;  %v9709_v63 = vld [vmem:[%s11613_s20 + $0x2e4] ss:$8 sps:$4 sm:$0xff]  }
  0xa0   : > { %6923 = vmatprep.subr.bf16.mxu1 %v9606_v34  ;;  %v9682_v34 = vld [vmem:[%s11613_s20 + $0x334] ss:$8 sps:$4 sm:$0xff]   ;;  %v9712_v0 = vld [vmem:[%s11613_s20 + $0x3e4] ss:$8 sps:$4 sm:$0xff]  }
  0xa2   : > { %6883 = vmatpush2.bf16.msra.mxu0 %v9608_v35  ;;  %v9677_v35 = vld [vmem:[%s11613_s20 + $0x230] ss:$8 sps:$4 sm:$0xff]  }
  0xa3   : > { %6924 = vmatpush2.bf16.msra.mxu1 %v9609_v36  ;;  %6884 = vmatprep.subr.bf16.mxu0 %v9610_v40  ;;  %v9680_v36 = vld [vmem:[%s11613_s20 + $0x330] ss:$8 sps:$4 sm:$0xff]   ;;  %v9686_v40 = vld [vmem:[%s11613_s20 + $0x320] ss:$8 sps:$4 sm:$0xff]  }
  0xa4   : > { %6925 = vmatprep.subr.bf16.mxu1 %v9612_v41  ;;  %v9691_v41 = vld [vmem:[%s11613_s20 + $0x214] ss:$8 sps:$4 sm:$0xff]  }
  0xa6   : > { %6885 = vmatpush2.bf16.msra.mxu0 %v9614_v42  ;;  %v9694_v42 = vld [vmem:[%s11613_s20 + $0x314] ss:$8 sps:$4 sm:$0xff]  }
  0xa7   : > { %6926 = vmatpush2.bf16.msra.mxu1 %v9615_v45  ;;  %6886 = vmatprep.subr.bf16.mxu0 %v9616_v46  ;;  %v11733_v45 = vrot.slane %v290_v43, %v11680_v50  ;;  %v1362_v46 = vcombine.high %v290_v43, %v290_v43  ;;  %v9767_v43 = vld [vmem:[%s11613_s20 + $0x554] ss:$8 sps:$4 sm:$0xff]  }
  0xa8   : > { %6927 = vmatprep.subr.bf16.mxu1 %v9618_v47  ;;  %v9689_v47 = vld [vmem:[%s11613_s20 + $0x210] ss:$8 sps:$4 sm:$0xff]  }
  0xaa   : > { %6887 = vmatpush2.bf16.msra.mxu0 %v9620_v48  ;;  %v9692_v48 = vld [vmem:[%s11613_s20 + $0x310] ss:$8 sps:$4 sm:$0xff]  }
  0xab   : > { %6928 = vmatpush2.bf16.msra.mxu1 %v9621_v49  ;;  %6888 = vmatprep.subr.bf16.mxu0 %v9622_v51  ;;  %v1377_v49 = vcombine.high %v11733_v45, %v11733_v45  ;;  %v11740_v51 = vrot.slane %v1362_v46, %v11680_v50 }
  0xac   : > { %6929 = vmatprep.subr.bf16.mxu1 %v9624_v52  ;;  %v9697_v52 = vld [vmem:[%s11613_s20 + $0x204] ss:$8 sps:$4 sm:$0xff]  }
  0xad   : > { %v1378_v55 = vcombine.high %v11740_v51, %v11740_v51 }
  0xae   : > { %6889 = vmatpush2.bf16.msra.mxu0 %v9626_v54  ;;  %v1686_v54 = vpack.c.bf16 %v1377_v49, %v1377_v49  ;;  %v9765_v49 = vld [vmem:[%s11613_s20 + $0x550] ss:$8 sps:$4 sm:$0xff]  }
  0xaf   : > { %6930 = vmatpush2.bf16.msra.mxu1 %v9627_v57  ;;  %6890 = vmatprep.subr.bf16.mxu0 %v9628_v58  ;;  %v9698_v57 = vld [vmem:[%s11613_s20 + $0x300] ss:$8 sps:$4 sm:$0xff]   ;;  %v1688_v58 = vpack.c.bf16 %v1378_v55, %v1378_v55  ;;  %v9776_v55 = vld [vmem:[%s11613_s20 + $0x434] ss:$8 sps:$4 sm:$0xff]  }
  0xb0   : > { %6931 = vmatprep.subr.bf16.mxu1 %v9630_v59  ;;  %v9703_v59 = vld [vmem:[%s11613_s20 + $0x2f4] ss:$8 sps:$4 sm:$0xff]  }
  0xb2   : > { %6891 = vmatpush2.bf16.msra.mxu0 %v9632_v62  ;;  %v9704_v62 = vld [vmem:[%s11613_s20 + $0x3f0] ss:$8 sps:$4 sm:$0xff]  }
  0xb3   : > { %6932 = vmatpush2.bf16.msra.mxu1 %v9633_v1  ;;  %6892 = vmatprep.subr.bf16.mxu0 %v9634_v2  ;;  %v9707_v1 = vld [vmem:[%s11613_s20 + $0x2e0] ss:$8 sps:$4 sm:$0xff]  }
  0xb4   : > { %6933 = vmatprep.subr.bf16.mxu1 %v9636_v3  ;;  %v9710_v2 = vld [vmem:[%s11613_s20 + $0x3e0] ss:$8 sps:$4 sm:$0xff]   ;;  %v9715_v3 = vld [vmem:[%s11613_s20 + $0x2d4] ss:$8 sps:$4 sm:$0xff]  }
  0xb6   : > { %6893 = vmatpush2.bf16.msra.mxu0 %v9638_v5  ;;  %v9713_v5 = vld [vmem:[%s11613_s20 + $0x2d0] ss:$8 sps:$4 sm:$0xff]  }
  0xb7   : > { %6934 = vmatpush2.bf16.msra.mxu1 %v9639_v6  ;;  %6894 = vmatprep.subr.bf16.mxu0 %v9640_v7  ;;  %v9716_v6 = vld [vmem:[%s11613_s20 + $0x3d0] ss:$8 sps:$4 sm:$0xff]   ;;  %v9721_v7 = vld [vmem:[%s11613_s20 + $0x2c4] ss:$8 sps:$4 sm:$0xff]  }
  0xb8   : > { %6935 = vmatprep.subr.bf16.mxu1 %v9642_v8  ;;  %v9724_v8 = vld [vmem:[%s11613_s20 + $0x3c4] ss:$8 sps:$4 sm:$0xff]  }
  0xba   : > { %6895 = vmatpush2.bf16.msra.mxu0 %v9644_v9  ;;  %v9719_v9 = vld [vmem:[%s11613_s20 + $0x2c0] ss:$8 sps:$4 sm:$0xff]  }
  0xbb   : > { %6936 = vmatpush2.bf16.msra.mxu1 %v9645_v10  ;;  %6896 = vmatprep.subr.bf16.mxu0 %v9646_v11  ;;  %v9722_v10 = vld [vmem:[%s11613_s20 + $0x3c0] ss:$8 sps:$4 sm:$0xff]   ;;  %v9727_v11 = vld [vmem:[%s11613_s20 + $0x2b4] ss:$8 sps:$4 sm:$0xff]  }
  0xbc   : > { %6937 = vmatprep.subr.bf16.mxu1 %v9648_v12  ;;  %v9730_v12 = vld [vmem:[%s11613_s20 + $0x3b4] ss:$8 sps:$4 sm:$0xff]  }
  0xbe   : > { %6897 = vmatpush2.bf16.msra.mxu0 %v9650_v13  ;;  %v9725_v13 = vld [vmem:[%s11613_s20 + $0x2b0] ss:$8 sps:$4 sm:$0xff]  }
  0xbf   : > { %6938 = vmatpush2.bf16.msra.mxu1 %v9651_v14  ;;  %6948 = vmatprep.subr.bf16.mxu0 %v9655_v15  ;;  %v9728_v14 = vld [vmem:[%s11613_s20 + $0x3b0] ss:$8 sps:$4 sm:$0xff]   ;;  %v9733_v15 = vld [vmem:[%s11613_s20 + $0x2a4] ss:$8 sps:$4 sm:$0xff]  }
  0xc0   : > { %6989 = vmatprep.subr.bf16.mxu1 %v9658_v16  ;;  %v9736_v16 = vld [vmem:[%s11613_s20 + $0x3a4] ss:$8 sps:$4 sm:$0xff]  }
  0xc1   : > { %6899 = vmatmul.mubr.bf16.vlgmr.msra.gmra.mxu0 %v1681_v17  ;;  %v9731_v17 = vld [vmem:[%s11613_s20 + $0x2a0] ss:$8 sps:$4 sm:$0xff]  }
  0xc2   : > { %6940 = vmatmul.mubr.bf16.vlgmr.msra.gmra.mxu1 %v1683_v18  ;;  %6949 = vmatpush1.bf16.msra.mxu0 %v9653_v19  ;;  %v9734_v18 = vld [vmem:[%s11613_s20 + $0x3a0] ss:$8 sps:$4 sm:$0xff]   ;;  %v9739_v19 = vld [vmem:[%s11613_s20 + $0x294] ss:$8 sps:$4 sm:$0xff]  }
  0xc3   : > { %6990 = vmatpush1.bf16.msra.mxu1 %v9656_v20  ;;  %6950 = vmatprep.subr.bf16.mxu0 %v9661_v21  ;;  %v9742_v20 = vld [vmem:[%s11613_s20 + $0x394] ss:$8 sps:$4 sm:$0xff]   ;;  %v9737_v21 = vld [vmem:[%s11613_s20 + $0x290] ss:$8 sps:$4 sm:$0xff]  }
  0xc4   : > { %6991 = vmatprep.subr.bf16.mxu1 %v9664_v22  ;;  %6980 = vmatprep.mubr.bf16.mxu0 %v1686_v54  ;;  %v9740_v22 = vld [vmem:[%s11613_s20 + $0x390] ss:$8 sps:$4 sm:$0xff]   ;;  %v9771_v54 = vld [vmem:[%s11613_s20 + $0x540] ss:$8 sps:$4 sm:$0xff]  }
  0xc5   : > { %7021 = vmatprep.mubr.bf16.mxu1 %v1688_v58  ;;  %v9777_v58 = vld [vmem:[%s11613_s20 + $0x530] ss:$8 sps:$4 sm:$0xff]  }
  0xc6   : > { %6951 = vmatpush1.bf16.msra.mxu0 %v9659_v23  ;;  %v9745_v23 = vld [vmem:[%s11613_s20 + $0x284] ss:$8 sps:$4 sm:$0xff]  }
  0xc7   : > { %6992 = vmatpush1.bf16.msra.mxu1 %v9662_v24  ;;  %6952 = vmatprep.subr.bf16.mxu0 %v9667_v25  ;;  %v9748_v24 = vld [vmem:[%s11613_s20 + $0x384] ss:$8 sps:$4 sm:$0xff]   ;;  %v9743_v25 = vld [vmem:[%s11613_s20 + $0x280] ss:$8 sps:$4 sm:$0xff]  }
  0xc8   : > { %6993 = vmatprep.subr.bf16.mxu1 %v9670_v26  ;;  %v9746_v26 = vld [vmem:[%s11613_s20 + $0x380] ss:$8 sps:$4 sm:$0xff]  }
  0xca   : > { %6953 = vmatpush1.bf16.msra.mxu0 %v9665_v27  ;;  %v9752_v27 = vld [vmem:[%s11613_s20 + $0x474] ss:$8 sps:$4 sm:$0xff]  }
  0xcb   : > { %6994 = vmatpush1.bf16.msra.mxu1 %v9668_v28  ;;  %6954 = vmatprep.subr.bf16.mxu0 %v9673_v29  ;;  %v9755_v28 = vld [vmem:[%s11613_s20 + $0x574] ss:$8 sps:$4 sm:$0xff]   ;;  %v1685_v29 = vpack.c.bf16 %v11733_v45, %v11733_v45 }
  0xcc   : > { %6995 = vmatprep.subr.bf16.mxu1 %v9676_v30  ;;  %v1687_v30 = vpack.c.bf16 %v11740_v51, %v11740_v51  ;;  %v9770_v51 = vld [vmem:[%s11613_s20 + $0x444] ss:$8 sps:$4 sm:$0xff]  }
  0xce   : > { %6955 = vmatpush1.bf16.msra.mxu0 %v9671_v31  ;;  %v9750_v31 = vld [vmem:[%s11613_s20 + $0x470] ss:$8 sps:$4 sm:$0xff]  }
  0xcf   : > { %6996 = vmatpush1.bf16.msra.mxu1 %v9674_v32  ;;  %6956 = vmatprep.subr.bf16.mxu0 %v9679_v33  ;;  %v9753_v32 = vld [vmem:[%s11613_s20 + $0x570] ss:$8 sps:$4 sm:$0xff]   ;;  %v9758_v33 = vld [vmem:[%s11613_s20 + $0x464] ss:$8 sps:$4 sm:$0xff]  }
  0xd0   : > { %6997 = vmatprep.subr.bf16.mxu1 %v9682_v34  ;;  %v291_v34 = vld [vmem:[%s11605_s29 + $0x10] sm:$0xff] }
  0xd2   : > { %6957 = vmatpush1.bf16.msra.mxu0 %v9677_v35  ;;  %v9761_v35 = vld [vmem:[%s11613_s20 + $0x564] ss:$8 sps:$4 sm:$0xff]  }
  0xd3   : > { %6998 = vmatpush1.bf16.msra.mxu1 %v9680_v36  ;;  %6958 = vmatprep.subr.bf16.mxu0 %v9685_v37  ;;  %v11792_v36 = vrot.slane %v291_v34, %v11680_v50  ;;  %v1379_v37 = vcombine.high %v291_v34, %v291_v34 }
  0xd4   : > { %6999 = vmatprep.subr.bf16.mxu1 %v9688_v38  ;;  %v9756_v38 = vld [vmem:[%s11613_s20 + $0x460] ss:$8 sps:$4 sm:$0xff]  }
  0xd6   : > { %6959 = vmatpush1.bf16.msra.mxu0 %v9683_v39  ;;  %v1394_v39 = vcombine.high %v11792_v36, %v11792_v36 }
  0xd7   : > { %7000 = vmatpush1.bf16.msra.mxu1 %v9686_v40  ;;  %6960 = vmatprep.subr.bf16.mxu0 %v9691_v41  ;;  %v11798_v40 = vrot.slane %v1379_v37, %v11680_v50  ;;  %v9759_v41 = vld [vmem:[%s11613_s20 + $0x560] ss:$8 sps:$4 sm:$0xff]   ;;  %v9837_v37 = vld [vmem:[%s11613_s20 + $0x590] ss:$8 sps:$4 sm:$0xff]  }
  0xd8   : > { %7001 = vmatprep.subr.bf16.mxu1 %v9694_v42  ;;  %v9764_v42 = vld [vmem:[%s11613_s20 + $0x454] ss:$8 sps:$4 sm:$0xff]   ;;  %v1690_v45 = vpack.c.bf16 %v1394_v39, %v1394_v39  ;;  %v9845_v39 = vld [vmem:[%s11613_s20 + $0x584] ss:$8 sps:$4 sm:$0xff]  }
  0xd9   : > { %v1395_v46 = vcombine.high %v11798_v40, %v11798_v40 }
  0xda   : > { %6961 = vmatpush1.bf16.msra.mxu0 %v9689_v47  ;;  %v9762_v47 = vld [vmem:[%s11613_s20 + $0x450] ss:$8 sps:$4 sm:$0xff]  }
  0xdb   : > { %7002 = vmatpush1.bf16.msra.mxu1 %v9692_v48  ;;  %6962 = vmatprep.subr.bf16.mxu0 %v9697_v52  ;;  %v1692_v48 = vpack.c.bf16 %v1395_v46, %v1395_v46  ;;  %v9773_v52 = vld [vmem:[%s11613_s20 + $0x544] ss:$8 sps:$4 sm:$0xff]   ;;  %v9849_v46 = vld [vmem:[%s11613_s20 + $0x674] ss:$8 sps:$4 sm:$0xff]  }
  0xdc   : > { %7003 = vmatprep.subr.bf16.mxu1 %v9700_v53  ;;  %v9768_v53 = vld [vmem:[%s11613_s20 + $0x440] ss:$8 sps:$4 sm:$0xff]  }
  0xde   : > { %6963 = vmatpush1.bf16.msra.mxu0 %v9695_v56  ;;  %v9779_v56 = vld [vmem:[%s11613_s20 + $0x534] ss:$8 sps:$4 sm:$0xff]  }
  0xdf   : > { %7004 = vmatpush1.bf16.msra.mxu1 %v9698_v57  ;;  %6964 = vmatprep.subr.bf16.mxu0 %v9703_v59  ;;  %v9774_v57 = vld [vmem:[%s11613_s20 + $0x430] ss:$8 sps:$4 sm:$0xff]   ;;  %v9782_v59 = vld [vmem:[%s11613_s20 + $0x424] ss:$8 sps:$4 sm:$0xff]  }
  0xe0   : > { %7005 = vmatprep.subr.bf16.mxu1 %v9706_v60  ;;  %v9785_v60 = vld [vmem:[%s11613_s20 + $0x524] ss:$8 sps:$4 sm:$0xff]  }
  0xe2   : > { %6965 = vmatpush2.bf16.msra.mxu0 %v9701_v61  ;;  %v9780_v61 = vld [vmem:[%s11613_s20 + $0x420] ss:$8 sps:$4 sm:$0xff]  }
  0xe3   : > { %7006 = vmatpush2.bf16.msra.mxu1 %v9704_v62  ;;  %6966 = vmatprep.subr.bf16.mxu0 %v9709_v63  ;;  %v9783_v62 = vld [vmem:[%s11613_s20 + $0x520] ss:$8 sps:$4 sm:$0xff]   ;;  %v9788_v63 = vld [vmem:[%s11613_s20 + $0x414] ss:$8 sps:$4 sm:$0xff]  }
  0xe4   : > { %7007 = vmatprep.subr.bf16.mxu1 %v9712_v0  ;;  %v9791_v0 = vld [vmem:[%s11613_s20 + $0x514] ss:$8 sps:$4 sm:$0xff]  }
  0xe6   : > { %6967 = vmatpush2.bf16.msra.mxu0 %v9707_v1  ;;  %v9786_v1 = vld [vmem:[%s11613_s20 + $0x410] ss:$8 sps:$4 sm:$0xff]  }
  0xe7   : > { %7008 = vmatpush2.bf16.msra.mxu1 %v9710_v2  ;;  %6968 = vmatprep.subr.bf16.mxu0 %v9715_v3  ;;  %v9789_v2 = vld [vmem:[%s11613_s20 + $0x510] ss:$8 sps:$4 sm:$0xff]   ;;  %v9794_v3 = vld [vmem:[%s11613_s20 + $0x404] ss:$8 sps:$4 sm:$0xff]  }
  0xe8   : > { %7009 = vmatprep.subr.bf16.mxu1 %v9718_v4  ;;  %v9797_v4 = vld [vmem:[%s11613_s20 + $0x504] ss:$8 sps:$4 sm:$0xff]  }
  0xea   : > { %6969 = vmatpush2.bf16.msra.mxu0 %v9713_v5  ;;  %v9792_v5 = vld [vmem:[%s11613_s20 + $0x400] ss:$8 sps:$4 sm:$0xff]  }
  0xeb   : > { %7010 = vmatpush2.bf16.msra.mxu1 %v9716_v6  ;;  %6970 = vmatprep.subr.bf16.mxu0 %v9721_v7  ;;  %v9795_v6 = vld [vmem:[%s11613_s20 + $0x500] ss:$8 sps:$4 sm:$0xff]   ;;  %v9800_v7 = vld [vmem:[%s11613_s20 + $0x4f4] ss:$8 sps:$4 sm:$0xff]  }
  0xec   : > { %7011 = vmatprep.subr.bf16.mxu1 %v9724_v8  ;;  %v9803_v8 = vld [vmem:[%s11613_s20 + $0x5f4] ss:$8 sps:$4 sm:$0xff]  }
  0xee   : > { %6971 = vmatpush2.bf16.msra.mxu0 %v9719_v9  ;;  %v9798_v9 = vld [vmem:[%s11613_s20 + $0x4f0] ss:$8 sps:$4 sm:$0xff]  }
  0xef   : > { %7012 = vmatpush2.bf16.msra.mxu1 %v9722_v10  ;;  %6972 = vmatprep.subr.bf16.mxu0 %v9727_v11  ;;  %v9801_v10 = vld [vmem:[%s11613_s20 + $0x5f0] ss:$8 sps:$4 sm:$0xff]   ;;  %v9806_v11 = vld [vmem:[%s11613_s20 + $0x4e4] ss:$8 sps:$4 sm:$0xff]  }
  0xf0   : > { %7013 = vmatprep.subr.bf16.mxu1 %v9730_v12  ;;  %v9809_v12 = vld [vmem:[%s11613_s20 + $0x5e4] ss:$8 sps:$4 sm:$0xff]  }
  0xf2   : > { %6973 = vmatpush2.bf16.msra.mxu0 %v9725_v13  ;;  %v9804_v13 = vld [vmem:[%s11613_s20 + $0x4e0] ss:$8 sps:$4 sm:$0xff]  }
  0xf3   : > { %7014 = vmatpush2.bf16.msra.mxu1 %v9728_v14  ;;  %6974 = vmatprep.subr.bf16.mxu0 %v9733_v15  ;;  %v9807_v14 = vld [vmem:[%s11613_s20 + $0x5e0] ss:$8 sps:$4 sm:$0xff]   ;;  %v9812_v15 = vld [vmem:[%s11613_s20 + $0x4d4] ss:$8 sps:$4 sm:$0xff]  }
  0xf4   : > { %7015 = vmatprep.subr.bf16.mxu1 %v9736_v16  ;;  %v9815_v16 = vld [vmem:[%s11613_s20 + $0x5d4] ss:$8 sps:$4 sm:$0xff]  }
  0xf6   : > { %6975 = vmatpush2.bf16.msra.mxu0 %v9731_v17  ;;  %v9810_v17 = vld [vmem:[%s11613_s20 + $0x4d0] ss:$8 sps:$4 sm:$0xff]  }
  0xf7   : > { %7016 = vmatpush2.bf16.msra.mxu1 %v9734_v18  ;;  %6976 = vmatprep.subr.bf16.mxu0 %v9739_v19  ;;  %v9813_v18 = vld [vmem:[%s11613_s20 + $0x5d0] ss:$8 sps:$4 sm:$0xff]   ;;  %v9818_v19 = vld [vmem:[%s11613_s20 + $0x4c4] ss:$8 sps:$4 sm:$0xff]  }
  0xf8   : > { %7017 = vmatprep.subr.bf16.mxu1 %v9742_v20  ;;  %v9821_v20 = vld [vmem:[%s11613_s20 + $0x5c4] ss:$8 sps:$4 sm:$0xff]  }
  0xfa   : > { %6977 = vmatpush2.bf16.msra.mxu0 %v9737_v21  ;;  %v9816_v21 = vld [vmem:[%s11613_s20 + $0x4c0] ss:$8 sps:$4 sm:$0xff]  }
  0xfb   : > { %7018 = vmatpush2.bf16.msra.mxu1 %v9740_v22  ;;  %6978 = vmatprep.subr.bf16.mxu0 %v9745_v23  ;;  %v9819_v22 = vld [vmem:[%s11613_s20 + $0x5c0] ss:$8 sps:$4 sm:$0xff]   ;;  %v9824_v23 = vld [vmem:[%s11613_s20 + $0x4b4] ss:$8 sps:$4 sm:$0xff]  }
  0xfc   : > { %7019 = vmatprep.subr.bf16.mxu1 %v9748_v24  ;;  %v9827_v24 = vld [vmem:[%s11613_s20 + $0x5b4] ss:$8 sps:$4 sm:$0xff]  }
  0xfe   : > { %6979 = vmatpush2.bf16.msra.mxu0 %v9743_v25  ;;  %v9822_v25 = vld [vmem:[%s11613_s20 + $0x4b0] ss:$8 sps:$4 sm:$0xff]  }
  0xff   : > { %7020 = vmatpush2.bf16.msra.mxu1 %v9746_v26  ;;  %7030 = vmatprep.subr.bf16.mxu0 %v9752_v27  ;;  %v9825_v26 = vld [vmem:[%s11613_s20 + $0x5b0] ss:$8 sps:$4 sm:$0xff]   ;;  %v9830_v27 = vld [vmem:[%s11613_s20 + $0x4a4] ss:$8 sps:$4 sm:$0xff]  }
 0x100   : > { %7071 = vmatprep.subr.bf16.mxu1 %v9755_v28  ;;  %v9833_v28 = vld [vmem:[%s11613_s20 + $0x5a4] ss:$8 sps:$4 sm:$0xff]  }
 0x101   : > { %6981 = vmatmul.mubr.bf16.vlgmr.msra.gmra.mxu0 %v1685_v29  ;;  %v9828_v29 = vld [vmem:[%s11613_s20 + $0x4a0] ss:$8 sps:$4 sm:$0xff]  }
 0x102   : > { %7022 = vmatmul.mubr.bf16.vlgmr.msra.gmra.mxu1 %v1687_v30  ;;  %7031 = vmatpush1.bf16.msra.mxu0 %v9750_v31  ;;  %v9831_v30 = vld [vmem:[%s11613_s20 + $0x5a0] ss:$8 sps:$4 sm:$0xff]   ;;  %v292_v31 = vld [vmem:[%s11605_s29 + $0x18] sm:$0xff] }
 0x103   : > { %7072 = vmatpush1.bf16.msra.mxu1 %v9753_v32  ;;  %7032 = vmatprep.subr.bf16.mxu0 %v9758_v33  ;;  %v9836_v32 = vld [vmem:[%s11613_s20 + $0x494] ss:$8 sps:$4 sm:$0xff]   ;;  %v1396_v34 = vcombine.high %v292_v31, %v292_v31 }
 0x104   : > { %7073 = vmatprep.subr.bf16.mxu1 %v9761_v35  ;;  %7062 = vmatprep.mubr.bf16.mxu0 %v1690_v45  ;;  %v9839_v33 = vld [vmem:[%s11613_s20 + $0x594] ss:$8 sps:$4 sm:$0xff]   ;;  %v9834_v35 = vld [vmem:[%s11613_s20 + $0x490] ss:$8 sps:$4 sm:$0xff]   ;;  %v9843_v45 = vld [vmem:[%s11613_s20 + $0x580] ss:$8 sps:$4 sm:$0xff]  }
 0x105   : > { %7103 = vmatprep.mubr.bf16.mxu1 %v1692_v48 }
 0x106   : > { %7033 = vmatpush1.bf16.msra.mxu0 %v9756_v38  ;;  %v9842_v38 = vld [vmem:[%s11613_s20 + $0x484] ss:$8 sps:$4 sm:$0xff]  }
 0x107   : > { %7074 = vmatpush1.bf16.msra.mxu1 %v9759_v41  ;;  %7034 = vmatprep.subr.bf16.mxu0 %v9764_v42  ;;  %v11859_v41 = vrot.slane %v292_v31, %v11680_v50  ;;  %v11862_v42 = vrot.slane %v1396_v34, %v11680_v50  ;;  %v9915_v31 = vld [vmem:[%s11613_s20 + $0x6c4] ss:$8 sps:$4 sm:$0xff]   ;;  %v9916_v34 = vld [vmem:[%s11613_s20 + $0x7c0] ss:$8 sps:$4 sm:$0xff]  }
 0x108   : > { %7075 = vmatprep.subr.bf16.mxu1 %v9767_v43  ;;  %v9840_v43 = vld [vmem:[%s11613_s20 + $0x480] ss:$8 sps:$4 sm:$0xff]  }
 0x109   : > { %v1411_v48 = vcombine.high %v11859_v41, %v11859_v41 }
 0x10a   : > { %7035 = vmatpush1.bf16.msra.mxu0 %v9762_v47  ;;  %v9852_v47 = vld [vmem:[%s11613_s20 + $0x774] ss:$8 sps:$4 sm:$0xff]  }
 0x10b   : > { %7076 = vmatpush1.bf16.msra.mxu1 %v9765_v49  ;;  %7036 = vmatprep.subr.bf16.mxu0 %v9770_v51  ;;  %v1412_v49 = vcombine.high %v11862_v42, %v11862_v42  ;;  %v1689_v51 = vpack.c.bf16 %v11792_v36, %v11792_v36  ;;  %v9853_v36 = vld [vmem:[%s11613_s20 + $0x660] ss:$8 sps:$4 sm:$0xff]  }
 0x10c   : > { %7077 = vmatprep.subr.bf16.mxu1 %v9773_v52  ;;  %v1691_v52 = vpack.c.bf16 %v11798_v40, %v11798_v40  ;;  %v9861_v40 = vld [vmem:[%s11613_s20 + $0x654] ss:$8 sps:$4 sm:$0xff]  }
 0x10e   : > { %7037 = vmatpush1.bf16.msra.mxu0 %v9768_v53  ;;  %v9847_v53 = vld [vmem:[%s11613_s20 + $0x670] ss:$8 sps:$4 sm:$0xff]  }
 0x10f   : > { %7078 = vmatpush1.bf16.msra.mxu1 %v9771_v54  ;;  %7038 = vmatprep.subr.bf16.mxu0 %v9776_v55  ;;  %v9850_v54 = vld [vmem:[%s11613_s20 + $0x770] ss:$8 sps:$4 sm:$0xff]   ;;  %v9855_v55 = vld [vmem:[%s11613_s20 + $0x664] ss:$8 sps:$4 sm:$0xff]  }
 0x110   : > { %7079 = vmatprep.subr.bf16.mxu1 %v9779_v56  ;;  %v9858_v56 = vld [vmem:[%s11613_s20 + $0x764] ss:$8 sps:$4 sm:$0xff]  }
 0x112   : > { %7039 = vmatpush1.bf16.msra.mxu0 %v9774_v57  ;;  %v1694_v57 = vpack.c.bf16 %v1411_v48, %v1411_v48  ;;  %v9928_v48 = vld [vmem:[%s11613_s20 + $0x7a0] ss:$8 sps:$4 sm:$0xff]  }
 0x113   : > { %7080 = vmatpush1.bf16.msra.mxu1 %v9777_v58  ;;  %7040 = vmatprep.subr.bf16.mxu0 %v9782_v59  ;;  %v1696_v58 = vpack.c.bf16 %v1412_v49, %v1412_v49  ;;  %v9856_v59 = vld [vmem:[%s11613_s20 + $0x760] ss:$8 sps:$4 sm:$0xff]   ;;  %v9933_v49 = vld [vmem:[%s11613_s20 + $0x694] ss:$8 sps:$4 sm:$0xff]  }
 0x114   : > { %7081 = vmatprep.subr.bf16.mxu1 %v9785_v60  ;;  %v9864_v60 = vld [vmem:[%s11613_s20 + $0x754] ss:$8 sps:$4 sm:$0xff]  }
 0x116   : > { %7041 = vmatpush1.bf16.msra.mxu0 %v9780_v61  ;;  %v9859_v61 = vld [vmem:[%s11613_s20 + $0x650] ss:$8 sps:$4 sm:$0xff]  }
 0x117   : > { %7082 = vmatpush1.bf16.msra.mxu1 %v9783_v62  ;;  %7042 = vmatprep.subr.bf16.mxu0 %v9788_v63  ;;  %v9862_v62 = vld [vmem:[%s11613_s20 + $0x750] ss:$8 sps:$4 sm:$0xff]   ;;  %v9867_v63 = vld [vmem:[%s11613_s20 + $0x644] ss:$8 sps:$4 sm:$0xff]  }
 0x118   : > { %7083 = vmatprep.subr.bf16.mxu1 %v9791_v0  ;;  %v9870_v0 = vld [vmem:[%s11613_s20 + $0x744] ss:$8 sps:$4 sm:$0xff]  }
 0x11a   : > { %7043 = vmatpush1.bf16.msra.mxu0 %v9786_v1  ;;  %v9865_v1 = vld [vmem:[%s11613_s20 + $0x640] ss:$8 sps:$4 sm:$0xff]  }
 0x11b   : > { %7084 = vmatpush1.bf16.msra.mxu1 %v9789_v2  ;;  %7044 = vmatprep.subr.bf16.mxu0 %v9794_v3  ;;  %v9868_v2 = vld [vmem:[%s11613_s20 + $0x740] ss:$8 sps:$4 sm:$0xff]   ;;  %v9873_v3 = vld [vmem:[%s11613_s20 + $0x634] ss:$8 sps:$4 sm:$0xff]  }
 0x11c   : > { %7085 = vmatprep.subr.bf16.mxu1 %v9797_v4  ;;  %v9876_v4 = vld [vmem:[%s11613_s20 + $0x734] ss:$8 sps:$4 sm:$0xff]  }
 0x11e   : > { %7045 = vmatpush1.bf16.msra.mxu0 %v9792_v5  ;;  %v9871_v5 = vld [vmem:[%s11613_s20 + $0x630] ss:$8 sps:$4 sm:$0xff]  }
 0x11f   : > { %7086 = vmatpush1.bf16.msra.mxu1 %v9795_v6  ;;  %7046 = vmatprep.subr.bf16.mxu0 %v9800_v7  ;;  %v9874_v6 = vld [vmem:[%s11613_s20 + $0x730] ss:$8 sps:$4 sm:$0xff]   ;;  %v9879_v7 = vld [vmem:[%s11613_s20 + $0x624] ss:$8 sps:$4 sm:$0xff]  }
 0x120   : > { %7087 = vmatprep.subr.bf16.mxu1 %v9803_v8  ;;  %v9882_v8 = vld [vmem:[%s11613_s20 + $0x724] ss:$8 sps:$4 sm:$0xff]  }
 0x122   : > { %7047 = vmatpush2.bf16.msra.mxu0 %v9798_v9  ;;  %v9877_v9 = vld [vmem:[%s11613_s20 + $0x620] ss:$8 sps:$4 sm:$0xff]  }
 0x123   : > { %7088 = vmatpush2.bf16.msra.mxu1 %v9801_v10  ;;  %7048 = vmatprep.subr.bf16.mxu0 %v9806_v11  ;;  %v9880_v10 = vld [vmem:[%s11613_s20 + $0x720] ss:$8 sps:$4 sm:$0xff]   ;;  %v9885_v11 = vld [vmem:[%s11613_s20 + $0x614] ss:$8 sps:$4 sm:$0xff]  }
 0x124   : > { %7089 = vmatprep.subr.bf16.mxu1 %v9809_v12  ;;  %v9888_v12 = vld [vmem:[%s11613_s20 + $0x714] ss:$8 sps:$4 sm:$0xff]  }
 0x126   : > { %7049 = vmatpush2.bf16.msra.mxu0 %v9804_v13  ;;  %v9883_v13 = vld [vmem:[%s11613_s20 + $0x610] ss:$8 sps:$4 sm:$0xff]  }
 0x127   : > { %7090 = vmatpush2.bf16.msra.mxu1 %v9807_v14  ;;  %7050 = vmatprep.subr.bf16.mxu0 %v9812_v15  ;;  %v9886_v14 = vld [vmem:[%s11613_s20 + $0x710] ss:$8 sps:$4 sm:$0xff]   ;;  %v9891_v15 = vld [vmem:[%s11613_s20 + $0x604] ss:$8 sps:$4 sm:$0xff]  }
 0x128   : > { %7091 = vmatprep.subr.bf16.mxu1 %v9815_v16  ;;  %v9894_v16 = vld [vmem:[%s11613_s20 + $0x704] ss:$8 sps:$4 sm:$0xff]  }
 0x12a   : > { %7051 = vmatpush2.bf16.msra.mxu0 %v9810_v17  ;;  %v9889_v17 = vld [vmem:[%s11613_s20 + $0x600] ss:$8 sps:$4 sm:$0xff]  }
 0x12b   : > { %7092 = vmatpush2.bf16.msra.mxu1 %v9813_v18  ;;  %7052 = vmatprep.subr.bf16.mxu0 %v9818_v19  ;;  %v9892_v18 = vld [vmem:[%s11613_s20 + $0x700] ss:$8 sps:$4 sm:$0xff]   ;;  %v9897_v19 = vld [vmem:[%s11613_s20 + $0x6f4] ss:$8 sps:$4 sm:$0xff]  }
 0x12c   : > { %7093 = vmatprep.subr.bf16.mxu1 %v9821_v20  ;;  %v9900_v20 = vld [vmem:[%s11613_s20 + $0x7f4] ss:$8 sps:$4 sm:$0xff]  }
 0x12e   : > { %7053 = vmatpush2.bf16.msra.mxu0 %v9816_v21  ;;  %v9895_v21 = vld [vmem:[%s11613_s20 + $0x6f0] ss:$8 sps:$4 sm:$0xff]  }
 0x12f   : > { %7094 = vmatpush2.bf16.msra.mxu1 %v9819_v22  ;;  %7054 = vmatprep.subr.bf16.mxu0 %v9824_v23  ;;  %v9898_v22 = vld [vmem:[%s11613_s20 + $0x7f0] ss:$8 sps:$4 sm:$0xff]   ;;  %v9903_v23 = vld [vmem:[%s11613_s20 + $0x6e4] ss:$8 sps:$4 sm:$0xff]  }
 0x130   : > { %7095 = vmatprep.subr.bf16.mxu1 %v9827_v24  ;;  %v9906_v24 = vld [vmem:[%s11613_s20 + $0x7e4] ss:$8 sps:$4 sm:$0xff]  }
 0x132   : > { %7055 = vmatpush2.bf16.msra.mxu0 %v9822_v25  ;;  %v9901_v25 = vld [vmem:[%s11613_s20 + $0x6e0] ss:$8 sps:$4 sm:$0xff]  }
 0x133   : > { %7096 = vmatpush2.bf16.msra.mxu1 %v9825_v26  ;;  %7056 = vmatprep.subr.bf16.mxu0 %v9830_v27  ;;  %v9904_v26 = vld [vmem:[%s11613_s20 + $0x7e0] ss:$8 sps:$4 sm:$0xff]   ;;  %v9909_v27 = vld [vmem:[%s11613_s20 + $0x6d4] ss:$8 sps:$4 sm:$0xff]  }
 0x134   : > { %7097 = vmatprep.subr.bf16.mxu1 %v9833_v28  ;;  %v9912_v28 = vld [vmem:[%s11613_s20 + $0x7d4] ss:$8 sps:$4 sm:$0xff]  }
 0x136   : > { %7057 = vmatpush2.bf16.msra.mxu0 %v9828_v29  ;;  %v9907_v29 = vld [vmem:[%s11613_s20 + $0x6d0] ss:$8 sps:$4 sm:$0xff]  }
 0x137   : > { %7098 = vmatpush2.bf16.msra.mxu1 %v9831_v30  ;;  %7058 = vmatprep.subr.bf16.mxu0 %v9836_v32  ;;  %v9910_v30 = vld [vmem:[%s11613_s20 + $0x7d0] ss:$8 sps:$4 sm:$0xff]   ;;  %v9918_v32 = vld [vmem:[%s11613_s20 + $0x7c4] ss:$8 sps:$4 sm:$0xff]  }
 0x138   : > { %7099 = vmatprep.subr.bf16.mxu1 %v9839_v33  ;;  %v9913_v33 = vld [vmem:[%s11613_s20 + $0x6c0] ss:$8 sps:$4 sm:$0xff]  }
 0x13a   : > { %7059 = vmatpush2.bf16.msra.mxu0 %v9834_v35  ;;  %v9921_v35 = vld [vmem:[%s11613_s20 + $0x6b4] ss:$8 sps:$4 sm:$0xff]  }
 0x13b   : > { %7100 = vmatpush2.bf16.msra.mxu1 %v9837_v37  ;;  %7060 = vmatprep.subr.bf16.mxu0 %v9842_v38  ;;  %v9924_v37 = vld [vmem:[%s11613_s20 + $0x7b4] ss:$8 sps:$4 sm:$0xff]   ;;  %v9919_v38 = vld [vmem:[%s11613_s20 + $0x6b0] ss:$8 sps:$4 sm:$0xff]  }
 0x13c   : > { %7101 = vmatprep.subr.bf16.mxu1 %v9845_v39  ;;  %v9922_v39 = vld [vmem:[%s11613_s20 + $0x7b0] ss:$8 sps:$4 sm:$0xff]  }
 0x13e   : > { %7061 = vmatpush2.bf16.msra.mxu0 %v9840_v43  ;;  %v9927_v43 = vld [vmem:[%s11613_s20 + $0x6a4] ss:$8 sps:$4 sm:$0xff]  }
 0x13f   : > { %7102 = vmatpush2.bf16.msra.mxu1 %v9843_v45  ;;  %7112 = vmatprep.subr.bf16.mxu0 %v9849_v46  ;;  %v9930_v45 = vld [vmem:[%s11613_s20 + $0x7a4] ss:$8 sps:$4 sm:$0xff]   ;;  %v9925_v46 = vld [vmem:[%s11613_s20 + $0x6a0] ss:$8 sps:$4 sm:$0xff]  }
 0x140   : > { %7153 = vmatprep.subr.bf16.mxu1 %v9852_v47  ;;  %v293_v47 = vld [vmem:[%s11605_s29 + $0x20] sm:$0xff] }
 0x141   : > { %7063 = vmatmul.mubr.bf16.vlgmr.msra.gmra.mxu0 %v1689_v51  ;;  %v9936_v51 = vld [vmem:[%s11613_s20 + $0x794] ss:$8 sps:$4 sm:$0xff]  }
 0x142   : > { %7104 = vmatmul.mubr.bf16.vlgmr.msra.gmra.mxu1 %v1691_v52  ;;  %7113 = vmatpush1.bf16.msra.mxu0 %v9847_v53  ;;  %v1413_v52 = vcombine.high %v293_v47, %v293_v47  ;;  %v9931_v53 = vld [vmem:[%s11613_s20 + $0x690] ss:$8 sps:$4 sm:$0xff]  }
 0x143   : > { %7154 = vmatpush1.bf16.msra.mxu1 %v9850_v54  ;;  %7114 = vmatprep.subr.bf16.mxu0 %v9855_v55  ;;  %v9934_v54 = vld [vmem:[%s11613_s20 + $0x790] ss:$8 sps:$4 sm:$0xff]   ;;  %v9939_v55 = vld [vmem:[%s11613_s20 + $0x684] ss:$8 sps:$4 sm:$0xff]  }
 0x144   : > { %7155 = vmatprep.subr.bf16.mxu1 %v9858_v56  ;;  %7144 = vmatprep.mubr.bf16.mxu0 %v1694_v57  ;;  %v9942_v56 = vld [vmem:[%s11613_s20 + $0x784] ss:$8 sps:$4 sm:$0xff]   ;;  %v11938_v57 = vrot.slane %v293_v47, %v11680_v50  ;;  %v9997_v47 = vld [vmem:[%s11613_s20 + $0x9f4] ss:$8 sps:$4 sm:$0xff]  }
 0x145   : > { %7185 = vmatprep.mubr.bf16.mxu1 %v1696_v58  ;;  %v11941_v58 = vrot.slane %v1413_v52, %v11680_v50  ;;  %v10003_v52 = vld [vmem:[%s11613_s20 + $0x9e4] ss:$8 sps:$4 sm:$0xff]  }
 0x146   : > { %7115 = vmatpush1.bf16.msra.mxu0 %v9853_v36  ;;  %v9937_v36 = vld [vmem:[%s11613_s20 + $0x680] ss:$8 sps:$4 sm:$0xff]  }
 0x147   : > { %7156 = vmatpush1.bf16.msra.mxu1 %v9856_v59  ;;  %7116 = vmatprep.subr.bf16.mxu0 %v9861_v40  ;;  %v9940_v59 = vld [vmem:[%s11613_s20 + $0x780] ss:$8 sps:$4 sm:$0xff]   ;;  %v9946_v40 = vld [vmem:[%s11613_s20 + $0x874] ss:$8 sps:$4 sm:$0xff]  }
 0x148   : > { %7157 = vmatprep.subr.bf16.mxu1 %v9864_v60  ;;  %v9949_v60 = vld [vmem:[%s11613_s20 + $0x974] ss:$8 sps:$4 sm:$0xff]  }
 0x14a   : > { %7117 = vmatpush1.bf16.msra.mxu0 %v9859_v61  ;;  %v1428_v61 = vcombine.high %v11938_v57, %v11938_v57 }
 0x14b   : > { %7158 = vmatpush1.bf16.msra.mxu1 %v9862_v62  ;;  %7118 = vmatprep.subr.bf16.mxu0 %v9867_v63  ;;  %v1429_v62 = vcombine.high %v11941_v58, %v11941_v58  ;;  %v1693_v63 = vpack.c.bf16 %v11859_v41, %v11859_v41 }
 0x14c   : > { %7159 = vmatprep.subr.bf16.mxu1 %v9870_v0  ;;  %v1695_v0 = vpack.c.bf16 %v11862_v42, %v11862_v42 }
 0x14e   : > { %7119 = vmatpush1.bf16.msra.mxu0 %v9865_v1  ;;  %v9944_v1 = vld [vmem:[%s11613_s20 + $0x870] ss:$8 sps:$4 sm:$0xff]  }
 0x14f   : > { %7160 = vmatpush1.bf16.msra.mxu1 %v9868_v2  ;;  %7120 = vmatprep.subr.bf16.mxu0 %v9873_v3  ;;  %v9947_v2 = vld [vmem:[%s11613_s20 + $0x970] ss:$8 sps:$4 sm:$0xff]   ;;  %v9952_v3 = vld [vmem:[%s11613_s20 + $0x864] ss:$8 sps:$4 sm:$0xff]  }
 0x150   : > { %7161 = vmatprep.subr.bf16.mxu1 %v9876_v4  ;;  %v9955_v4 = vld [vmem:[%s11613_s20 + $0x964] ss:$8 sps:$4 sm:$0xff]  }
 0x152   : > { %7121 = vmatpush1.bf16.msra.mxu0 %v9871_v5  ;;  %v1698_v5 = vpack.c.bf16 %v1428_v61, %v1428_v61  ;;  %v10010_v61 = vld [vmem:[%s11613_s20 + $0x8c0] ss:$8 sps:$4 sm:$0xff]  }
 0x153   : > { %7162 = vmatpush1.bf16.msra.mxu1 %v9874_v6  ;;  %7122 = vmatprep.subr.bf16.mxu0 %v9879_v7  ;;  %v1700_v6 = vpack.c.bf16 %v1429_v62, %v1429_v62  ;;  %v10013_v62 = vld [vmem:[%s11613_s20 + $0x9c0] ss:$8 sps:$4 sm:$0xff]  }
 0x154   : > { %7163 = vmatprep.subr.bf16.mxu1 %v9882_v8  ;;  %v9950_v8 = vld [vmem:[%s11613_s20 + $0x860] ss:$8 sps:$4 sm:$0xff]  }
 0x156   : > { %7123 = vmatpush1.bf16.msra.mxu0 %v9877_v9  ;;  %v9953_v9 = vld [vmem:[%s11613_s20 + $0x960] ss:$8 sps:$4 sm:$0xff]  }
 0x157   : > { %7164 = vmatpush1.bf16.msra.mxu1 %v9880_v10  ;;  %7124 = vmatprep.subr.bf16.mxu0 %v9885_v11  ;;  %v9958_v10 = vld [vmem:[%s11613_s20 + $0x854] ss:$8 sps:$4 sm:$0xff]  }
 0x158   : > { %7165 = vmatprep.subr.bf16.mxu1 %v9888_v12 }
 0x15a   : > { %7125 = vmatpush1.bf16.msra.mxu0 %v9883_v13  ;;  %v9961_v13 = vld [vmem:[%s11613_s20 + $0x954] ss:$8 sps:$4 sm:$0xff]  }
 0x15b   : > { %7166 = vmatpush1.bf16.msra.mxu1 %v9886_v14  ;;  %7126 = vmatprep.subr.bf16.mxu0 %v9891_v15  ;;  %v9956_v15 = vld [vmem:[%s11613_s20 + $0x850] ss:$8 sps:$4 sm:$0xff]  }
 0x15c   : > { %7167 = vmatprep.subr.bf16.mxu1 %v9894_v16 }
 0x15e   : > { %7127 = vmatpush1.bf16.msra.mxu0 %v9889_v17 }
 0x15f   : > { %7168 = vmatpush1.bf16.msra.mxu1 %v9892_v18  ;;  %7128 = vmatprep.subr.bf16.mxu0 %v9897_v19  ;;  %v9959_v18 = vld [vmem:[%s11613_s20 + $0x950] ss:$8 sps:$4 sm:$0xff]  }
 0x160   : > { %7169 = vmatprep.subr.bf16.mxu1 %v9900_v20 }
 0x162   : > { %7129 = vmatpush2.bf16.msra.mxu0 %v9895_v21  ;;  %v9964_v21 = vld [vmem:[%s11613_s20 + $0x844] ss:$8 sps:$4 sm:$0xff]  }
 0x163   : > { %7170 = vmatpush2.bf16.msra.mxu1 %v9898_v22  ;;  %7130 = vmatprep.subr.bf16.mxu0 %v9903_v23  ;;  %v9967_v22 = vld [vmem:[%s11613_s20 + $0x944] ss:$8 sps:$4 sm:$0xff]   ;;  %v9962_v23 = vld [vmem:[%s11613_s20 + $0x840] ss:$8 sps:$4 sm:$0xff]  }
 0x164   : > { %7171 = vmatprep.subr.bf16.mxu1 %v9906_v24  ;;  %v9965_v24 = vld [vmem:[%s11613_s20 + $0x940] ss:$8 sps:$4 sm:$0xff]  }
 0x166   : > { %7131 = vmatpush2.bf16.msra.mxu0 %v9901_v25  ;;  %v9970_v25 = vld [vmem:[%s11613_s20 + $0x834] ss:$8 sps:$4 sm:$0xff]  }
 0x167   : > { %7172 = vmatpush2.bf16.msra.mxu1 %v9904_v26  ;;  %7132 = vmatprep.subr.bf16.mxu0 %v9909_v27  ;;  %v9973_v26 = vld [vmem:[%s11613_s20 + $0x934] ss:$8 sps:$4 sm:$0xff]   ;;  %v9968_v27 = vld [vmem:[%s11613_s20 + $0x830] ss:$8 sps:$4 sm:$0xff]  }
 0x168   : > { %7173 = vmatprep.subr.bf16.mxu1 %v9912_v28  ;;  %v9971_v28 = vld [vmem:[%s11613_s20 + $0x930] ss:$8 sps:$4 sm:$0xff]  }
 0x16a   : > { %7133 = vmatpush2.bf16.msra.mxu0 %v9907_v29  ;;  %v9976_v29 = vld [vmem:[%s11613_s20 + $0x824] ss:$8 sps:$4 sm:$0xff]  }
 0x16b   : > { %7174 = vmatpush2.bf16.msra.mxu1 %v9910_v30  ;;  %7134 = vmatprep.subr.bf16.mxu0 %v9915_v31  ;;  %v9979_v30 = vld [vmem:[%s11613_s20 + $0x924] ss:$8 sps:$4 sm:$0xff]   ;;  %v9974_v31 = vld [vmem:[%s11613_s20 + $0x820] ss:$8 sps:$4 sm:$0xff]  }
 0x16c   : > { %7175 = vmatprep.subr.bf16.mxu1 %v9918_v32  ;;  %v9977_v32 = vld [vmem:[%s11613_s20 + $0x920] ss:$8 sps:$4 sm:$0xff]  }
 0x16e   : > { %7135 = vmatpush2.bf16.msra.mxu0 %v9913_v33  ;;  %v9982_v33 = vld [vmem:[%s11613_s20 + $0x814] ss:$8 sps:$4 sm:$0xff]  }
 0x16f   : > { %7176 = vmatpush2.bf16.msra.mxu1 %v9916_v34  ;;  %7136 = vmatprep.subr.bf16.mxu0 %v9921_v35  ;;  %v9985_v34 = vld [vmem:[%s11613_s20 + $0x914] ss:$8 sps:$4 sm:$0xff]   ;;  %v9980_v35 = vld [vmem:[%s11613_s20 + $0x810] ss:$8 sps:$4 sm:$0xff]  }
 0x170   : > { %7177 = vmatprep.subr.bf16.mxu1 %v9924_v37  ;;  %v9983_v37 = vld [vmem:[%s11613_s20 + $0x910] ss:$8 sps:$4 sm:$0xff]  }
 0x172   : > { %7137 = vmatpush2.bf16.msra.mxu0 %v9919_v38  ;;  %v9988_v38 = vld [vmem:[%s11613_s20 + $0x804] ss:$8 sps:$4 sm:$0xff]  }
 0x173   : > { %7178 = vmatpush2.bf16.msra.mxu1 %v9922_v39  ;;  %7138 = vmatprep.subr.bf16.mxu0 %v9927_v43  ;;  %v9991_v39 = vld [vmem:[%s11613_s20 + $0x904] ss:$8 sps:$4 sm:$0xff]   ;;  %v9986_v43 = vld [vmem:[%s11613_s20 + $0x800] ss:$8 sps:$4 sm:$0xff]  }
 0x174   : > { %7179 = vmatprep.subr.bf16.mxu1 %v9930_v45  ;;  %v9989_v45 = vld [vmem:[%s11613_s20 + $0x900] ss:$8 sps:$4 sm:$0xff]  }
 0x176   : > { %7139 = vmatpush2.bf16.msra.mxu0 %v9925_v46  ;;  %v9994_v46 = vld [vmem:[%s11613_s20 + $0x8f4] ss:$8 sps:$4 sm:$0xff]  }
 0x177   : > { %7180 = vmatpush2.bf16.msra.mxu1 %v9928_v48  ;;  %7140 = vmatprep.subr.bf16.mxu0 %v9933_v49  ;;  %v9992_v48 = vld [vmem:[%s11613_s20 + $0x8f0] ss:$8 sps:$4 sm:$0xff]  }
 0x178   : > { %7181 = vmatprep.subr.bf16.mxu1 %v9936_v51  ;;  %v9995_v49 = vld [vmem:[%s11613_s20 + $0x9f0] ss:$8 sps:$4 sm:$0xff]   ;;  %v10000_v51 = vld [vmem:[%s11613_s20 + $0x8e4] ss:$8 sps:$4 sm:$0xff]  }
 0x17a   : > { %7141 = vmatpush2.bf16.msra.mxu0 %v9931_v53  ;;  %v9998_v53 = vld [vmem:[%s11613_s20 + $0x8e0] ss:$8 sps:$4 sm:$0xff]  }
 0x17b   : > { %7182 = vmatpush2.bf16.msra.mxu1 %v9934_v54  ;;  %7142 = vmatprep.subr.bf16.mxu0 %v9939_v55  ;;  %v10001_v54 = vld [vmem:[%s11613_s20 + $0x9e0] ss:$8 sps:$4 sm:$0xff]   ;;  %v10006_v55 = vld [vmem:[%s11613_s20 + $0x8d4] ss:$8 sps:$4 sm:$0xff]  }
 0x17c   : > { %7183 = vmatprep.subr.bf16.mxu1 %v9942_v56  ;;  %v10009_v56 = vld [vmem:[%s11613_s20 + $0x9d4] ss:$8 sps:$4 sm:$0xff]  }
 0x17e   : > { %7143 = vmatpush2.bf16.msra.mxu0 %v9937_v36  ;;  %v10004_v36 = vld [vmem:[%s11613_s20 + $0x8d0] ss:$8 sps:$4 sm:$0xff]  }
 0x17f   : > { %7184 = vmatpush2.bf16.msra.mxu1 %v9940_v59  ;;  %7194 = vmatprep.subr.bf16.mxu0 %v9946_v40  ;;  %v10007_v59 = vld [vmem:[%s11613_s20 + $0x9d0] ss:$8 sps:$4 sm:$0xff]   ;;  %v10012_v40 = vld [vmem:[%s11613_s20 + $0x8c4] ss:$8 sps:$4 sm:$0xff]  }
 0x180   : > { %7235 = vmatprep.subr.bf16.mxu1 %v9949_v60  ;;  %v10015_v60 = vld [vmem:[%s11613_s20 + $0x9c4] ss:$8 sps:$4 sm:$0xff]  }
 0x181   : > { %v6900_v7 = vpop.f32.mrf.mxu0  ;;  %7145 = vmatmul.mubr.bf16.vlgmr.msra.gmra.mxu0 %v1693_v63  ;;  %v10018_v63 = vld [vmem:[%s11613_s20 + $0x8b4] ss:$8 sps:$4 sm:$0xff]  }
 0x182   : > { %v6941_v41 = vpop.f32.mrf.mxu1  ;;  %7186 = vmatmul.mubr.bf16.vlgmr.msra.gmra.mxu1 %v1695_v0  ;;  %7195 = vmatpush1.bf16.msra.mxu0 %v9944_v1  ;;  %v10021_v0 = vld [vmem:[%s11613_s20 + $0x9b4] ss:$8 sps:$4 sm:$0xff]   ;;  %v10016_v1 = vld [vmem:[%s11613_s20 + $0x8b0] ss:$8 sps:$4 sm:$0xff]  }
 0x183   : > { %v11960_v42 = vadd.f32 %v6941_v41, %v6900_v7  ;;  %7236 = vmatpush1.bf16.msra.mxu1 %v9947_v2  ;;  %v6902_v11 = vpop.f32.mrf.mxu0  ;;  %7196 = vmatprep.subr.bf16.mxu0 %v9952_v3  ;;  %v10019_v2 = vld [vmem:[%s11613_s20 + $0x9b0] ss:$8 sps:$4 sm:$0xff]   ;;  %v10024_v3 = vld [vmem:[%s11613_s20 + $0x8a4] ss:$8 sps:$4 sm:$0xff]   ;;  %v10025_v7 = vld [vmem:[%s11613_s20 + $0x9a0] ss:$8 sps:$4 sm:$0xff]  }
 0x184   : > { %v6943_v12 = vpop.f32.mrf.mxu1  ;;  %7237 = vmatprep.subr.bf16.mxu1 %v9955_v4  ;;  %7226 = vmatprep.mubr.bf16.mxu0 %v1698_v5  ;;  %v10027_v4 = vld [vmem:[%s11613_s20 + $0x9a4] ss:$8 sps:$4 sm:$0xff]   ;;  %v10030_v41 = vld [vmem:[%s11613_s20 + $0x894] ss:$8 sps:$4 sm:$0xff]  }
 0x185   : > { %v11965_v14 = vadd.f32 %v6943_v12, %v6902_v11  ;;  %7267 = vmatprep.mubr.bf16.mxu1 %v1700_v6  ;;  %v6904_v16 = vpop.f32.mrf.mxu0  ;;  %v294_v5 = vld [vmem:[%s11605_s29 + $0x28] sm:$0xff]  ;;  %v10031_v11 = vld [vmem:[%s11613_s20 + $0x990] ss:$8 sps:$4 sm:$0xff]  }
 0x186   : > { %v6945_v17 = vpop.f32.mrf.mxu1  ;;  %7197 = vmatpush1.bf16.msra.mxu0 %v9950_v8  ;;  %v10022_v6 = vld [vmem:[%s11613_s20 + $0x8a0] ss:$8 sps:$4 sm:$0xff]   ;;  %v10033_v8 = vld [vmem:[%s11613_s20 + $0x994] ss:$8 sps:$4 sm:$0xff]   ;;  %v10036_v12 = vld [vmem:[%s11613_s20 + $0x884] ss:$8 sps:$4 sm:$0xff]  }
 0x187   : > { %7238 = vmatpush1.bf16.msra.mxu1 %v9953_v9  ;;  %v6905_v19 = vpop.f32.mrf.mxu0  ;;  %7198 = vmatprep.subr.bf16.mxu0 %v9958_v10  ;;  %v1430_v9 = vcombine.high %v294_v5, %v294_v5  ;;  %v10028_v10 = vld [vmem:[%s11613_s20 + $0x890] ss:$8 sps:$4 sm:$0xff]   ;;  %v10034_v17 = vld [vmem:[%s11613_s20 + $0x880] ss:$8 sps:$4 sm:$0xff]  }
 0x188   : > { %v6946_v20 = vpop.f32.mrf.mxu1  ;;  %7239 = vmatprep.subr.bf16.mxu1 %v9961_v13  ;;  %v10039_v13 = vld [vmem:[%s11613_s20 + $0x984] ss:$8 sps:$4 sm:$0xff]   ;;  %v10043_v19 = vld [vmem:[%s11613_s20 + $0xa74] ss:$8 sps:$4 sm:$0xff]  }
 0x189   : > { %v12024_v16 = vrot.slane %v1430_v9, %v11680_v50  ;;  %v10046_v20 = vld [vmem:[%s11613_s20 + $0xb74] ss:$8 sps:$4 sm:$0xff]   ;;  %v10092_v9 = vld [vmem:[%s11613_s20 + $0xbf0] ss:$8 sps:$4 sm:$0xff]  }
 0x18a   : > { %7199 = vmatpush1.bf16.msra.mxu0 %v9956_v15  ;;  %v12021_v15 = vrot.slane %v294_v5, %v11680_v50  ;;  %v10083_v5 = vld [vmem:[%s11613_s20 + $0xa00] ss:$8 sps:$4 sm:$0xff]  }
 0x18b   : > { %7240 = vmatpush1.bf16.msra.mxu1 %v9959_v18  ;;  %7200 = vmatprep.subr.bf16.mxu0 %v9964_v21  ;;  %v10037_v18 = vld [vmem:[%s11613_s20 + $0x980] ss:$8 sps:$4 sm:$0xff]   ;;  %v10041_v21 = vld [vmem:[%s11613_s20 + $0xa70] ss:$8 sps:$4 sm:$0xff]  }
 0x18c   : > { %7241 = vmatprep.subr.bf16.mxu1 %v9967_v22  ;;  %v10044_v22 = vld [vmem:[%s11613_s20 + $0xb70] ss:$8 sps:$4 sm:$0xff]  }
 0x18e   : > { %7201 = vmatpush1.bf16.msra.mxu0 %v9962_v23  ;;  %v1445_v23 = vcombine.high %v12021_v15, %v12021_v15 }
 0x18f   : > { %7242 = vmatpush1.bf16.msra.mxu1 %v9965_v24  ;;  %7202 = vmatprep.subr.bf16.mxu0 %v9970_v25  ;;  %v1446_v24 = vcombine.high %v12024_v16, %v12024_v16  ;;  %v1697_v25 = vpack.c.bf16 %v11938_v57, %v11938_v57 }
 0x190   : > { %7243 = vmatprep.subr.bf16.mxu1 %v9973_v26  ;;  %v1699_v26 = vpack.c.bf16 %v11941_v58, %v11941_v58 }
 0x192   : > { %7203 = vmatpush1.bf16.msra.mxu0 %v9968_v27  ;;  %v10049_v27 = vld [vmem:[%s11613_s20 + $0xa64] ss:$8 sps:$4 sm:$0xff]  }
 0x193   : > { %7244 = vmatpush1.bf16.msra.mxu1 %v9971_v28  ;;  %7204 = vmatprep.subr.bf16.mxu0 %v9976_v29  ;;  %v10052_v28 = vld [vmem:[%s11613_s20 + $0xb64] ss:$8 sps:$4 sm:$0xff]   ;;  %v10047_v29 = vld [vmem:[%s11613_s20 + $0xa60] ss:$8 sps:$4 sm:$0xff]  }
 0x194   : > { %7245 = vmatprep.subr.bf16.mxu1 %v9979_v30  ;;  %v10050_v30 = vld [vmem:[%s11613_s20 + $0xb60] ss:$8 sps:$4 sm:$0xff]  }
 0x196   : > { %7205 = vmatpush1.bf16.msra.mxu0 %v9974_v31  ;;  %v1702_v31 = vpack.c.bf16 %v1445_v23, %v1445_v23  ;;  %v10107_v23 = vld [vmem:[%s11613_s20 + $0xac0] ss:$8 sps:$4 sm:$0xff]  }
 0x197   : > { %7246 = vmatpush1.bf16.msra.mxu1 %v9977_v32  ;;  %7206 = vmatprep.subr.bf16.mxu0 %v9982_v33  ;;  %v1704_v32 = vpack.c.bf16 %v1446_v24, %v1446_v24  ;;  %v10110_v24 = vld [vmem:[%s11613_s20 + $0xbc0] ss:$8 sps:$4 sm:$0xff]  }
 0x198   : > { %7247 = vmatprep.subr.bf16.mxu1 %v9985_v34 }
 0x19a   : > { %7207 = vmatpush1.bf16.msra.mxu0 %v9980_v35 }
 0x19b   : > { %7248 = vmatpush1.bf16.msra.mxu1 %v9983_v37  ;;  %7208 = vmatprep.subr.bf16.mxu0 %v9988_v38  ;;  %v10055_v37 = vld [vmem:[%s11613_s20 + $0xa54] ss:$8 sps:$4 sm:$0xff]  }
 0x19c   : > { %7249 = vmatprep.subr.bf16.mxu1 %v9991_v39  ;;  %v10058_v38 = vld [vmem:[%s11613_s20 + $0xb54] ss:$8 sps:$4 sm:$0xff]  }
 0x19e   : > { %7209 = vmatpush1.bf16.msra.mxu0 %v9986_v43 }
 0x19f   : > { %7250 = vmatpush1.bf16.msra.mxu1 %v9989_v45  ;;  %7210 = vmatprep.subr.bf16.mxu0 %v9994_v46  ;;  %v10053_v45 = vld [vmem:[%s11613_s20 + $0xa50] ss:$8 sps:$4 sm:$0xff]  }
 0x1a0   : > { %7251 = vmatprep.subr.bf16.mxu1 %v9997_v47  ;;  %v10056_v46 = vld [vmem:[%s11613_s20 + $0xb50] ss:$8 sps:$4 sm:$0xff]  }
 0x1a2   : > { %7211 = vmatpush2.bf16.msra.mxu0 %v9992_v48 }
 0x1a3   : > { %7252 = vmatpush2.bf16.msra.mxu1 %v9995_v49  ;;  %7212 = vmatprep.subr.bf16.mxu0 %v10000_v51 }
 0x1a4   : > { %7253 = vmatprep.subr.bf16.mxu1 %v10003_v52  ;;  %v10064_v52 = vld [vmem:[%s11613_s20 + $0xb44] ss:$8 sps:$4 sm:$0xff]  }
 0x1a6   : > { %7213 = vmatpush2.bf16.msra.mxu0 %v9998_v53  ;;  %v10059_v53 = vld [vmem:[%s11613_s20 + $0xa40] ss:$8 sps:$4 sm:$0xff]  }
 0x1a7   : > { %7254 = vmatpush2.bf16.msra.mxu1 %v10001_v54  ;;  %7214 = vmatprep.subr.bf16.mxu0 %v10006_v55  ;;  %v10062_v54 = vld [vmem:[%s11613_s20 + $0xb40] ss:$8 sps:$4 sm:$0xff]   ;;  %v10067_v55 = vld [vmem:[%s11613_s20 + $0xa34] ss:$8 sps:$4 sm:$0xff]  }
 0x1a8   : > { %7255 = vmatprep.subr.bf16.mxu1 %v10009_v56  ;;  %v10070_v56 = vld [vmem:[%s11613_s20 + $0xb34] ss:$8 sps:$4 sm:$0xff]  }
 0x1aa   : > { %7215 = vmatpush2.bf16.msra.mxu0 %v10004_v36  ;;  %v10065_v36 = vld [vmem:[%s11613_s20 + $0xa30] ss:$8 sps:$4 sm:$0xff]  }
 0x1ab   : > { %7256 = vmatpush2.bf16.msra.mxu1 %v10007_v59  ;;  %7216 = vmatprep.subr.bf16.mxu0 %v10012_v40  ;;  %v10068_v59 = vld [vmem:[%s11613_s20 + $0xb30] ss:$8 sps:$4 sm:$0xff]   ;;  %v10073_v40 = vld [vmem:[%s11613_s20 + $0xa24] ss:$8 sps:$4 sm:$0xff]  }
 0x1ac   : > { %7257 = vmatprep.subr.bf16.mxu1 %v10015_v60  ;;  %v10076_v60 = vld [vmem:[%s11613_s20 + $0xb24] ss:$8 sps:$4 sm:$0xff]  }
 0x1ae   : > { %7217 = vmatpush2.bf16.msra.mxu0 %v10010_v61  ;;  %v10071_v61 = vld [vmem:[%s11613_s20 + $0xa20] ss:$8 sps:$4 sm:$0xff]  }
 0x1af   : > { %7258 = vmatpush2.bf16.msra.mxu1 %v10013_v62  ;;  %7218 = vmatprep.subr.bf16.mxu0 %v10018_v63  ;;  %v10074_v62 = vld [vmem:[%s11613_s20 + $0xb20] ss:$8 sps:$4 sm:$0xff]   ;;  %v10079_v63 = vld [vmem:[%s11613_s20 + $0xa14] ss:$8 sps:$4 sm:$0xff]  }
 0x1b0   : > { %7259 = vmatprep.subr.bf16.mxu1 %v10021_v0  ;;  %v10082_v0 = vld [vmem:[%s11613_s20 + $0xb14] ss:$8 sps:$4 sm:$0xff]  }
 0x1b2   : > { %7219 = vmatpush2.bf16.msra.mxu0 %v10016_v1  ;;  %v10077_v1 = vld [vmem:[%s11613_s20 + $0xa10] ss:$8 sps:$4 sm:$0xff]  }
 0x1b3   : > { %7260 = vmatpush2.bf16.msra.mxu1 %v10019_v2  ;;  %7220 = vmatprep.subr.bf16.mxu0 %v10024_v3  ;;  %v10080_v2 = vld [vmem:[%s11613_s20 + $0xb10] ss:$8 sps:$4 sm:$0xff]   ;;  %v10085_v3 = vld [vmem:[%s11613_s20 + $0xa04] ss:$8 sps:$4 sm:$0xff]  }
 0x1b4   : > { %7261 = vmatprep.subr.bf16.mxu1 %v10027_v4  ;;  %v10088_v4 = vld [vmem:[%s11613_s20 + $0xb04] ss:$8 sps:$4 sm:$0xff]  }
 0x1b6   : > { %7221 = vmatpush2.bf16.msra.mxu0 %v10022_v6  ;;  %v10086_v6 = vld [vmem:[%s11613_s20 + $0xb00] ss:$8 sps:$4 sm:$0xff]  }
 0x1b7   : > { %7262 = vmatpush2.bf16.msra.mxu1 %v10025_v7  ;;  %7222 = vmatprep.subr.bf16.mxu0 %v10030_v41  ;;  %v10091_v7 = vld [vmem:[%s11613_s20 + $0xaf4] ss:$8 sps:$4 sm:$0xff]  }
 0x1b8   : > { %7263 = vmatprep.subr.bf16.mxu1 %v10033_v8  ;;  %v10094_v41 = vld [vmem:[%s11613_s20 + $0xbf4] ss:$8 sps:$4 sm:$0xff]   ;;  %v10089_v8 = vld [vmem:[%s11613_s20 + $0xaf0] ss:$8 sps:$4 sm:$0xff]  }
 0x1ba   : > { %7223 = vmatpush2.bf16.msra.mxu0 %v10028_v10  ;;  %v10097_v10 = vld [vmem:[%s11613_s20 + $0xae4] ss:$8 sps:$4 sm:$0xff]  }
 0x1bb   : > { %7264 = vmatpush2.bf16.msra.mxu1 %v10031_v11  ;;  %7224 = vmatprep.subr.bf16.mxu0 %v10036_v12  ;;  %v10100_v11 = vld [vmem:[%s11613_s20 + $0xbe4] ss:$8 sps:$4 sm:$0xff]   ;;  %v10095_v12 = vld [vmem:[%s11613_s20 + $0xae0] ss:$8 sps:$4 sm:$0xff]  }
 0x1bc   : > { %7265 = vmatprep.subr.bf16.mxu1 %v10039_v13  ;;  %v10098_v13 = vld [vmem:[%s11613_s20 + $0xbe0] ss:$8 sps:$4 sm:$0xff]  }
 0x1be   : > { %7225 = vmatpush2.bf16.msra.mxu0 %v10034_v17  ;;  %v10103_v17 = vld [vmem:[%s11613_s20 + $0xad4] ss:$8 sps:$4 sm:$0xff]  }
 0x1bf   : > { %7266 = vmatpush2.bf16.msra.mxu1 %v10037_v18  ;;  %7276 = vmatprep.subr.bf16.mxu0 %v10043_v19  ;;  %v10106_v18 = vld [vmem:[%s11613_s20 + $0xbd4] ss:$8 sps:$4 sm:$0xff]   ;;  %v10101_v19 = vld [vmem:[%s11613_s20 + $0xad0] ss:$8 sps:$4 sm:$0xff]  }
 0x1c0   : > { %7317 = vmatprep.subr.bf16.mxu1 %v10046_v20  ;;  %v10104_v20 = vld [vmem:[%s11613_s20 + $0xbd0] ss:$8 sps:$4 sm:$0xff]  }
 0x1c1   : > { %v6982_v33 = vpop.f32.mrf.mxu0  ;;  %7227 = vmatmul.mubr.bf16.vlgmr.msra.gmra.mxu0 %v1697_v25  ;;  %v10115_v25 = vld [vmem:[%s11613_s20 + $0xab4] ss:$8 sps:$4 sm:$0xff]  }
 0x1c2   : > { %v7023_v34 = vpop.f32.mrf.mxu1  ;;  %7268 = vmatmul.mubr.bf16.vlgmr.msra.gmra.mxu1 %v1699_v26  ;;  %v6983_v57 = vadd.f32 %v6982_v33, %v11960_v42  ;;  %7277 = vmatpush1.bf16.msra.mxu0 %v10041_v21  ;;  %v10109_v21 = vld [vmem:[%s11613_s20 + $0xac4] ss:$8 sps:$4 sm:$0xff]   ;;  %v10118_v26 = vld [vmem:[%s11613_s20 + $0xbb4] ss:$8 sps:$4 sm:$0xff]   ;;  %v10122_v33 = vld [vmem:[%s11613_s20 + $0xba0] ss:$8 sps:$4 sm:$0xff]  }
 0x1c3   : > { %7318 = vmatpush1.bf16.msra.mxu1 %v10044_v22  ;;  %v6984_v58 = vpop.f32.mrf.mxu0  ;;  %7278 = vmatprep.subr.bf16.mxu0 %v10049_v27  ;;  %v10112_v22 = vld [vmem:[%s11613_s20 + $0xbc4] ss:$8 sps:$4 sm:$0xff]   ;;  %v10113_v27 = vld [vmem:[%s11613_s20 + $0xab0] ss:$8 sps:$4 sm:$0xff]  }
 0x1c4   : > { %v7025_v35 = vpop.f32.mrf.mxu1  ;;  %7319 = vmatprep.subr.bf16.mxu1 %v10052_v28  ;;  %v12047_v39 = vadd.f32 %v7023_v34, %v6983_v57  ;;  %v6985_v43 = vadd.f32 %v6984_v58, %v11965_v14  ;;  %7308 = vmatprep.mubr.bf16.mxu0 %v1702_v31  ;;  %v10061_v14 = vld [vmem:[%s11613_s20 + $0xa44] ss:$8 sps:$4 sm:$0xff]   ;;  %v10116_v28 = vld [vmem:[%s11613_s20 + $0xbb0] ss:$8 sps:$4 sm:$0xff]   ;;  %v10127_v34 = vld [vmem:[%s11613_s20 + $0xa94] ss:$8 sps:$4 sm:$0xff]  }
 0x1c5   : > { %7349 = vmatprep.mubr.bf16.mxu1 %v1704_v32  ;;  %v6986_v42 = vpop.f32.mrf.mxu0  ;;  %v295_v31 = vld [vmem:[%s11605_s29 + $0x30] sm:$0xff]  ;;  %v10119_v32 = vld [vmem:[%s11613_s20 + $0xaa0] ss:$8 sps:$4 sm:$0xff]  }
 0x1c6   : > { %v7027_v47 = vpop.f32.mrf.mxu1  ;;  %v12052_v48 = vadd.f32 %v7025_v35, %v6985_v43  ;;  %7279 = vmatpush1.bf16.msra.mxu0 %v10047_v29  ;;  %v10121_v29 = vld [vmem:[%s11613_s20 + $0xaa4] ss:$8 sps:$4 sm:$0xff]   ;;  %v10130_v57 = vld [vmem:[%s11613_s20 + $0xb94] ss:$8 sps:$4 sm:$0xff]   ;;  %v1447_v58 = vcombine.high %v295_v31, %v295_v31  ;;  %v10125_v35 = vld [vmem:[%s11613_s20 + $0xa90] ss:$8 sps:$4 sm:$0xff]  }
 0x1c7   : > { %7320 = vmatpush1.bf16.msra.mxu1 %v10050_v30  ;;  %v6987_v49 = vpop.f32.mrf.mxu0  ;;  %7280 = vmatprep.subr.bf16.mxu0 %v10055_v37  ;;  %v10124_v30 = vld [vmem:[%s11613_s20 + $0xba4] ss:$8 sps:$4 sm:$0xff]   ;;  %v10128_v37 = vld [vmem:[%s11613_s20 + $0xb90] ss:$8 sps:$4 sm:$0xff]   ;;  %v10131_v42 = vld [vmem:[%s11613_s20 + $0xa80] ss:$8 sps:$4 sm:$0xff]  }
 0x1c8   : > { %v7028_v51 = vpop.f32.mrf.mxu1  ;;  %7321 = vmatprep.subr.bf16.mxu1 %v10058_v38  ;;  %v10133_v38 = vld [vmem:[%s11613_s20 + $0xa84] ss:$8 sps:$4 sm:$0xff]   ;;  %v10134_v47 = vld [vmem:[%s11613_s20 + $0xb80] ss:$8 sps:$4 sm:$0xff]   ;;  %v10140_v49 = vld [vmem:[%s11613_s20 + $0xc74] ss:$8 sps:$4 sm:$0xff]  }
 0x1c9   : > { %v10136_v43 = vld [vmem:[%s11613_s20 + $0xb84] ss:$8 sps:$4 sm:$0xff]   ;;  %v10143_v51 = vld [vmem:[%s11613_s20 + $0xd74] ss:$8 sps:$4 sm:$0xff]  }
 0x1ca   : > { %7281 = vmatpush1.bf16.msra.mxu0 %v10053_v45  ;;  %v12106_v45 = vrot.slane %v295_v31, %v11680_v50  ;;  %v10180_v31 = vld [vmem:[%s11613_s20 + $0xc00] ss:$8 sps:$4 sm:$0xff]  }
 0x1cb   : > { %7322 = vmatpush1.bf16.msra.mxu1 %v10056_v46  ;;  %7282 = vmatprep.subr.bf16.mxu0 %v10061_v14  ;;  %v12109_v46 = vrot.slane %v1447_v58, %v11680_v50  ;;  %v10138_v14 = vld [vmem:[%s11613_s20 + $0xc70] ss:$8 sps:$4 sm:$0xff]  }
 0x1cc   : > { %7323 = vmatprep.subr.bf16.mxu1 %v10064_v52  ;;  %v10141_v52 = vld [vmem:[%s11613_s20 + $0xd70] ss:$8 sps:$4 sm:$0xff]  }
 0x1cd   : > { %v10189_v58 = vld [vmem:[%s11613_s20 + $0xdf0] ss:$8 sps:$4 sm:$0xff]  }
 0x1ce   : > { %7283 = vmatpush1.bf16.msra.mxu0 %v10059_v53  ;;  %v1462_v53 = vcombine.high %v12106_v45, %v12106_v45 }
 0x1cf   : > { %7324 = vmatpush1.bf16.msra.mxu1 %v10062_v54  ;;  %7284 = vmatprep.subr.bf16.mxu0 %v10067_v55  ;;  %v1463_v54 = vcombine.high %v12109_v46, %v12109_v46  ;;  %v1701_v55 = vpack.c.bf16 %v12021_v15, %v12021_v15 }
 0x1d0   : > { %7325 = vmatprep.subr.bf16.mxu1 %v10070_v56  ;;  %v1703_v56 = vpack.c.bf16 %v12024_v16, %v12024_v16 }
 0x1d2   : > { %7285 = vmatpush1.bf16.msra.mxu0 %v10065_v36  ;;  %v10146_v36 = vld [vmem:[%s11613_s20 + $0xc64] ss:$8 sps:$4 sm:$0xff]  }
 0x1d3   : > { %7326 = vmatpush1.bf16.msra.mxu1 %v10068_v59  ;;  %7286 = vmatprep.subr.bf16.mxu0 %v10073_v40  ;;  %v10149_v59 = vld [vmem:[%s11613_s20 + $0xd64] ss:$8 sps:$4 sm:$0xff]   ;;  %v10144_v40 = vld [vmem:[%s11613_s20 + $0xc60] ss:$8 sps:$4 sm:$0xff]  }
 0x1d4   : > { %7327 = vmatprep.subr.bf16.mxu1 %v10076_v60  ;;  %v10147_v60 = vld [vmem:[%s11613_s20 + $0xd60] ss:$8 sps:$4 sm:$0xff]  }
 0x1d6   : > { %7287 = vmatpush1.bf16.msra.mxu0 %v10071_v61  ;;  %v1706_v61 = vpack.c.bf16 %v1462_v53, %v1462_v53  ;;  %v10204_v53 = vld [vmem:[%s11613_s20 + $0xcc0] ss:$8 sps:$4 sm:$0xff]  }
 0x1d7   : > { %7328 = vmatpush1.bf16.msra.mxu1 %v10074_v62  ;;  %7288 = vmatprep.subr.bf16.mxu0 %v10079_v63  ;;  %v1708_v62 = vpack.c.bf16 %v1463_v54, %v1463_v54  ;;  %v10207_v54 = vld [vmem:[%s11613_s20 + $0xdc0] ss:$8 sps:$4 sm:$0xff]  }
 0x1d8   : > { %7329 = vmatprep.subr.bf16.mxu1 %v10082_v0 }
 0x1da   : > { %7289 = vmatpush1.bf16.msra.mxu0 %v10077_v1 }
 0x1db   : > { %7330 = vmatpush1.bf16.msra.mxu1 %v10080_v2  ;;  %7290 = vmatprep.subr.bf16.mxu0 %v10085_v3  ;;  %v10152_v2 = vld [vmem:[%s11613_s20 + $0xc54] ss:$8 sps:$4 sm:$0xff]  }
 0x1dc   : > { %7331 = vmatprep.subr.bf16.mxu1 %v10088_v4  ;;  %v10155_v3 = vld [vmem:[%s11613_s20 + $0xd54] ss:$8 sps:$4 sm:$0xff]  }
 0x1de   : > { %7291 = vmatpush1.bf16.msra.mxu0 %v10083_v5 }
 0x1df   : > { %7332 = vmatpush1.bf16.msra.mxu1 %v10086_v6  ;;  %7292 = vmatprep.subr.bf16.mxu0 %v10091_v7  ;;  %v10150_v6 = vld [vmem:[%s11613_s20 + $0xc50] ss:$8 sps:$4 sm:$0xff]  }
 0x1e0   : > { %7333 = vmatprep.subr.bf16.mxu1 %v10094_v41  ;;  %v10153_v7 = vld [vmem:[%s11613_s20 + $0xd50] ss:$8 sps:$4 sm:$0xff]  }
 0x1e2   : > { %7293 = vmatpush2.bf16.msra.mxu0 %v10089_v8 }
 0x1e3   : > { %7334 = vmatpush2.bf16.msra.mxu1 %v10092_v9  ;;  %7294 = vmatprep.subr.bf16.mxu0 %v10097_v10 }
 0x1e4   : > { %7335 = vmatprep.subr.bf16.mxu1 %v10100_v11  ;;  %v10161_v11 = vld [vmem:[%s11613_s20 + $0xd44] ss:$8 sps:$4 sm:$0xff]  }
 0x1e6   : > { %7295 = vmatpush2.bf16.msra.mxu0 %v10095_v12  ;;  %v10156_v12 = vld [vmem:[%s11613_s20 + $0xc40] ss:$8 sps:$4 sm:$0xff]  }
 0x1e7   : > { %7336 = vmatpush2.bf16.msra.mxu1 %v10098_v13  ;;  %7296 = vmatprep.subr.bf16.mxu0 %v10103_v17  ;;  %v10159_v13 = vld [vmem:[%s11613_s20 + $0xd40] ss:$8 sps:$4 sm:$0xff]   ;;  %v10164_v17 = vld [vmem:[%s11613_s20 + $0xc34] ss:$8 sps:$4 sm:$0xff]  }
 0x1e8   : > { %7337 = vmatprep.subr.bf16.mxu1 %v10106_v18  ;;  %v10167_v18 = vld [vmem:[%s11613_s20 + $0xd34] ss:$8 sps:$4 sm:$0xff]  }
 0x1ea   : > { %7297 = vmatpush2.bf16.msra.mxu0 %v10101_v19  ;;  %v10162_v19 = vld [vmem:[%s11613_s20 + $0xc30] ss:$8 sps:$4 sm:$0xff]  }
 0x1eb   : > { %7338 = vmatpush2.bf16.msra.mxu1 %v10104_v20  ;;  %7298 = vmatprep.subr.bf16.mxu0 %v10109_v21  ;;  %v10165_v20 = vld [vmem:[%s11613_s20 + $0xd30] ss:$8 sps:$4 sm:$0xff]   ;;  %v10170_v21 = vld [vmem:[%s11613_s20 + $0xc24] ss:$8 sps:$4 sm:$0xff]  }
 0x1ec   : > { %7339 = vmatprep.subr.bf16.mxu1 %v10112_v22  ;;  %v10173_v22 = vld [vmem:[%s11613_s20 + $0xd24] ss:$8 sps:$4 sm:$0xff]  }
 0x1ee   : > { %7299 = vmatpush2.bf16.msra.mxu0 %v10107_v23  ;;  %v10168_v23 = vld [vmem:[%s11613_s20 + $0xc20] ss:$8 sps:$4 sm:$0xff]  }
 0x1ef   : > { %7340 = vmatpush2.bf16.msra.mxu1 %v10110_v24  ;;  %7300 = vmatprep.subr.bf16.mxu0 %v10115_v25  ;;  %v10171_v24 = vld [vmem:[%s11613_s20 + $0xd20] ss:$8 sps:$4 sm:$0xff]   ;;  %v10176_v25 = vld [vmem:[%s11613_s20 + $0xc14] ss:$8 sps:$4 sm:$0xff]  }
 0x1f0   : > { %7341 = vmatprep.subr.bf16.mxu1 %v10118_v26  ;;  %v10179_v26 = vld [vmem:[%s11613_s20 + $0xd14] ss:$8 sps:$4 sm:$0xff]  }
 0x1f2   : > { %7301 = vmatpush2.bf16.msra.mxu0 %v10113_v27  ;;  %v10174_v27 = vld [vmem:[%s11613_s20 + $0xc10] ss:$8 sps:$4 sm:$0xff]  }
 0x1f3   : > { %7342 = vmatpush2.bf16.msra.mxu1 %v10116_v28  ;;  %7302 = vmatprep.subr.bf16.mxu0 %v10121_v29  ;;  %v10177_v28 = vld [vmem:[%s11613_s20 + $0xd10] ss:$8 sps:$4 sm:$0xff]   ;;  %v10182_v29 = vld [vmem:[%s11613_s20 + $0xc04] ss:$8 sps:$4 sm:$0xff]  }
 0x1f4   : > { %7343 = vmatprep.subr.bf16.mxu1 %v10124_v30  ;;  %v10185_v30 = vld [vmem:[%s11613_s20 + $0xd04] ss:$8 sps:$4 sm:$0xff]  }
 0x1f6   : > { %7303 = vmatpush2.bf16.msra.mxu0 %v10119_v32  ;;  %v10183_v32 = vld [vmem:[%s11613_s20 + $0xd00] ss:$8 sps:$4 sm:$0xff]  }
 0x1f7   : > { %7344 = vmatpush2.bf16.msra.mxu1 %v10122_v33  ;;  %7304 = vmatprep.subr.bf16.mxu0 %v10127_v34  ;;  %v10188_v33 = vld [vmem:[%s11613_s20 + $0xcf4] ss:$8 sps:$4 sm:$0xff]  }
 0x1f8   : > { %7345 = vmatprep.subr.bf16.mxu1 %v10130_v57  ;;  %v10191_v34 = vld [vmem:[%s11613_s20 + $0xdf4] ss:$8 sps:$4 sm:$0xff]   ;;  %v10186_v57 = vld [vmem:[%s11613_s20 + $0xcf0] ss:$8 sps:$4 sm:$0xff]  }
 0x1fa   : > { %7305 = vmatpush2.bf16.msra.mxu0 %v10125_v35  ;;  %v10194_v35 = vld [vmem:[%s11613_s20 + $0xce4] ss:$8 sps:$4 sm:$0xff]  }
 0x1fb   : > { %7346 = vmatpush2.bf16.msra.mxu1 %v10128_v37  ;;  %7306 = vmatprep.subr.bf16.mxu0 %v10133_v38  ;;  %v10197_v37 = vld [vmem:[%s11613_s20 + $0xde4] ss:$8 sps:$4 sm:$0xff]   ;;  %v10192_v38 = vld [vmem:[%s11613_s20 + $0xce0] ss:$8 sps:$4 sm:$0xff]  }
 0x1fc   : > { %7347 = vmatprep.subr.bf16.mxu1 %v10136_v43  ;;  %v10195_v43 = vld [vmem:[%s11613_s20 + $0xde0] ss:$8 sps:$4 sm:$0xff]  }
 0x1fe   : > { %7307 = vmatpush2.bf16.msra.mxu0 %v10131_v42  ;;  %v10200_v42 = vld [vmem:[%s11613_s20 + $0xcd4] ss:$8 sps:$4 sm:$0xff]  }
 0x1ff   : > { %7348 = vmatpush2.bf16.msra.mxu1 %v10134_v47  ;;  %7358 = vmatprep.subr.bf16.mxu0 %v10140_v49  ;;  %v10203_v47 = vld [vmem:[%s11613_s20 + $0xdd4] ss:$8 sps:$4 sm:$0xff]   ;;  %v10198_v49 = vld [vmem:[%s11613_s20 + $0xcd0] ss:$8 sps:$4 sm:$0xff]  }
 0x200   : > { %7399 = vmatprep.subr.bf16.mxu1 %v10143_v51  ;;  %v10201_v51 = vld [vmem:[%s11613_s20 + $0xdd0] ss:$8 sps:$4 sm:$0xff]  }
 0x201   : > { %v7064_v63 = vpop.f32.mrf.mxu0  ;;  %7309 = vmatmul.mubr.bf16.vlgmr.msra.gmra.mxu0 %v1701_v55  ;;  %v10212_v55 = vld [vmem:[%s11613_s20 + $0xcb4] ss:$8 sps:$4 sm:$0xff]  }
 0x202   : > { %v7105_v0 = vpop.f32.mrf.mxu1  ;;  %7350 = vmatmul.mubr.bf16.vlgmr.msra.gmra.mxu1 %v1703_v56  ;;  %v7065_v15 = vadd.f32 %v7064_v63, %v12047_v39  ;;  %7359 = vmatpush1.bf16.msra.mxu0 %v10138_v14  ;;  %v10206_v14 = vld [vmem:[%s11613_s20 + $0xcc4] ss:$8 sps:$4 sm:$0xff]   ;;  %v10215_v56 = vld [vmem:[%s11613_s20 + $0xdb4] ss:$8 sps:$4 sm:$0xff]   ;;  %v10219_v63 = vld [vmem:[%s11613_s20 + $0xda0] ss:$8 sps:$4 sm:$0xff]  }
 0x203   : > { %7400 = vmatpush1.bf16.msra.mxu1 %v10141_v52  ;;  %v7066_v16 = vpop.f32.mrf.mxu0  ;;  %7360 = vmatprep.subr.bf16.mxu0 %v10146_v36  ;;  %v10209_v52 = vld [vmem:[%s11613_s20 + $0xdc4] ss:$8 sps:$4 sm:$0xff]   ;;  %v10210_v36 = vld [vmem:[%s11613_s20 + $0xcb0] ss:$8 sps:$4 sm:$0xff]  }
 0x204   : > { %v7107_v1 = vpop.f32.mrf.mxu1  ;;  %7401 = vmatprep.subr.bf16.mxu1 %v10149_v59  ;;  %v12132_v4 = vadd.f32 %v7105_v0, %v7065_v15  ;;  %v7067_v5 = vadd.f32 %v7066_v16, %v12052_v48  ;;  %7390 = vmatprep.mubr.bf16.mxu0 %v1706_v61  ;;  %v10158_v48 = vld [vmem:[%s11613_s20 + $0xc44] ss:$8 sps:$4 sm:$0xff]   ;;  %v10213_v59 = vld [vmem:[%s11613_s20 + $0xdb0] ss:$8 sps:$4 sm:$0xff]   ;;  %v10224_v0 = vld [vmem:[%s11613_s20 + $0xc94] ss:$8 sps:$4 sm:$0xff]  }
 0x205   : > { %7431 = vmatprep.mubr.bf16.mxu1 %v1708_v62  ;;  %v7068_v39 = vpop.f32.mrf.mxu0  ;;  %v296_v61 = vld [vmem:[%s11605_s29 + $0x38] sm:$0xff]  ;;  %v10216_v62 = vld [vmem:[%s11613_s20 + $0xca0] ss:$8 sps:$4 sm:$0xff]  }
 0x206   : > { %v7109_v41 = vpop.f32.mrf.mxu1  ;;  %v12137_v8 = vadd.f32 %v7107_v1, %v7067_v5  ;;  %7361 = vmatpush1.bf16.msra.mxu0 %v10144_v40  ;;  %v10218_v40 = vld [vmem:[%s11613_s20 + $0xca4] ss:$8 sps:$4 sm:$0xff]   ;;  %v10227_v15 = vld [vmem:[%s11613_s20 + $0xd94] ss:$8 sps:$4 sm:$0xff]   ;;  %v1464_v16 = vcombine.high %v296_v61, %v296_v61  ;;  %v10222_v1 = vld [vmem:[%s11613_s20 + $0xc90] ss:$8 sps:$4 sm:$0xff]  }
 0x207   : > { %7402 = vmatpush1.bf16.msra.mxu1 %v10147_v60  ;;  %v7069_v9 = vpop.f32.mrf.mxu0  ;;  %7362 = vmatprep.subr.bf16.mxu0 %v10152_v2  ;;  %v10221_v60 = vld [vmem:[%s11613_s20 + $0xda4] ss:$8 sps:$4 sm:$0xff]   ;;  %v10225_v2 = vld [vmem:[%s11613_s20 + $0xd90] ss:$8 sps:$4 sm:$0xff]   ;;  %v10228_v39 = vld [vmem:[%s11613_s20 + $0xc80] ss:$8 sps:$4 sm:$0xff]  }
 0x208   : > { %v7110_v10 = vpop.f32.mrf.mxu1  ;;  %7403 = vmatprep.subr.bf16.mxu1 %v10155_v3  ;;  %v10230_v3 = vld [vmem:[%s11613_s20 + $0xc84] ss:$8 sps:$4 sm:$0xff]   ;;  %v10231_v41 = vld [vmem:[%s11613_s20 + $0xd80] ss:$8 sps:$4 sm:$0xff]   ;;  %v10237_v9 = vld [vmem:[%s11613_s20 + $0xe74] ss:$8 sps:$4 sm:$0xff]  }
 0x209   : > { %v10233_v5 = vld [vmem:[%s11613_s20 + $0xd84] ss:$8 sps:$4 sm:$0xff]   ;;  %v10240_v10 = vld [vmem:[%s11613_s20 + $0xf74] ss:$8 sps:$4 sm:$0xff]  }
 0x20a   : > { %7363 = vmatpush1.bf16.msra.mxu0 %v10150_v6  ;;  %v12191_v6 = vrot.slane %v296_v61, %v11680_v50  ;;  %v10277_v61 = vld [vmem:[%s11613_s20 + $0xe00] ss:$8 sps:$4 sm:$0xff]  }
 0x20b   : > { %7404 = vmatpush1.bf16.msra.mxu1 %v10153_v7  ;;  %7364 = vmatprep.subr.bf16.mxu0 %v10158_v48  ;;  %v12194_v7 = vrot.slane %v1464_v16, %v11680_v50  ;;  %v10235_v48 = vld [vmem:[%s11613_s20 + $0xe70] ss:$8 sps:$4 sm:$0xff]  }
 0x20c   : > { %7405 = vmatprep.subr.bf16.mxu1 %v10161_v11  ;;  %v10238_v11 = vld [vmem:[%s11613_s20 + $0xf70] ss:$8 sps:$4 sm:$0xff]  }
 0x20d   : > { %v10286_v16 = vld [vmem:[%s11613_s20 + $0xff0] ss:$8 sps:$4 sm:$0xff]  }
 0x20e   : > { %7365 = vmatpush1.bf16.msra.mxu0 %v10156_v12  ;;  %v1479_v12 = vcombine.high %v12191_v6, %v12191_v6 }
 0x20f   : > { %7406 = vmatpush1.bf16.msra.mxu1 %v10159_v13  ;;  %7366 = vmatprep.subr.bf16.mxu0 %v10164_v17  ;;  %v1480_v13 = vcombine.high %v12194_v7, %v12194_v7  ;;  %v1705_v17 = vpack.c.bf16 %v12106_v45, %v12106_v45 }
 0x210   : > { %7407 = vmatprep.subr.bf16.mxu1 %v10167_v18  ;;  %v1707_v18 = vpack.c.bf16 %v12109_v46, %v12109_v46 }
 0x212   : > { %7367 = vmatpush1.bf16.msra.mxu0 %v10162_v19  ;;  %v10243_v19 = vld [vmem:[%s11613_s20 + $0xe64] ss:$8 sps:$4 sm:$0xff]  }
 0x213   : > { %7408 = vmatpush1.bf16.msra.mxu1 %v10165_v20  ;;  %7368 = vmatprep.subr.bf16.mxu0 %v10170_v21  ;;  %v10246_v20 = vld [vmem:[%s11613_s20 + $0xf64] ss:$8 sps:$4 sm:$0xff]   ;;  %v10241_v21 = vld [vmem:[%s11613_s20 + $0xe60] ss:$8 sps:$4 sm:$0xff]  }
 0x214   : > { %7409 = vmatprep.subr.bf16.mxu1 %v10173_v22  ;;  %v10244_v22 = vld [vmem:[%s11613_s20 + $0xf60] ss:$8 sps:$4 sm:$0xff]  }
 0x216   : > { %7369 = vmatpush1.bf16.msra.mxu0 %v10168_v23  ;;  %v1710_v23 = vpack.c.bf16 %v1479_v12, %v1479_v12  ;;  %v10301_v12 = vld [vmem:[%s11613_s20 + $0xec0] ss:$8 sps:$4 sm:$0xff]  }
 0x217   : > { %7410 = vmatpush1.bf16.msra.mxu1 %v10171_v24  ;;  %7370 = vmatprep.subr.bf16.mxu0 %v10176_v25  ;;  %v1712_v24 = vpack.c.bf16 %v1480_v13, %v1480_v13  ;;  %v10304_v13 = vld [vmem:[%s11613_s20 + $0xfc0] ss:$8 sps:$4 sm:$0xff]  }
 0x218   : > { %7411 = vmatprep.subr.bf16.mxu1 %v10179_v26 }
 0x21a   : > { %7371 = vmatpush1.bf16.msra.mxu0 %v10174_v27 }
 0x21b   : > { %7412 = vmatpush1.bf16.msra.mxu1 %v10177_v28  ;;  %7372 = vmatprep.subr.bf16.mxu0 %v10182_v29  ;;  %v10249_v28 = vld [vmem:[%s11613_s20 + $0xe54] ss:$8 sps:$4 sm:$0xff]  }
 0x21c   : > { %7413 = vmatprep.subr.bf16.mxu1 %v10185_v30  ;;  %v10252_v29 = vld [vmem:[%s11613_s20 + $0xf54] ss:$8 sps:$4 sm:$0xff]  }
 0x21e   : > { %7373 = vmatpush1.bf16.msra.mxu0 %v10180_v31 }
 0x21f   : > { %7414 = vmatpush1.bf16.msra.mxu1 %v10183_v32  ;;  %7374 = vmatprep.subr.bf16.mxu0 %v10188_v33  ;;  %v10247_v32 = vld [vmem:[%s11613_s20 + $0xe50] ss:$8 sps:$4 sm:$0xff]  }
 0x220   : > { %7415 = vmatprep.subr.bf16.mxu1 %v10191_v34  ;;  %v10250_v33 = vld [vmem:[%s11613_s20 + $0xf50] ss:$8 sps:$4 sm:$0xff]  }
 0x222   : > { %7375 = vmatpush2.bf16.msra.mxu0 %v10186_v57 }
 0x223   : > { %7416 = vmatpush2.bf16.msra.mxu1 %v10189_v58  ;;  %7376 = vmatprep.subr.bf16.mxu0 %v10194_v35 }
 0x224   : > { %7417 = vmatprep.subr.bf16.mxu1 %v10197_v37  ;;  %v10258_v37 = vld [vmem:[%s11613_s20 + $0xf44] ss:$8 sps:$4 sm:$0xff]  }
 0x226   : > { %7377 = vmatpush2.bf16.msra.mxu0 %v10192_v38  ;;  %v10253_v38 = vld [vmem:[%s11613_s20 + $0xe40] ss:$8 sps:$4 sm:$0xff]  }
 0x227   : > { %7418 = vmatpush2.bf16.msra.mxu1 %v10195_v43  ;;  %7378 = vmatprep.subr.bf16.mxu0 %v10200_v42  ;;  %v10256_v43 = vld [vmem:[%s11613_s20 + $0xf40] ss:$8 sps:$4 sm:$0xff]   ;;  %v10261_v42 = vld [vmem:[%s11613_s20 + $0xe34] ss:$8 sps:$4 sm:$0xff]  }
 0x228   : > { %7419 = vmatprep.subr.bf16.mxu1 %v10203_v47  ;;  %v10264_v47 = vld [vmem:[%s11613_s20 + $0xf34] ss:$8 sps:$4 sm:$0xff]  }
 0x22a   : > { %7379 = vmatpush2.bf16.msra.mxu0 %v10198_v49  ;;  %v10259_v49 = vld [vmem:[%s11613_s20 + $0xe30] ss:$8 sps:$4 sm:$0xff]  }
 0x22b   : > { %7420 = vmatpush2.bf16.msra.mxu1 %v10201_v51  ;;  %7380 = vmatprep.subr.bf16.mxu0 %v10206_v14  ;;  %v10262_v51 = vld [vmem:[%s11613_s20 + $0xf30] ss:$8 sps:$4 sm:$0xff]   ;;  %v10267_v14 = vld [vmem:[%s11613_s20 + $0xe24] ss:$8 sps:$4 sm:$0xff]  }
 0x22c   : > { %7421 = vmatprep.subr.bf16.mxu1 %v10209_v52  ;;  %v10270_v52 = vld [vmem:[%s11613_s20 + $0xf24] ss:$8 sps:$4 sm:$0xff]  }
 0x22e   : > { %7381 = vmatpush2.bf16.msra.mxu0 %v10204_v53  ;;  %v10265_v53 = vld [vmem:[%s11613_s20 + $0xe20] ss:$8 sps:$4 sm:$0xff]  }
 0x22f   : > { %7422 = vmatpush2.bf16.msra.mxu1 %v10207_v54  ;;  %7382 = vmatprep.subr.bf16.mxu0 %v10212_v55  ;;  %v10268_v54 = vld [vmem:[%s11613_s20 + $0xf20] ss:$8 sps:$4 sm:$0xff]   ;;  %v10273_v55 = vld [vmem:[%s11613_s20 + $0xe14] ss:$8 sps:$4 sm:$0xff]  }
 0x230   : > { %7423 = vmatprep.subr.bf16.mxu1 %v10215_v56  ;;  %v10276_v56 = vld [vmem:[%s11613_s20 + $0xf14] ss:$8 sps:$4 sm:$0xff]  }
 0x232   : > { %7383 = vmatpush2.bf16.msra.mxu0 %v10210_v36  ;;  %v10271_v36 = vld [vmem:[%s11613_s20 + $0xe10] ss:$8 sps:$4 sm:$0xff]  }
 0x233   : > { %7424 = vmatpush2.bf16.msra.mxu1 %v10213_v59  ;;  %7384 = vmatprep.subr.bf16.mxu0 %v10218_v40  ;;  %v10274_v59 = vld [vmem:[%s11613_s20 + $0xf10] ss:$8 sps:$4 sm:$0xff]   ;;  %v10279_v40 = vld [vmem:[%s11613_s20 + $0xe04] ss:$8 sps:$4 sm:$0xff]  }
 0x234   : > { %7425 = vmatprep.subr.bf16.mxu1 %v10221_v60  ;;  %v10282_v60 = vld [vmem:[%s11613_s20 + $0xf04] ss:$8 sps:$4 sm:$0xff]  }
 0x236   : > { %7385 = vmatpush2.bf16.msra.mxu0 %v10216_v62  ;;  %v10280_v62 = vld [vmem:[%s11613_s20 + $0xf00] ss:$8 sps:$4 sm:$0xff]  }
 0x237   : > { %7426 = vmatpush2.bf16.msra.mxu1 %v10219_v63  ;;  %7386 = vmatprep.subr.bf16.mxu0 %v10224_v0  ;;  %v10285_v63 = vld [vmem:[%s11613_s20 + $0xef4] ss:$8 sps:$4 sm:$0xff]  }
 0x238   : > { %7427 = vmatprep.subr.bf16.mxu1 %v10227_v15  ;;  %v10288_v0 = vld [vmem:[%s11613_s20 + $0xff4] ss:$8 sps:$4 sm:$0xff]   ;;  %v10283_v15 = vld [vmem:[%s11613_s20 + $0xef0] ss:$8 sps:$4 sm:$0xff]  }
 0x23a   : > { %7387 = vmatpush2.bf16.msra.mxu0 %v10222_v1  ;;  %v10291_v1 = vld [vmem:[%s11613_s20 + $0xee4] ss:$8 sps:$4 sm:$0xff]  }
 0x23b   : > { %7428 = vmatpush2.bf16.msra.mxu1 %v10225_v2  ;;  %7388 = vmatprep.subr.bf16.mxu0 %v10230_v3  ;;  %v10294_v2 = vld [vmem:[%s11613_s20 + $0xfe4] ss:$8 sps:$4 sm:$0xff]   ;;  %v10289_v3 = vld [vmem:[%s11613_s20 + $0xee0] ss:$8 sps:$4 sm:$0xff]  }
 0x23c   : > { %7429 = vmatprep.subr.bf16.mxu1 %v10233_v5  ;;  %v10292_v5 = vld [vmem:[%s11613_s20 + $0xfe0] ss:$8 sps:$4 sm:$0xff]  }
 0x23e   : > { %7389 = vmatpush2.bf16.msra.mxu0 %v10228_v39  ;;  %v10297_v39 = vld [vmem:[%s11613_s20 + $0xed4] ss:$8 sps:$4 sm:$0xff]  }
 0x23f   : > { %7430 = vmatpush2.bf16.msra.mxu1 %v10231_v41  ;;  %7440 = vmatprep.subr.bf16.mxu0 %v10237_v9  ;;  %v10300_v41 = vld [vmem:[%s11613_s20 + $0xfd4] ss:$8 sps:$4 sm:$0xff]   ;;  %v10295_v9 = vld [vmem:[%s11613_s20 + $0xed0] ss:$8 sps:$4 sm:$0xff]  }
 0x240   : > { %7481 = vmatprep.subr.bf16.mxu1 %v10240_v10  ;;  %v10298_v10 = vld [vmem:[%s11613_s20 + $0xfd0] ss:$8 sps:$4 sm:$0xff]  }
 0x241   : > { %v7146_v25 = vpop.f32.mrf.mxu0  ;;  %7391 = vmatmul.mubr.bf16.vlgmr.msra.gmra.mxu0 %v1705_v17  ;;  %v10309_v17 = vld [vmem:[%s11613_s20 + $0xeb4] ss:$8 sps:$4 sm:$0xff]  }
 0x242   : > { %v7187_v26 = vpop.f32.mrf.mxu1  ;;  %7432 = vmatmul.mubr.bf16.vlgmr.msra.gmra.mxu1 %v1707_v18  ;;  %v7147_v45 = vadd.f32 %v7146_v25, %v12132_v4  ;;  %7441 = vmatpush1.bf16.msra.mxu0 %v10235_v48  ;;  %v10303_v48 = vld [vmem:[%s11613_s20 + $0xec4] ss:$8 sps:$4 sm:$0xff]   ;;  %v10312_v18 = vld [vmem:[%s11613_s20 + $0xfb4] ss:$8 sps:$4 sm:$0xff]   ;;  %v10316_v25 = vld [vmem:[%s11613_s20 + $0xfa0] ss:$8 sps:$4 sm:$0xff]  }
 0x243   : > { %7482 = vmatpush1.bf16.msra.mxu1 %v10238_v11  ;;  %v7148_v46 = vpop.f32.mrf.mxu0  ;;  %7442 = vmatprep.subr.bf16.mxu0 %v10243_v19  ;;  %v10306_v11 = vld [vmem:[%s11613_s20 + $0xfc4] ss:$8 sps:$4 sm:$0xff]   ;;  %v10307_v19 = vld [vmem:[%s11613_s20 + $0xeb0] ss:$8 sps:$4 sm:$0xff]  }
 0x244   : > { %v7189_v27 = vpop.f32.mrf.mxu1  ;;  %7483 = vmatprep.subr.bf16.mxu1 %v10246_v20  ;;  %v12217_v30 = vadd.f32 %v7187_v26, %v7147_v45  ;;  %v7149_v31 = vadd.f32 %v7148_v46, %v12137_v8  ;;  %7472 = vmatprep.mubr.bf16.mxu0 %v1710_v23  ;;  %v10255_v8 = vld [vmem:[%s11613_s20 + $0xe44] ss:$8 sps:$4 sm:$0xff]   ;;  %v10310_v20 = vld [vmem:[%s11613_s20 + $0xfb0] ss:$8 sps:$4 sm:$0xff]   ;;  %v10321_v26 = vld [vmem:[%s11613_s20 + $0xe94] ss:$8 sps:$4 sm:$0xff]  }
 0x245   : > { %7513 = vmatprep.mubr.bf16.mxu1 %v1712_v24  ;;  %v7150_v4 = vpop.f32.mrf.mxu0  ;;  %v297_v23 = vld [vmem:[%s11605_s29 + $0x40] sm:$0xff]  ;;  %v10324_v45 = vld [vmem:[%s11613_s20 + $0xf94] ss:$8 sps:$4 sm:$0xff]  }
 0x246   : > { %v7191_v34 = vpop.f32.mrf.mxu1  ;;  %v12222_v57 = vadd.f32 %v7189_v27, %v7149_v31  ;;  %7443 = vmatpush1.bf16.msra.mxu0 %v10241_v21  ;;  %v10315_v21 = vld [vmem:[%s11613_s20 + $0xea4] ss:$8 sps:$4 sm:$0xff]   ;;  %v10313_v24 = vld [vmem:[%s11613_s20 + $0xea0] ss:$8 sps:$4 sm:$0xff]   ;;  %v1481_v46 = vcombine.high %v297_v23, %v297_v23  ;;  %v10319_v27 = vld [vmem:[%s11613_s20 + $0xe90] ss:$8 sps:$4 sm:$0xff]  }
 0x247   : > { %7484 = vmatpush1.bf16.msra.mxu1 %v10244_v22  ;;  %v7151_v58 = vpop.f32.mrf.mxu0  ;;  %7444 = vmatprep.subr.bf16.mxu0 %v10249_v28  ;;  %v10318_v22 = vld [vmem:[%s11613_s20 + $0xfa4] ss:$8 sps:$4 sm:$0xff]   ;;  %v10322_v28 = vld [vmem:[%s11613_s20 + $0xf90] ss:$8 sps:$4 sm:$0xff]   ;;  %v10325_v4 = vld [vmem:[%s11613_s20 + $0xe80] ss:$8 sps:$4 sm:$0xff]  }
 0x248   : > { %v7192_v35 = vpop.f32.mrf.mxu1  ;;  %7485 = vmatprep.subr.bf16.mxu1 %v10252_v29  ;;  %v10327_v29 = vld [vmem:[%s11613_s20 + $0xe84] ss:$8 sps:$4 sm:$0xff]   ;;  %v10328_v34 = vld [vmem:[%s11613_s20 + $0xf80] ss:$8 sps:$4 sm:$0xff]   ;;  %v10334_v58 = vld [vmem:[%s11613_s20 + $0x1074] ss:$8 sps:$4 sm:$0xff]  }
 0x249   : > { %v10330_v31 = vld [vmem:[%s11613_s20 + $0xf84] ss:$8 sps:$4 sm:$0xff]   ;;  %v10337_v35 = vld [vmem:[%s11613_s20 + $0x1174] ss:$8 sps:$4 sm:$0xff]  }
 0x24a   : > { %7445 = vmatpush1.bf16.msra.mxu0 %v10247_v32  ;;  %v12276_v32 = vrot.slane %v297_v23, %v11680_v50  ;;  %v10374_v23 = vld [vmem:[%s11613_s20 + $0x1000] ss:$8 sps:$4 sm:$0xff]  }
 0x24b   : > { %7486 = vmatpush1.bf16.msra.mxu1 %v10250_v33  ;;  %7446 = vmatprep.subr.bf16.mxu0 %v10255_v8  ;;  %v12279_v33 = vrot.slane %v1481_v46, %v11680_v50  ;;  %v10332_v8 = vld [vmem:[%s11613_s20 + $0x1070] ss:$8 sps:$4 sm:$0xff]  }
 0x24c   : > { %7487 = vmatprep.subr.bf16.mxu1 %v10258_v37  ;;  %v10335_v37 = vld [vmem:[%s11613_s20 + $0x1170] ss:$8 sps:$4 sm:$0xff]  }
 0x24d   : > { %v10383_v46 = vld [vmem:[%s11613_s20 + $0x11f0] ss:$8 sps:$4 sm:$0xff]  }
 0x24e   : > { %7447 = vmatpush1.bf16.msra.mxu0 %v10253_v38  ;;  %v1496_v38 = vcombine.high %v12276_v32, %v12276_v32 }
 0x24f   : > { %7488 = vmatpush1.bf16.msra.mxu1 %v10256_v43  ;;  %7448 = vmatprep.subr.bf16.mxu0 %v10261_v42  ;;  %v1497_v43 = vcombine.high %v12279_v33, %v12279_v33  ;;  %v1709_v42 = vpack.c.bf16 %v12191_v6, %v12191_v6 }
 0x250   : > { %7489 = vmatprep.subr.bf16.mxu1 %v10264_v47  ;;  %v1711_v47 = vpack.c.bf16 %v12194_v7, %v12194_v7 }
 0x252   : > { %7449 = vmatpush1.bf16.msra.mxu0 %v10259_v49  ;;  %v10340_v49 = vld [vmem:[%s11613_s20 + $0x1064] ss:$8 sps:$4 sm:$0xff]  }
 0x253   : > { %7490 = vmatpush1.bf16.msra.mxu1 %v10262_v51  ;;  %7450 = vmatprep.subr.bf16.mxu0 %v10267_v14  ;;  %v10343_v51 = vld [vmem:[%s11613_s20 + $0x1164] ss:$8 sps:$4 sm:$0xff]   ;;  %v10338_v14 = vld [vmem:[%s11613_s20 + $0x1060] ss:$8 sps:$4 sm:$0xff]  }
 0x254   : > { %7491 = vmatprep.subr.bf16.mxu1 %v10270_v52  ;;  %v10341_v52 = vld [vmem:[%s11613_s20 + $0x1160] ss:$8 sps:$4 sm:$0xff]  }
 0x256   : > { %7451 = vmatpush1.bf16.msra.mxu0 %v10265_v53  ;;  %v1714_v53 = vpack.c.bf16 %v1496_v38, %v1496_v38  ;;  %v10398_v38 = vld [vmem:[%s11613_s20 + $0x10c0] ss:$8 sps:$4 sm:$0xff]  }
 0x257   : > { %7492 = vmatpush1.bf16.msra.mxu1 %v10268_v54  ;;  %7452 = vmatprep.subr.bf16.mxu0 %v10273_v55  ;;  %v1716_v54 = vpack.c.bf16 %v1497_v43, %v1497_v43  ;;  %v10401_v43 = vld [vmem:[%s11613_s20 + $0x11c0] ss:$8 sps:$4 sm:$0xff]  }
 0x258   : > { %7493 = vmatprep.subr.bf16.mxu1 %v10276_v56 }
 0x25a   : > { %7453 = vmatpush1.bf16.msra.mxu0 %v10271_v36 }
 0x25b   : > { %7494 = vmatpush1.bf16.msra.mxu1 %v10274_v59  ;;  %7454 = vmatprep.subr.bf16.mxu0 %v10279_v40  ;;  %v10346_v59 = vld [vmem:[%s11613_s20 + $0x1054] ss:$8 sps:$4 sm:$0xff]  }
 0x25c   : > { %7495 = vmatprep.subr.bf16.mxu1 %v10282_v60  ;;  %v10349_v40 = vld [vmem:[%s11613_s20 + $0x1154] ss:$8 sps:$4 sm:$0xff]  }
 0x25e   : > { %7455 = vmatpush1.bf16.msra.mxu0 %v10277_v61 }
 0x25f   : > { %7496 = vmatpush1.bf16.msra.mxu1 %v10280_v62  ;;  %7456 = vmatprep.subr.bf16.mxu0 %v10285_v63  ;;  %v10344_v62 = vld [vmem:[%s11613_s20 + $0x1050] ss:$8 sps:$4 sm:$0xff]  }
 0x260   : > { %7497 = vmatprep.subr.bf16.mxu1 %v10288_v0  ;;  %v10347_v63 = vld [vmem:[%s11613_s20 + $0x1150] ss:$8 sps:$4 sm:$0xff]  }
 0x262   : > { %7457 = vmatpush2.bf16.msra.mxu0 %v10283_v15 }
 0x263   : > { %7498 = vmatpush2.bf16.msra.mxu1 %v10286_v16  ;;  %7458 = vmatprep.subr.bf16.mxu0 %v10291_v1 }
 0x264   : > { %7499 = vmatprep.subr.bf16.mxu1 %v10294_v2  ;;  %v10355_v2 = vld [vmem:[%s11613_s20 + $0x1144] ss:$8 sps:$4 sm:$0xff]  }
 0x266   : > { %7459 = vmatpush2.bf16.msra.mxu0 %v10289_v3  ;;  %v10350_v3 = vld [vmem:[%s11613_s20 + $0x1040] ss:$8 sps:$4 sm:$0xff]  }
 0x267   : > { %7500 = vmatpush2.bf16.msra.mxu1 %v10292_v5  ;;  %7460 = vmatprep.subr.bf16.mxu0 %v10297_v39  ;;  %v10353_v5 = vld [vmem:[%s11613_s20 + $0x1140] ss:$8 sps:$4 sm:$0xff]   ;;  %v10358_v39 = vld [vmem:[%s11613_s20 + $0x1034] ss:$8 sps:$4 sm:$0xff]  }
 0x268   : > { %7501 = vmatprep.subr.bf16.mxu1 %v10300_v41  ;;  %v10361_v41 = vld [vmem:[%s11613_s20 + $0x1134] ss:$8 sps:$4 sm:$0xff]  }
 0x26a   : > { %7461 = vmatpush2.bf16.msra.mxu0 %v10295_v9  ;;  %v10356_v9 = vld [vmem:[%s11613_s20 + $0x1030] ss:$8 sps:$4 sm:$0xff]  }
 0x26b   : > { %7502 = vmatpush2.bf16.msra.mxu1 %v10298_v10  ;;  %7462 = vmatprep.subr.bf16.mxu0 %v10303_v48  ;;  %v10359_v10 = vld [vmem:[%s11613_s20 + $0x1130] ss:$8 sps:$4 sm:$0xff]   ;;  %v10364_v48 = vld [vmem:[%s11613_s20 + $0x1024] ss:$8 sps:$4 sm:$0xff]  }
 0x26c   : > { %7503 = vmatprep.subr.bf16.mxu1 %v10306_v11  ;;  %v10367_v11 = vld [vmem:[%s11613_s20 + $0x1124] ss:$8 sps:$4 sm:$0xff]  }
 0x26e   : > { %7463 = vmatpush2.bf16.msra.mxu0 %v10301_v12  ;;  %v10362_v12 = vld [vmem:[%s11613_s20 + $0x1020] ss:$8 sps:$4 sm:$0xff]  }
 0x26f   : > { %7504 = vmatpush2.bf16.msra.mxu1 %v10304_v13  ;;  %7464 = vmatprep.subr.bf16.mxu0 %v10309_v17  ;;  %v10365_v13 = vld [vmem:[%s11613_s20 + $0x1120] ss:$8 sps:$4 sm:$0xff]   ;;  %v10370_v17 = vld [vmem:[%s11613_s20 + $0x1014] ss:$8 sps:$4 sm:$0xff]  }
 0x270   : > { %7505 = vmatprep.subr.bf16.mxu1 %v10312_v18  ;;  %v10373_v18 = vld [vmem:[%s11613_s20 + $0x1114] ss:$8 sps:$4 sm:$0xff]  }
 0x272   : > { %7465 = vmatpush2.bf16.msra.mxu0 %v10307_v19  ;;  %v10368_v19 = vld [vmem:[%s11613_s20 + $0x1010] ss:$8 sps:$4 sm:$0xff]  }
 0x273   : > { %7506 = vmatpush2.bf16.msra.mxu1 %v10310_v20  ;;  %7466 = vmatprep.subr.bf16.mxu0 %v10315_v21  ;;  %v10371_v20 = vld [vmem:[%s11613_s20 + $0x1110] ss:$8 sps:$4 sm:$0xff]   ;;  %v10376_v21 = vld [vmem:[%s11613_s20 + $0x1004] ss:$8 sps:$4 sm:$0xff]  }
 0x274   : > { %7507 = vmatprep.subr.bf16.mxu1 %v10318_v22  ;;  %v10379_v22 = vld [vmem:[%s11613_s20 + $0x1104] ss:$8 sps:$4 sm:$0xff]  }
 0x276   : > { %7467 = vmatpush2.bf16.msra.mxu0 %v10313_v24  ;;  %v10377_v24 = vld [vmem:[%s11613_s20 + $0x1100] ss:$8 sps:$4 sm:$0xff]  }
 0x277   : > { %7508 = vmatpush2.bf16.msra.mxu1 %v10316_v25  ;;  %7468 = vmatprep.subr.bf16.mxu0 %v10321_v26  ;;  %v10382_v25 = vld [vmem:[%s11613_s20 + $0x10f4] ss:$8 sps:$4 sm:$0xff]  }
 0x278   : > { %7509 = vmatprep.subr.bf16.mxu1 %v10324_v45  ;;  %v10385_v26 = vld [vmem:[%s11613_s20 + $0x11f4] ss:$8 sps:$4 sm:$0xff]   ;;  %v10380_v45 = vld [vmem:[%s11613_s20 + $0x10f0] ss:$8 sps:$4 sm:$0xff]  }
 0x27a   : > { %7469 = vmatpush2.bf16.msra.mxu0 %v10319_v27  ;;  %v10388_v27 = vld [vmem:[%s11613_s20 + $0x10e4] ss:$8 sps:$4 sm:$0xff]  }
 0x27b   : > { %7510 = vmatpush2.bf16.msra.mxu1 %v10322_v28  ;;  %7470 = vmatprep.subr.bf16.mxu0 %v10327_v29  ;;  %v10391_v28 = vld [vmem:[%s11613_s20 + $0x11e4] ss:$8 sps:$4 sm:$0xff]   ;;  %v10386_v29 = vld [vmem:[%s11613_s20 + $0x10e0] ss:$8 sps:$4 sm:$0xff]  }
 0x27c   : > { %7511 = vmatprep.subr.bf16.mxu1 %v10330_v31  ;;  %v10389_v31 = vld [vmem:[%s11613_s20 + $0x11e0] ss:$8 sps:$4 sm:$0xff]  }
 0x27e   : > { %7471 = vmatpush2.bf16.msra.mxu0 %v10325_v4  ;;  %v10394_v4 = vld [vmem:[%s11613_s20 + $0x10d4] ss:$8 sps:$4 sm:$0xff]  }
 0x27f   : > { %7512 = vmatpush2.bf16.msra.mxu1 %v10328_v34  ;;  %7522 = vmatprep.subr.bf16.mxu0 %v10334_v58  ;;  %v10397_v34 = vld [vmem:[%s11613_s20 + $0x11d4] ss:$8 sps:$4 sm:$0xff]   ;;  %v10392_v58 = vld [vmem:[%s11613_s20 + $0x10d0] ss:$8 sps:$4 sm:$0xff]  }
 0x280   : > { %7563 = vmatprep.subr.bf16.mxu1 %v10337_v35  ;;  %v10395_v35 = vld [vmem:[%s11613_s20 + $0x11d0] ss:$8 sps:$4 sm:$0xff]  }
 0x281   : > { %v7228_v55 = vpop.f32.mrf.mxu0  ;;  %7473 = vmatmul.mubr.bf16.vlgmr.msra.gmra.mxu0 %v1709_v42  ;;  %v10406_v42 = vld [vmem:[%s11613_s20 + $0x10b4] ss:$8 sps:$4 sm:$0xff]  }
 0x282   : > { %v7269_v56 = vpop.f32.mrf.mxu1  ;;  %7514 = vmatmul.mubr.bf16.vlgmr.msra.gmra.mxu1 %v1711_v47  ;;  %v7229_v6 = vadd.f32 %v7228_v55, %v12217_v30  ;;  %7523 = vmatpush1.bf16.msra.mxu0 %v10332_v8  ;;  %v10400_v8 = vld [vmem:[%s11613_s20 + $0x10c4] ss:$8 sps:$4 sm:$0xff]   ;;  %v10409_v47 = vld [vmem:[%s11613_s20 + $0x11b4] ss:$8 sps:$4 sm:$0xff]   ;;  %v10413_v55 = vld [vmem:[%s11613_s20 + $0x11a0] ss:$8 sps:$4 sm:$0xff]  }
 0x283   : > { %7564 = vmatpush1.bf16.msra.mxu1 %v10335_v37  ;;  %v7230_v7 = vpop.f32.mrf.mxu0  ;;  %7524 = vmatprep.subr.bf16.mxu0 %v10340_v49  ;;  %v10403_v37 = vld [vmem:[%s11613_s20 + $0x11c4] ss:$8 sps:$4 sm:$0xff]   ;;  %v10404_v49 = vld [vmem:[%s11613_s20 + $0x10b0] ss:$8 sps:$4 sm:$0xff]  }
 0x284   : > { %v7271_v36 = vpop.f32.mrf.mxu1  ;;  %7565 = vmatprep.subr.bf16.mxu1 %v10343_v51  ;;  %v12302_v60 = vadd.f32 %v7269_v56, %v7229_v6  ;;  %v7231_v61 = vadd.f32 %v7230_v7, %v12222_v57  ;;  %7554 = vmatprep.mubr.bf16.mxu0 %v1714_v53  ;;  %v10352_v57 = vld [vmem:[%s11613_s20 + $0x1044] ss:$8 sps:$4 sm:$0xff]   ;;  %v10407_v51 = vld [vmem:[%s11613_s20 + $0x11b0] ss:$8 sps:$4 sm:$0xff]   ;;  %v10418_v56 = vld [vmem:[%s11613_s20 + $0x1094] ss:$8 sps:$4 sm:$0xff]  }
 0x285   : > { %7595 = vmatprep.mubr.bf16.mxu1 %v1716_v54  ;;  %v7232_v30 = vpop.f32.mrf.mxu0  ;;  %v298_v53 = vld [vmem:[%s11605_s29 + $0x48] sm:$0xff]  ;;  %v10421_v6 = vld [vmem:[%s11613_s20 + $0x1194] ss:$8 sps:$4 sm:$0xff]  }
 0x286   : > { %v7273_v0 = vpop.f32.mrf.mxu1  ;;  %v12307_v15 = vadd.f32 %v7271_v36, %v7231_v61  ;;  %7525 = vmatpush1.bf16.msra.mxu0 %v10338_v14  ;;  %v10412_v14 = vld [vmem:[%s11613_s20 + $0x10a4] ss:$8 sps:$4 sm:$0xff]   ;;  %v10410_v54 = vld [vmem:[%s11613_s20 + $0x10a0] ss:$8 sps:$4 sm:$0xff]   ;;  %v1498_v7 = vcombine.high %v298_v53, %v298_v53  ;;  %v10416_v36 = vld [vmem:[%s11613_s20 + $0x1090] ss:$8 sps:$4 sm:$0xff]  }
 0x287   : > { %7566 = vmatpush1.bf16.msra.mxu1 %v10341_v52  ;;  %v7233_v16 = vpop.f32.mrf.mxu0  ;;  %7526 = vmatprep.subr.bf16.mxu0 %v10346_v59  ;;  %v10415_v52 = vld [vmem:[%s11613_s20 + $0x11a4] ss:$8 sps:$4 sm:$0xff]   ;;  %v10419_v59 = vld [vmem:[%s11613_s20 + $0x1190] ss:$8 sps:$4 sm:$0xff]   ;;  %v10422_v30 = vld [vmem:[%s11613_s20 + $0x1080] ss:$8 sps:$4 sm:$0xff]  }
 0x288   : > { %v7274_v1 = vpop.f32.mrf.mxu1  ;;  %7567 = vmatprep.subr.bf16.mxu1 %v10349_v40  ;;  %v10424_v40 = vld [vmem:[%s11613_s20 + $0x1084] ss:$8 sps:$4 sm:$0xff]   ;;  %v10425_v0 = vld [vmem:[%s11613_s20 + $0x1180] ss:$8 sps:$4 sm:$0xff]   ;;  %v10431_v16 = vld [vmem:[%s11613_s20 + $0x1274] ss:$8 sps:$4 sm:$0xff]  }
 0x289   : > { %v10427_v61 = vld [vmem:[%s11613_s20 + $0x1184] ss:$8 sps:$4 sm:$0xff]   ;;  %v10434_v1 = vld [vmem:[%s11613_s20 + $0x1374] ss:$8 sps:$4 sm:$0xff]  }
 0x28a   : > { %7527 = vmatpush1.bf16.msra.mxu0 %v10344_v62  ;;  %v12361_v62 = vrot.slane %v298_v53, %v11680_v50  ;;  %v10471_v53 = vld [vmem:[%s11613_s20 + $0x1200] ss:$8 sps:$4 sm:$0xff]  }
 0x28b   : > { %7568 = vmatpush1.bf16.msra.mxu1 %v10347_v63  ;;  %7528 = vmatprep.subr.bf16.mxu0 %v10352_v57  ;;  %v12364_v63 = vrot.slane %v1498_v7, %v11680_v50  ;;  %v10429_v57 = vld [vmem:[%s11613_s20 + $0x1270] ss:$8 sps:$4 sm:$0xff]  }
 0x28c   : > { %7569 = vmatprep.subr.bf16.mxu1 %v10355_v2  ;;  %v10432_v2 = vld [vmem:[%s11613_s20 + $0x1370] ss:$8 sps:$4 sm:$0xff]  }
 0x28d   : > { %v10480_v7 = vld [vmem:[%s11613_s20 + $0x13f0] ss:$8 sps:$4 sm:$0xff]  }
 0x28e   : > { %7529 = vmatpush1.bf16.msra.mxu0 %v10350_v3  ;;  %v1513_v3 = vcombine.high %v12361_v62, %v12361_v62 }
 0x28f   : > { %7570 = vmatpush1.bf16.msra.mxu1 %v10353_v5  ;;  %7530 = vmatprep.subr.bf16.mxu0 %v10358_v39  ;;  %v1514_v5 = vcombine.high %v12364_v63, %v12364_v63  ;;  %v1713_v39 = vpack.c.bf16 %v12276_v32, %v12276_v32 }
 0x290   : > { %7571 = vmatprep.subr.bf16.mxu1 %v10361_v41  ;;  %v1715_v41 = vpack.c.bf16 %v12279_v33, %v12279_v33 }
 0x292   : > { %7531 = vmatpush1.bf16.msra.mxu0 %v10356_v9  ;;  %v10437_v9 = vld [vmem:[%s11613_s20 + $0x1264] ss:$8 sps:$4 sm:$0xff]  }
 0x293   : > { %7572 = vmatpush1.bf16.msra.mxu1 %v10359_v10  ;;  %7532 = vmatprep.subr.bf16.mxu0 %v10364_v48  ;;  %v10440_v10 = vld [vmem:[%s11613_s20 + $0x1364] ss:$8 sps:$4 sm:$0xff]   ;;  %v10435_v48 = vld [vmem:[%s11613_s20 + $0x1260] ss:$8 sps:$4 sm:$0xff]  }
 0x294   : > { %7573 = vmatprep.subr.bf16.mxu1 %v10367_v11  ;;  %v10438_v11 = vld [vmem:[%s11613_s20 + $0x1360] ss:$8 sps:$4 sm:$0xff]  }
 0x296   : > { %7533 = vmatpush1.bf16.msra.mxu0 %v10362_v12  ;;  %v1718_v12 = vpack.c.bf16 %v1513_v3, %v1513_v3  ;;  %v10495_v3 = vld [vmem:[%s11613_s20 + $0x12c0] ss:$8 sps:$4 sm:$0xff]  }
 0x297   : > { %7574 = vmatpush1.bf16.msra.mxu1 %v10365_v13  ;;  %7534 = vmatprep.subr.bf16.mxu0 %v10370_v17  ;;  %v1720_v13 = vpack.c.bf16 %v1514_v5, %v1514_v5  ;;  %v10498_v5 = vld [vmem:[%s11613_s20 + $0x13c0] ss:$8 sps:$4 sm:$0xff]  }
 0x298   : > { %7575 = vmatprep.subr.bf16.mxu1 %v10373_v18 }
 0x29a   : > { %7535 = vmatpush1.bf16.msra.mxu0 %v10368_v19 }
 0x29b   : > { %7576 = vmatpush1.bf16.msra.mxu1 %v10371_v20  ;;  %7536 = vmatprep.subr.bf16.mxu0 %v10376_v21  ;;  %v10443_v20 = vld [vmem:[%s11613_s20 + $0x1254] ss:$8 sps:$4 sm:$0xff]  }
 0x29c   : > { %7577 = vmatprep.subr.bf16.mxu1 %v10379_v22  ;;  %v10446_v21 = vld [vmem:[%s11613_s20 + $0x1354] ss:$8 sps:$4 sm:$0xff]  }
 0x29e   : > { %7537 = vmatpush1.bf16.msra.mxu0 %v10374_v23 }
 0x29f   : > { %7578 = vmatpush1.bf16.msra.mxu1 %v10377_v24  ;;  %7538 = vmatprep.subr.bf16.mxu0 %v10382_v25 }
 0x2a0   : > { %7579 = vmatprep.subr.bf16.mxu1 %v10385_v26  ;;  %v10441_v26 = vld [vmem:[%s11613_s20 + $0x1250] ss:$8 sps:$4 sm:$0xff]  }
 0x2a2   : > { %7539 = vmatpush2.bf16.msra.mxu0 %v10380_v45  ;;  %v10444_v45 = vld [vmem:[%s11613_s20 + $0x1350] ss:$8 sps:$4 sm:$0xff]  }
 0x2a3   : > { %7580 = vmatpush2.bf16.msra.mxu1 %v10383_v46  ;;  %7540 = vmatprep.subr.bf16.mxu0 %v10388_v27 }
 0x2a4   : > { %7581 = vmatprep.subr.bf16.mxu1 %v10391_v28  ;;  %v10452_v28 = vld [vmem:[%s11613_s20 + $0x1344] ss:$8 sps:$4 sm:$0xff]  }
 0x2a6   : > { %7541 = vmatpush2.bf16.msra.mxu0 %v10386_v29  ;;  %v10447_v29 = vld [vmem:[%s11613_s20 + $0x1240] ss:$8 sps:$4 sm:$0xff]  }
 0x2a7   : > { %7582 = vmatpush2.bf16.msra.mxu1 %v10389_v31  ;;  %7542 = vmatprep.subr.bf16.mxu0 %v10394_v4  ;;  %v10450_v31 = vld [vmem:[%s11613_s20 + $0x1340] ss:$8 sps:$4 sm:$0xff]   ;;  %v10455_v4 = vld [vmem:[%s11613_s20 + $0x1234] ss:$8 sps:$4 sm:$0xff]  }
 0x2a8   : > { %7583 = vmatprep.subr.bf16.mxu1 %v10397_v34  ;;  %v10458_v34 = vld [vmem:[%s11613_s20 + $0x1334] ss:$8 sps:$4 sm:$0xff]  }
 0x2aa   : > { %7543 = vmatpush2.bf16.msra.mxu0 %v10392_v58  ;;  %v10453_v58 = vld [vmem:[%s11613_s20 + $0x1230] ss:$8 sps:$4 sm:$0xff]  }
 0x2ab   : > { %7584 = vmatpush2.bf16.msra.mxu1 %v10395_v35  ;;  %7544 = vmatprep.subr.bf16.mxu0 %v10400_v8  ;;  %v10456_v35 = vld [vmem:[%s11613_s20 + $0x1330] ss:$8 sps:$4 sm:$0xff]   ;;  %v10461_v8 = vld [vmem:[%s11613_s20 + $0x1224] ss:$8 sps:$4 sm:$0xff]  }
 0x2ac   : > { %7585 = vmatprep.subr.bf16.mxu1 %v10403_v37  ;;  %v10464_v37 = vld [vmem:[%s11613_s20 + $0x1324] ss:$8 sps:$4 sm:$0xff]  }
 0x2ae   : > { %7545 = vmatpush2.bf16.msra.mxu0 %v10398_v38  ;;  %v10459_v38 = vld [vmem:[%s11613_s20 + $0x1220] ss:$8 sps:$4 sm:$0xff]  }
 0x2af   : > { %7586 = vmatpush2.bf16.msra.mxu1 %v10401_v43  ;;  %7546 = vmatprep.subr.bf16.mxu0 %v10406_v42  ;;  %v10462_v43 = vld [vmem:[%s11613_s20 + $0x1320] ss:$8 sps:$4 sm:$0xff]   ;;  %v10467_v42 = vld [vmem:[%s11613_s20 + $0x1214] ss:$8 sps:$4 sm:$0xff]  }
 0x2b0   : > { %7587 = vmatprep.subr.bf16.mxu1 %v10409_v47  ;;  %v10470_v47 = vld [vmem:[%s11613_s20 + $0x1314] ss:$8 sps:$4 sm:$0xff]  }
 0x2b2   : > { %7547 = vmatpush2.bf16.msra.mxu0 %v10404_v49  ;;  %v10465_v49 = vld [vmem:[%s11613_s20 + $0x1210] ss:$8 sps:$4 sm:$0xff]  }
 0x2b3   : > { %7588 = vmatpush2.bf16.msra.mxu1 %v10407_v51  ;;  %7548 = vmatprep.subr.bf16.mxu0 %v10412_v14  ;;  %v10468_v51 = vld [vmem:[%s11613_s20 + $0x1310] ss:$8 sps:$4 sm:$0xff]   ;;  %v10473_v14 = vld [vmem:[%s11613_s20 + $0x1204] ss:$8 sps:$4 sm:$0xff]  }
 0x2b4   : > { %7589 = vmatprep.subr.bf16.mxu1 %v10415_v52  ;;  %v10476_v52 = vld [vmem:[%s11613_s20 + $0x1304] ss:$8 sps:$4 sm:$0xff]  }
 0x2b6   : > { %7549 = vmatpush2.bf16.msra.mxu0 %v10410_v54  ;;  %v10474_v54 = vld [vmem:[%s11613_s20 + $0x1300] ss:$8 sps:$4 sm:$0xff]  }
 0x2b7   : > { %7590 = vmatpush2.bf16.msra.mxu1 %v10413_v55  ;;  %7550 = vmatprep.subr.bf16.mxu0 %v10418_v56  ;;  %v10479_v55 = vld [vmem:[%s11613_s20 + $0x12f4] ss:$8 sps:$4 sm:$0xff]  }
 0x2b8   : > { %7591 = vmatprep.subr.bf16.mxu1 %v10421_v6  ;;  %v10482_v56 = vld [vmem:[%s11613_s20 + $0x13f4] ss:$8 sps:$4 sm:$0xff]   ;;  %v10477_v6 = vld [vmem:[%s11613_s20 + $0x12f0] ss:$8 sps:$4 sm:$0xff]  }
 0x2ba   : > { %7551 = vmatpush2.bf16.msra.mxu0 %v10416_v36  ;;  %v10485_v36 = vld [vmem:[%s11613_s20 + $0x12e4] ss:$8 sps:$4 sm:$0xff]  }
 0x2bb   : > { %7592 = vmatpush2.bf16.msra.mxu1 %v10419_v59  ;;  %7552 = vmatprep.subr.bf16.mxu0 %v10424_v40  ;;  %v10488_v59 = vld [vmem:[%s11613_s20 + $0x13e4] ss:$8 sps:$4 sm:$0xff]   ;;  %v10483_v40 = vld [vmem:[%s11613_s20 + $0x12e0] ss:$8 sps:$4 sm:$0xff]  }
 0x2bc   : > { %7593 = vmatprep.subr.bf16.mxu1 %v10427_v61  ;;  %v10486_v61 = vld [vmem:[%s11613_s20 + $0x13e0] ss:$8 sps:$4 sm:$0xff]  }
 0x2be   : > { %7553 = vmatpush2.bf16.msra.mxu0 %v10422_v30  ;;  %v10491_v30 = vld [vmem:[%s11613_s20 + $0x12d4] ss:$8 sps:$4 sm:$0xff]  }
 0x2bf   : > { %7594 = vmatpush2.bf16.msra.mxu1 %v10425_v0  ;;  %7604 = vmatprep.subr.bf16.mxu0 %v10431_v16  ;;  %v10494_v0 = vld [vmem:[%s11613_s20 + $0x13d4] ss:$8 sps:$4 sm:$0xff]   ;;  %v10489_v16 = vld [vmem:[%s11613_s20 + $0x12d0] ss:$8 sps:$4 sm:$0xff]  }
 0x2c0   : > { %7645 = vmatprep.subr.bf16.mxu1 %v10434_v1  ;;  %v10492_v1 = vld [vmem:[%s11613_s20 + $0x13d0] ss:$8 sps:$4 sm:$0xff]  }
 0x2c1   : > { %v7310_v17 = vpop.f32.mrf.mxu0  ;;  %7555 = vmatmul.mubr.bf16.vlgmr.msra.gmra.mxu0 %v1713_v39  ;;  %v10503_v39 = vld [vmem:[%s11613_s20 + $0x12b4] ss:$8 sps:$4 sm:$0xff]  }
 0x2c2   : > { %v7351_v18 = vpop.f32.mrf.mxu1  ;;  %7596 = vmatmul.mubr.bf16.vlgmr.msra.gmra.mxu1 %v1715_v41  ;;  %v7311_v32 = vadd.f32 %v7310_v17, %v12302_v60  ;;  %7605 = vmatpush1.bf16.msra.mxu0 %v10429_v57  ;;  %v10497_v57 = vld [vmem:[%s11613_s20 + $0x12c4] ss:$8 sps:$4 sm:$0xff]   ;;  %v10506_v41 = vld [vmem:[%s11613_s20 + $0x13b4] ss:$8 sps:$4 sm:$0xff]   ;;  %v10510_v17 = vld [vmem:[%s11613_s20 + $0x13a0] ss:$8 sps:$4 sm:$0xff]  }
 0x2c3   : > { %7646 = vmatpush1.bf16.msra.mxu1 %v10432_v2  ;;  %v7312_v33 = vpop.f32.mrf.mxu0  ;;  %7606 = vmatprep.subr.bf16.mxu0 %v10437_v9  ;;  %v10500_v2 = vld [vmem:[%s11613_s20 + $0x13c4] ss:$8 sps:$4 sm:$0xff]   ;;  %v10501_v9 = vld [vmem:[%s11613_s20 + $0x12b0] ss:$8 sps:$4 sm:$0xff]  }
 0x2c4   : > { %v7353_v19 = vpop.f32.mrf.mxu1  ;;  %7647 = vmatprep.subr.bf16.mxu1 %v10440_v10  ;;  %v12387_v22 = vadd.f32 %v7351_v18, %v7311_v32  ;;  %v7313_v23 = vadd.f32 %v7312_v33, %v12307_v15  ;;  %7636 = vmatprep.mubr.bf16.mxu0 %v1718_v12  ;;  %v10449_v15 = vld [vmem:[%s11613_s20 + $0x1244] ss:$8 sps:$4 sm:$0xff]   ;;  %v10504_v10 = vld [vmem:[%s11613_s20 + $0x13b0] ss:$8 sps:$4 sm:$0xff]   ;;  %v10515_v18 = vld [vmem:[%s11613_s20 + $0x1294] ss:$8 sps:$4 sm:$0xff]  }
 0x2c5   : > { %7677 = vmatprep.mubr.bf16.mxu1 %v1720_v13  ;;  %v7314_v60 = vpop.f32.mrf.mxu0  ;;  %v299_v12 = vld [vmem:[%s11605_s29 + $0x50] sm:$0xff]  ;;  %v10507_v13 = vld [vmem:[%s11613_s20 + $0x12a0] ss:$8 sps:$4 sm:$0xff]  }
 0x2c6   : > { %v7355_v24 = vpop.f32.mrf.mxu1  ;;  %v12390_v25 = vadd.f32 %v7353_v19, %v7313_v23  ;;  %7607 = vmatpush1.bf16.msra.mxu0 %v10435_v48  ;;  %v10509_v48 = vld [vmem:[%s11613_s20 + $0x12a4] ss:$8 sps:$4 sm:$0xff]   ;;  %v10518_v32 = vld [vmem:[%s11613_s20 + $0x1394] ss:$8 sps:$4 sm:$0xff]   ;;  %v1515_v33 = vcombine.high %v299_v12, %v299_v12  ;;  %v10513_v19 = vld [vmem:[%s11613_s20 + $0x1290] ss:$8 sps:$4 sm:$0xff]   ;;  %v12446_v60 = vrot.slane %v299_v12, %v11680_v50 }
 0x2c7   : > { %7648 = vmatpush1.bf16.msra.mxu1 %v10438_v11  ;;  %v7315_v46 = vpop.f32.mrf.mxu0  ;;  %7608 = vmatprep.subr.bf16.mxu0 %v10443_v20  ;;  %v10512_v11 = vld [vmem:[%s11613_s20 + $0x13a4] ss:$8 sps:$4 sm:$0xff]   ;;  %v10516_v20 = vld [vmem:[%s11613_s20 + $0x1390] ss:$8 sps:$4 sm:$0xff]   ;;  %v10568_v12 = vld [vmem:[%s11613_s20 + $0x1400] ss:$8 sps:$4 sm:$0xff]  }
 0x2c8   : > { %v7356_v27 = vpop.f32.mrf.mxu1  ;;  %7649 = vmatprep.subr.bf16.mxu1 %v10446_v21  ;;  %v10521_v21 = vld [vmem:[%s11613_s20 + $0x1284] ss:$8 sps:$4 sm:$0xff]   ;;  %v12449_v24 = vrot.slane %v1515_v33, %v11680_v50  ;;  %v10528_v46 = vld [vmem:[%s11613_s20 + $0x1474] ss:$8 sps:$4 sm:$0xff]   ;;  %v10577_v33 = vld [vmem:[%s11613_s20 + $0x15f0] ss:$8 sps:$4 sm:$0xff]  }
 0x2c9   : > { %v10524_v23 = vld [vmem:[%s11613_s20 + $0x1384] ss:$8 sps:$4 sm:$0xff]   ;;  %v10531_v27 = vld [vmem:[%s11613_s20 + $0x1574] ss:$8 sps:$4 sm:$0xff]  }
 0x2ca   : > { %7609 = vmatpush1.bf16.msra.mxu0 %v10441_v26  ;;  %v10519_v26 = vld [vmem:[%s11613_s20 + $0x1280] ss:$8 sps:$4 sm:$0xff]  }
 0x2cb   : > { %7650 = vmatpush1.bf16.msra.mxu1 %v10444_v45  ;;  %7610 = vmatprep.subr.bf16.mxu0 %v10449_v15  ;;  %v10522_v45 = vld [vmem:[%s11613_s20 + $0x1380] ss:$8 sps:$4 sm:$0xff]   ;;  %v1530_v15 = vcombine.high %v12446_v60, %v12446_v60 }
 0x2cc   : > { %7651 = vmatprep.subr.bf16.mxu1 %v10452_v28  ;;  %v1531_v28 = vcombine.high %v12449_v24, %v12449_v24 }
 0x2ce   : > { %7611 = vmatpush1.bf16.msra.mxu0 %v10447_v29  ;;  %v1717_v29 = vpack.c.bf16 %v12361_v62, %v12361_v62 }
 0x2cf   : > { %7652 = vmatpush1.bf16.msra.mxu1 %v10450_v31  ;;  %7612 = vmatprep.subr.bf16.mxu0 %v10455_v4  ;;  %v1719_v31 = vpack.c.bf16 %v12364_v63, %v12364_v63  ;;  %v10526_v4 = vld [vmem:[%s11613_s20 + $0x1470] ss:$8 sps:$4 sm:$0xff]   ;;  %v10532_v63 = vld [vmem:[%s11613_s20 + $0x1460] ss:$8 sps:$4 sm:$0xff]  }
 0x2d0   : > { %7653 = vmatprep.subr.bf16.mxu1 %v10458_v34  ;;  %v10529_v34 = vld [vmem:[%s11613_s20 + $0x1570] ss:$8 sps:$4 sm:$0xff]  }
 0x2d2   : > { %7613 = vmatpush1.bf16.msra.mxu0 %v10453_v58  ;;  %v10534_v58 = vld [vmem:[%s11613_s20 + $0x1464] ss:$8 sps:$4 sm:$0xff]  }
 0x2d3   : > { %7654 = vmatpush1.bf16.msra.mxu1 %v10456_v35  ;;  %7614 = vmatprep.subr.bf16.mxu0 %v10461_v8  ;;  %v10537_v35 = vld [vmem:[%s11613_s20 + $0x1564] ss:$8 sps:$4 sm:$0xff]   ;;  %v1722_v8 = vpack.c.bf16 %v1530_v15, %v1530_v15 }
 0x2d4   : > { %7655 = vmatprep.subr.bf16.mxu1 %v10464_v37  ;;  %v1724_v37 = vpack.c.bf16 %v1531_v28, %v1531_v28  ;;  %v10594_v15 = vld [vmem:[%s11613_s20 + $0x14c4] ss:$8 sps:$4 sm:$0xff]  }
 0x2d5   : > { %v10597_v28 = vld [vmem:[%s11613_s20 + $0x15c4] ss:$8 sps:$4 sm:$0xff]  }
 0x2d6   : > { %7615 = vmatpush1.bf16.msra.mxu0 %v10459_v38 }
 0x2d7   : > { %7656 = vmatpush1.bf16.msra.mxu1 %v10462_v43  ;;  %7616 = vmatprep.subr.bf16.mxu0 %v10467_v42  ;;  %v10535_v42 = vld [vmem:[%s11613_s20 + $0x1560] ss:$8 sps:$4 sm:$0xff]  }
 0x2d8   : > { %7657 = vmatprep.subr.bf16.mxu1 %v10470_v47 }
 0x2da   : > { %7617 = vmatpush1.bf16.msra.mxu0 %v10465_v49 }
 0x2db   : > { %7658 = vmatpush1.bf16.msra.mxu1 %v10468_v51  ;;  %7618 = vmatprep.subr.bf16.mxu0 %v10473_v14  ;;  %v10540_v51 = vld [vmem:[%s11613_s20 + $0x1454] ss:$8 sps:$4 sm:$0xff]  }
 0x2dc   : > { %7659 = vmatprep.subr.bf16.mxu1 %v10476_v52  ;;  %v10543_v14 = vld [vmem:[%s11613_s20 + $0x1554] ss:$8 sps:$4 sm:$0xff]  }
 0x2de   : > { %7619 = vmatpush1.bf16.msra.mxu0 %v10471_v53 }
 0x2df   : > { %7660 = vmatpush1.bf16.msra.mxu1 %v10474_v54  ;;  %7620 = vmatprep.subr.bf16.mxu0 %v10479_v55 }
 0x2e0   : > { %7661 = vmatprep.subr.bf16.mxu1 %v10482_v56  ;;  %v10538_v56 = vld [vmem:[%s11613_s20 + $0x1450] ss:$8 sps:$4 sm:$0xff]  }
 0x2e2   : > { %7621 = vmatpush2.bf16.msra.mxu0 %v10477_v6  ;;  %v10541_v6 = vld [vmem:[%s11613_s20 + $0x1550] ss:$8 sps:$4 sm:$0xff]  }
 0x2e3   : > { %7662 = vmatpush2.bf16.msra.mxu1 %v10480_v7  ;;  %7622 = vmatprep.subr.bf16.mxu0 %v10485_v36 }
 0x2e4   : > { %7663 = vmatprep.subr.bf16.mxu1 %v10488_v59  ;;  %v10549_v59 = vld [vmem:[%s11613_s20 + $0x1544] ss:$8 sps:$4 sm:$0xff]  }
 0x2e6   : > { %7623 = vmatpush2.bf16.msra.mxu0 %v10483_v40  ;;  %v10544_v40 = vld [vmem:[%s11613_s20 + $0x1440] ss:$8 sps:$4 sm:$0xff]  }
 0x2e7   : > { %7664 = vmatpush2.bf16.msra.mxu1 %v10486_v61  ;;  %7624 = vmatprep.subr.bf16.mxu0 %v10491_v30  ;;  %v10547_v61 = vld [vmem:[%s11613_s20 + $0x1540] ss:$8 sps:$4 sm:$0xff]   ;;  %v10552_v30 = vld [vmem:[%s11613_s20 + $0x1434] ss:$8 sps:$4 sm:$0xff]  }
 0x2e8   : > { %7665 = vmatprep.subr.bf16.mxu1 %v10494_v0  ;;  %v10555_v0 = vld [vmem:[%s11613_s20 + $0x1534] ss:$8 sps:$4 sm:$0xff]  }
 0x2ea   : > { %7625 = vmatpush2.bf16.msra.mxu0 %v10489_v16  ;;  %v10550_v16 = vld [vmem:[%s11613_s20 + $0x1430] ss:$8 sps:$4 sm:$0xff]  }
 0x2eb   : > { %7666 = vmatpush2.bf16.msra.mxu1 %v10492_v1  ;;  %7626 = vmatprep.subr.bf16.mxu0 %v10497_v57  ;;  %v10553_v1 = vld [vmem:[%s11613_s20 + $0x1530] ss:$8 sps:$4 sm:$0xff]   ;;  %v10558_v57 = vld [vmem:[%s11613_s20 + $0x1424] ss:$8 sps:$4 sm:$0xff]  }
 0x2ec   : > { %7667 = vmatprep.subr.bf16.mxu1 %v10500_v2  ;;  %v10561_v2 = vld [vmem:[%s11613_s20 + $0x1524] ss:$8 sps:$4 sm:$0xff]  }
 0x2ee   : > { %7627 = vmatpush2.bf16.msra.mxu0 %v10495_v3  ;;  %v10556_v3 = vld [vmem:[%s11613_s20 + $0x1420] ss:$8 sps:$4 sm:$0xff]  }
 0x2ef   : > { %7668 = vmatpush2.bf16.msra.mxu1 %v10498_v5  ;;  %7628 = vmatprep.subr.bf16.mxu0 %v10503_v39  ;;  %v10559_v5 = vld [vmem:[%s11613_s20 + $0x1520] ss:$8 sps:$4 sm:$0xff]   ;;  %v10564_v39 = vld [vmem:[%s11613_s20 + $0x1414] ss:$8 sps:$4 sm:$0xff]  }
 0x2f0   : > { %7669 = vmatprep.subr.bf16.mxu1 %v10506_v41  ;;  %v10567_v41 = vld [vmem:[%s11613_s20 + $0x1514] ss:$8 sps:$4 sm:$0xff]  }
 0x2f2   : > { %7629 = vmatpush2.bf16.msra.mxu0 %v10501_v9  ;;  %v10562_v9 = vld [vmem:[%s11613_s20 + $0x1410] ss:$8 sps:$4 sm:$0xff]  }
 0x2f3   : > { %7670 = vmatpush2.bf16.msra.mxu1 %v10504_v10  ;;  %7630 = vmatprep.subr.bf16.mxu0 %v10509_v48  ;;  %v10565_v10 = vld [vmem:[%s11613_s20 + $0x1510] ss:$8 sps:$4 sm:$0xff]   ;;  %v10570_v48 = vld [vmem:[%s11613_s20 + $0x1404] ss:$8 sps:$4 sm:$0xff]  }
 0x2f4   : > { %7671 = vmatprep.subr.bf16.mxu1 %v10512_v11  ;;  %v10573_v11 = vld [vmem:[%s11613_s20 + $0x1504] ss:$8 sps:$4 sm:$0xff]  }
 0x2f6   : > { %7631 = vmatpush2.bf16.msra.mxu0 %v10507_v13  ;;  %v10571_v13 = vld [vmem:[%s11613_s20 + $0x1500] ss:$8 sps:$4 sm:$0xff]  }
 0x2f7   : > { %7672 = vmatpush2.bf16.msra.mxu1 %v10510_v17  ;;  %7632 = vmatprep.subr.bf16.mxu0 %v10515_v18  ;;  %v10576_v17 = vld [vmem:[%s11613_s20 + $0x14f4] ss:$8 sps:$4 sm:$0xff]  }
 0x2f8   : > { %7673 = vmatprep.subr.bf16.mxu1 %v10518_v32  ;;  %v10579_v18 = vld [vmem:[%s11613_s20 + $0x15f4] ss:$8 sps:$4 sm:$0xff]   ;;  %v10574_v32 = vld [vmem:[%s11613_s20 + $0x14f0] ss:$8 sps:$4 sm:$0xff]  }
 0x2fa   : > { %7633 = vmatpush2.bf16.msra.mxu0 %v10513_v19  ;;  %v10582_v19 = vld [vmem:[%s11613_s20 + $0x14e4] ss:$8 sps:$4 sm:$0xff]  }
 0x2fb   : > { %7674 = vmatpush2.bf16.msra.mxu1 %v10516_v20  ;;  %7634 = vmatprep.subr.bf16.mxu0 %v10521_v21  ;;  %v10585_v20 = vld [vmem:[%s11613_s20 + $0x15e4] ss:$8 sps:$4 sm:$0xff]   ;;  %v10580_v21 = vld [vmem:[%s11613_s20 + $0x14e0] ss:$8 sps:$4 sm:$0xff]  }
 0x2fc   : > { %7675 = vmatprep.subr.bf16.mxu1 %v10524_v23  ;;  %v10583_v23 = vld [vmem:[%s11613_s20 + $0x15e0] ss:$8 sps:$4 sm:$0xff]  }
 0x2fe   : > { %7635 = vmatpush2.bf16.msra.mxu0 %v10519_v26  ;;  %v10588_v26 = vld [vmem:[%s11613_s20 + $0x14d4] ss:$8 sps:$4 sm:$0xff]  }
 0x2ff   : > { %7676 = vmatpush2.bf16.msra.mxu1 %v10522_v45  ;;  %7686 = vmatprep.subr.bf16.mxu0 %v10528_v46  ;;  %v10591_v45 = vld [vmem:[%s11613_s20 + $0x15d4] ss:$8 sps:$4 sm:$0xff]   ;;  %v10586_v46 = vld [vmem:[%s11613_s20 + $0x14d0] ss:$8 sps:$4 sm:$0xff]  }
 0x300   : > { %7727 = vmatprep.subr.bf16.mxu1 %v10531_v27  ;;  %v10589_v27 = vld [vmem:[%s11613_s20 + $0x15d0] ss:$8 sps:$4 sm:$0xff]  }
 0x301   : > { %v7392_v38 = vpop.f32.mrf.mxu0  ;;  %7637 = vmatmul.mubr.bf16.vlgmr.msra.gmra.mxu0 %v1717_v29  ;;  %v10592_v29 = vld [vmem:[%s11613_s20 + $0x14c0] ss:$8 sps:$4 sm:$0xff]  }
 0x302   : > { %v7433_v43 = vpop.f32.mrf.mxu1  ;;  %7678 = vmatmul.mubr.bf16.vlgmr.msra.gmra.mxu1 %v1719_v31  ;;  %v7393_v62 = vadd.f32 %v7392_v38, %v12387_v22  ;;  %7687 = vmatpush1.bf16.msra.mxu0 %v10526_v4  ;;  %v10595_v31 = vld [vmem:[%s11613_s20 + $0x15c0] ss:$8 sps:$4 sm:$0xff]   ;;  %v10600_v4 = vld [vmem:[%s11613_s20 + $0x14b4] ss:$8 sps:$4 sm:$0xff]  }
 0x303   : > { %7728 = vmatpush1.bf16.msra.mxu1 %v10529_v34  ;;  %v7394_v47 = vpop.f32.mrf.mxu0  ;;  %7688 = vmatprep.subr.bf16.mxu0 %v10534_v58  ;;  %v10603_v34 = vld [vmem:[%s11613_s20 + $0x15b4] ss:$8 sps:$4 sm:$0xff]   ;;  %v10598_v58 = vld [vmem:[%s11613_s20 + $0x14b0] ss:$8 sps:$4 sm:$0xff]  }
 0x304   : > { %v7435_v49 = vpop.f32.mrf.mxu1  ;;  %7729 = vmatprep.subr.bf16.mxu1 %v10537_v35  ;;  %v12472_v52 = vadd.f32 %v7433_v43, %v7393_v62  ;;  %v7395_v53 = vadd.f32 %v7394_v47, %v12390_v25  ;;  %7718 = vmatprep.mubr.bf16.mxu0 %v1722_v8  ;;  %v10546_v25 = vld [vmem:[%s11613_s20 + $0x1444] ss:$8 sps:$4 sm:$0xff]   ;;  %v10601_v35 = vld [vmem:[%s11613_s20 + $0x15b0] ss:$8 sps:$4 sm:$0xff]   ;;  %v10604_v43 = vld [vmem:[%s11613_s20 + $0x14a0] ss:$8 sps:$4 sm:$0xff]  }
 0x305   : > { %7759 = vmatprep.mubr.bf16.mxu1 %v1724_v37  ;;  %v7396_v22 = vpop.f32.mrf.mxu0  ;;  %v10606_v8 = vld [vmem:[%s11613_s20 + $0x14a4] ss:$8 sps:$4 sm:$0xff]   ;;  %v300_v38 = vld [vmem:[%s11605_s29 + $0x58] sm:$0xff]  ;;  %v10607_v62 = vld [vmem:[%s11613_s20 + $0x15a0] ss:$8 sps:$4 sm:$0xff]  }
 0x306   : > { %v7437_v54 = vpop.f32.mrf.mxu1  ;;  %v12475_v55 = vadd.f32 %v7435_v49, %v7395_v53  ;;  %7689 = vmatpush1.bf16.msra.mxu0 %v10532_v63  ;;  %v10609_v37 = vld [vmem:[%s11613_s20 + $0x15a4] ss:$8 sps:$4 sm:$0xff]   ;;  %v10612_v63 = vld [vmem:[%s11613_s20 + $0x1494] ss:$8 sps:$4 sm:$0xff]   ;;  %v1532_v47 = vcombine.high %v300_v38, %v300_v38  ;;  %v10610_v49 = vld [vmem:[%s11613_s20 + $0x1490] ss:$8 sps:$4 sm:$0xff]   ;;  %v12531_v22 = vrot.slane %v300_v38, %v11680_v50 }
 0x307   : > { %7730 = vmatpush1.bf16.msra.mxu1 %v10535_v42  ;;  %v7397_v7 = vpop.f32.mrf.mxu0  ;;  %7690 = vmatprep.subr.bf16.mxu0 %v10540_v51  ;;  %v10615_v42 = vld [vmem:[%s11613_s20 + $0x1594] ss:$8 sps:$4 sm:$0xff]   ;;  %v10613_v51 = vld [vmem:[%s11613_s20 + $0x1590] ss:$8 sps:$4 sm:$0xff]   ;;  %v10621_v53 = vld [vmem:[%s11613_s20 + $0x1584] ss:$8 sps:$4 sm:$0xff]  }
 0x308   : > { %v7438_v36 = vpop.f32.mrf.mxu1  ;;  %7731 = vmatprep.subr.bf16.mxu1 %v10543_v14  ;;  %v10618_v14 = vld [vmem:[%s11613_s20 + $0x1484] ss:$8 sps:$4 sm:$0xff]   ;;  %v12534_v54 = vrot.slane %v1532_v47, %v11680_v50  ;;  %v10625_v7 = vld [vmem:[%s11613_s20 + $0x1674] ss:$8 sps:$4 sm:$0xff]   ;;  %v10665_v38 = vld [vmem:[%s11613_s20 + $0x1600] ss:$8 sps:$4 sm:$0xff]  }
 0x309   : > { %v10628_v36 = vld [vmem:[%s11613_s20 + $0x1774] ss:$8 sps:$4 sm:$0xff]   ;;  %v10674_v47 = vld [vmem:[%s11613_s20 + $0x17f0] ss:$8 sps:$4 sm:$0xff]  }
 0x30a   : > { %7691 = vmatpush1.bf16.msra.mxu0 %v10538_v56  ;;  %v10616_v56 = vld [vmem:[%s11613_s20 + $0x1480] ss:$8 sps:$4 sm:$0xff]  }
 0x30b   : > { %7732 = vmatpush1.bf16.msra.mxu1 %v10541_v6  ;;  %7692 = vmatprep.subr.bf16.mxu0 %v10546_v25  ;;  %v10619_v6 = vld [vmem:[%s11613_s20 + $0x1580] ss:$8 sps:$4 sm:$0xff]   ;;  %v1547_v25 = vcombine.high %v12531_v22, %v12531_v22 }
 0x30c   : > { %7733 = vmatprep.subr.bf16.mxu1 %v10549_v59  ;;  %v1548_v59 = vcombine.high %v12534_v54, %v12534_v54 }
 0x30e   : > { %7693 = vmatpush1.bf16.msra.mxu0 %v10544_v40  ;;  %v1721_v40 = vpack.c.bf16 %v12446_v60, %v12446_v60 }
 0x30f   : > { %7734 = vmatpush1.bf16.msra.mxu1 %v10547_v61  ;;  %7694 = vmatprep.subr.bf16.mxu0 %v10552_v30  ;;  %v1723_v61 = vpack.c.bf16 %v12449_v24, %v12449_v24  ;;  %v10623_v30 = vld [vmem:[%s11613_s20 + $0x1670] ss:$8 sps:$4 sm:$0xff]   ;;  %v10629_v24 = vld [vmem:[%s11613_s20 + $0x1660] ss:$8 sps:$4 sm:$0xff]  }
 0x310   : > { %7735 = vmatprep.subr.bf16.mxu1 %v10555_v0  ;;  %v10626_v0 = vld [vmem:[%s11613_s20 + $0x1770] ss:$8 sps:$4 sm:$0xff]  }
 0x312   : > { %7695 = vmatpush1.bf16.msra.mxu0 %v10550_v16  ;;  %v10631_v16 = vld [vmem:[%s11613_s20 + $0x1664] ss:$8 sps:$4 sm:$0xff]  }
 0x313   : > { %7736 = vmatpush1.bf16.msra.mxu1 %v10553_v1  ;;  %7696 = vmatprep.subr.bf16.mxu0 %v10558_v57  ;;  %v10634_v1 = vld [vmem:[%s11613_s20 + $0x1764] ss:$8 sps:$4 sm:$0xff]   ;;  %v1726_v57 = vpack.c.bf16 %v1547_v25, %v1547_v25 }
 0x314   : > { %7737 = vmatprep.subr.bf16.mxu1 %v10561_v2  ;;  %v1728_v2 = vpack.c.bf16 %v1548_v59, %v1548_v59  ;;  %v10691_v25 = vld [vmem:[%s11613_s20 + $0x16c4] ss:$8 sps:$4 sm:$0xff]  }
 0x315   : > { %v10694_v59 = vld [vmem:[%s11613_s20 + $0x17c4] ss:$8 sps:$4 sm:$0xff]  }
 0x316   : > { %7697 = vmatpush1.bf16.msra.mxu0 %v10556_v3 }
 0x317   : > { %7738 = vmatpush1.bf16.msra.mxu1 %v10559_v5  ;;  %7698 = vmatprep.subr.bf16.mxu0 %v10564_v39  ;;  %v10632_v39 = vld [vmem:[%s11613_s20 + $0x1760] ss:$8 sps:$4 sm:$0xff]  }
 0x318   : > { %7739 = vmatprep.subr.bf16.mxu1 %v10567_v41 }
 0x31a   : > { %7699 = vmatpush1.bf16.msra.mxu0 %v10562_v9 }
 0x31b   : > { %7740 = vmatpush1.bf16.msra.mxu1 %v10565_v10  ;;  %7700 = vmatprep.subr.bf16.mxu0 %v10570_v48  ;;  %v10637_v10 = vld [vmem:[%s11613_s20 + $0x1654] ss:$8 sps:$4 sm:$0xff]  }
 0x31c   : > { %7741 = vmatprep.subr.bf16.mxu1 %v10573_v11  ;;  %v10640_v48 = vld [vmem:[%s11613_s20 + $0x1754] ss:$8 sps:$4 sm:$0xff]  }
 0x31e   : > { %7701 = vmatpush1.bf16.msra.mxu0 %v10568_v12 }
 0x31f   : > { %7742 = vmatpush1.bf16.msra.mxu1 %v10571_v13  ;;  %7702 = vmatprep.subr.bf16.mxu0 %v10576_v17 }
 0x320   : > { %7743 = vmatprep.subr.bf16.mxu1 %v10579_v18  ;;  %v10635_v18 = vld [vmem:[%s11613_s20 + $0x1650] ss:$8 sps:$4 sm:$0xff]  }
 0x322   : > { %7703 = vmatpush2.bf16.msra.mxu0 %v10574_v32  ;;  %v10638_v32 = vld [vmem:[%s11613_s20 + $0x1750] ss:$8 sps:$4 sm:$0xff]  }
 0x323   : > { %7744 = vmatpush2.bf16.msra.mxu1 %v10577_v33  ;;  %7704 = vmatprep.subr.bf16.mxu0 %v10582_v19 }
 0x324   : > { %7745 = vmatprep.subr.bf16.mxu1 %v10585_v20  ;;  %v10646_v20 = vld [vmem:[%s11613_s20 + $0x1744] ss:$8 sps:$4 sm:$0xff]  }
 0x326   : > { %7705 = vmatpush2.bf16.msra.mxu0 %v10580_v21  ;;  %v10641_v21 = vld [vmem:[%s11613_s20 + $0x1640] ss:$8 sps:$4 sm:$0xff]  }
 0x327   : > { %7746 = vmatpush2.bf16.msra.mxu1 %v10583_v23  ;;  %7706 = vmatprep.subr.bf16.mxu0 %v10588_v26  ;;  %v10644_v23 = vld [vmem:[%s11613_s20 + $0x1740] ss:$8 sps:$4 sm:$0xff]   ;;  %v10649_v26 = vld [vmem:[%s11613_s20 + $0x1634] ss:$8 sps:$4 sm:$0xff]  }
 0x328   : > { %7747 = vmatprep.subr.bf16.mxu1 %v10591_v45  ;;  %v10652_v45 = vld [vmem:[%s11613_s20 + $0x1734] ss:$8 sps:$4 sm:$0xff]  }
 0x32a   : > { %7707 = vmatpush2.bf16.msra.mxu0 %v10586_v46  ;;  %v10647_v46 = vld [vmem:[%s11613_s20 + $0x1630] ss:$8 sps:$4 sm:$0xff]  }
 0x32b   : > { %7748 = vmatpush2.bf16.msra.mxu1 %v10589_v27  ;;  %7708 = vmatprep.subr.bf16.mxu0 %v10594_v15  ;;  %v10650_v27 = vld [vmem:[%s11613_s20 + $0x1730] ss:$8 sps:$4 sm:$0xff]   ;;  %v10655_v15 = vld [vmem:[%s11613_s20 + $0x1624] ss:$8 sps:$4 sm:$0xff]  }
 0x32c   : > { %7749 = vmatprep.subr.bf16.mxu1 %v10597_v28  ;;  %v10658_v28 = vld [vmem:[%s11613_s20 + $0x1724] ss:$8 sps:$4 sm:$0xff]  }
 0x32e   : > { %7709 = vmatpush2.bf16.msra.mxu0 %v10592_v29  ;;  %v10653_v29 = vld [vmem:[%s11613_s20 + $0x1620] ss:$8 sps:$4 sm:$0xff]  }
 0x32f   : > { %7750 = vmatpush2.bf16.msra.mxu1 %v10595_v31  ;;  %7710 = vmatprep.subr.bf16.mxu0 %v10600_v4  ;;  %v10656_v31 = vld [vmem:[%s11613_s20 + $0x1720] ss:$8 sps:$4 sm:$0xff]   ;;  %v10661_v4 = vld [vmem:[%s11613_s20 + $0x1614] ss:$8 sps:$4 sm:$0xff]  }
 0x330   : > { %7751 = vmatprep.subr.bf16.mxu1 %v10603_v34  ;;  %v10664_v34 = vld [vmem:[%s11613_s20 + $0x1714] ss:$8 sps:$4 sm:$0xff]  }
 0x332   : > { %7711 = vmatpush2.bf16.msra.mxu0 %v10598_v58  ;;  %v10659_v58 = vld [vmem:[%s11613_s20 + $0x1610] ss:$8 sps:$4 sm:$0xff]  }
 0x333   : > { %7752 = vmatpush2.bf16.msra.mxu1 %v10601_v35  ;;  %7712 = vmatprep.subr.bf16.mxu0 %v10606_v8  ;;  %v10662_v35 = vld [vmem:[%s11613_s20 + $0x1710] ss:$8 sps:$4 sm:$0xff]   ;;  %v10667_v8 = vld [vmem:[%s11613_s20 + $0x1604] ss:$8 sps:$4 sm:$0xff]  }
 0x334   : > { %7753 = vmatprep.subr.bf16.mxu1 %v10609_v37  ;;  %v10670_v37 = vld [vmem:[%s11613_s20 + $0x1704] ss:$8 sps:$4 sm:$0xff]  }
 0x336   : > { %7713 = vmatpush2.bf16.msra.mxu0 %v10604_v43  ;;  %v10668_v43 = vld [vmem:[%s11613_s20 + $0x1700] ss:$8 sps:$4 sm:$0xff]  }
 0x337   : > { %7754 = vmatpush2.bf16.msra.mxu1 %v10607_v62  ;;  %7714 = vmatprep.subr.bf16.mxu0 %v10612_v63  ;;  %v10673_v62 = vld [vmem:[%s11613_s20 + $0x16f4] ss:$8 sps:$4 sm:$0xff]  }
 0x338   : > { %7755 = vmatprep.subr.bf16.mxu1 %v10615_v42  ;;  %v10676_v63 = vld [vmem:[%s11613_s20 + $0x17f4] ss:$8 sps:$4 sm:$0xff]   ;;  %v10671_v42 = vld [vmem:[%s11613_s20 + $0x16f0] ss:$8 sps:$4 sm:$0xff]  }
 0x33a   : > { %7715 = vmatpush2.bf16.msra.mxu0 %v10610_v49  ;;  %v10679_v49 = vld [vmem:[%s11613_s20 + $0x16e4] ss:$8 sps:$4 sm:$0xff]  }
 0x33b   : > { %7756 = vmatpush2.bf16.msra.mxu1 %v10613_v51  ;;  %7716 = vmatprep.subr.bf16.mxu0 %v10618_v14  ;;  %v10682_v51 = vld [vmem:[%s11613_s20 + $0x17e4] ss:$8 sps:$4 sm:$0xff]   ;;  %v10677_v14 = vld [vmem:[%s11613_s20 + $0x16e0] ss:$8 sps:$4 sm:$0xff]  }
 0x33c   : > { %7757 = vmatprep.subr.bf16.mxu1 %v10621_v53  ;;  %v10680_v53 = vld [vmem:[%s11613_s20 + $0x17e0] ss:$8 sps:$4 sm:$0xff]  }
 0x33e   : > { %7717 = vmatpush2.bf16.msra.mxu0 %v10616_v56  ;;  %v10685_v56 = vld [vmem:[%s11613_s20 + $0x16d4] ss:$8 sps:$4 sm:$0xff]  }
 0x33f   : > { %7758 = vmatpush2.bf16.msra.mxu1 %v10619_v6  ;;  %7768 = vmatprep.subr.bf16.mxu0 %v10625_v7  ;;  %v10688_v6 = vld [vmem:[%s11613_s20 + $0x17d4] ss:$8 sps:$4 sm:$0xff]   ;;  %v10683_v7 = vld [vmem:[%s11613_s20 + $0x16d0] ss:$8 sps:$4 sm:$0xff]  }
 0x340   : > { %7809 = vmatprep.subr.bf16.mxu1 %v10628_v36  ;;  %v10686_v36 = vld [vmem:[%s11613_s20 + $0x17d0] ss:$8 sps:$4 sm:$0xff]  }
 0x341   : > { %v7474_v3 = vpop.f32.mrf.mxu0  ;;  %7719 = vmatmul.mubr.bf16.vlgmr.msra.gmra.mxu0 %v1721_v40  ;;  %v10689_v40 = vld [vmem:[%s11613_s20 + $0x16c0] ss:$8 sps:$4 sm:$0xff]  }
 0x342   : > { %v7515_v5 = vpop.f32.mrf.mxu1  ;;  %7760 = vmatmul.mubr.bf16.vlgmr.msra.gmra.mxu1 %v1723_v61  ;;  %v7475_v60 = vadd.f32 %v7474_v3, %v12472_v52  ;;  %7769 = vmatpush1.bf16.msra.mxu0 %v10623_v30  ;;  %v10692_v61 = vld [vmem:[%s11613_s20 + $0x17c0] ss:$8 sps:$4 sm:$0xff]   ;;  %v10697_v30 = vld [vmem:[%s11613_s20 + $0x16b4] ss:$8 sps:$4 sm:$0xff]  }
 0x343   : > { %7810 = vmatpush1.bf16.msra.mxu1 %v10626_v0  ;;  %v7476_v41 = vpop.f32.mrf.mxu0  ;;  %7770 = vmatprep.subr.bf16.mxu0 %v10631_v16  ;;  %v10700_v0 = vld [vmem:[%s11613_s20 + $0x17b4] ss:$8 sps:$4 sm:$0xff]   ;;  %v10695_v16 = vld [vmem:[%s11613_s20 + $0x16b0] ss:$8 sps:$4 sm:$0xff]   ;;  %v301_v3 = vld [vmem:[%s11605_s29 + $0x60] sm:$0xff] }
 0x344   : > { %v7517_v9 = vpop.f32.mrf.mxu1  ;;  %7811 = vmatprep.subr.bf16.mxu1 %v10634_v1  ;;  %v12557_v11 = vadd.f32 %v7515_v5, %v7475_v60  ;;  %v7477_v12 = vadd.f32 %v7476_v41, %v12475_v55  ;;  %7800 = vmatprep.mubr.bf16.mxu0 %v1726_v57  ;;  %v10643_v55 = vld [vmem:[%s11613_s20 + $0x1644] ss:$8 sps:$4 sm:$0xff]   ;;  %v10698_v1 = vld [vmem:[%s11613_s20 + $0x17b0] ss:$8 sps:$4 sm:$0xff]   ;;  %v10701_v5 = vld [vmem:[%s11613_s20 + $0x16a0] ss:$8 sps:$4 sm:$0xff]   ;;  %v1549_v41 = vcombine.high %v301_v3, %v301_v3 }
 0x345   : > { %7841 = vmatprep.mubr.bf16.mxu1 %v1728_v2  ;;  %v7478_v52 = vpop.f32.mrf.mxu0  ;;  %v10703_v57 = vld [vmem:[%s11613_s20 + $0x16a4] ss:$8 sps:$4 sm:$0xff]   ;;  %v10704_v60 = vld [vmem:[%s11613_s20 + $0x17a0] ss:$8 sps:$4 sm:$0xff]  }
 0x346   : > { %v7519_v13 = vpop.f32.mrf.mxu1  ;;  %v12560_v17 = vadd.f32 %v7517_v9, %v7477_v12  ;;  %7771 = vmatpush1.bf16.msra.mxu0 %v10629_v24  ;;  %v10706_v2 = vld [vmem:[%s11613_s20 + $0x17a4] ss:$8 sps:$4 sm:$0xff]   ;;  %v10709_v24 = vld [vmem:[%s11613_s20 + $0x1694] ss:$8 sps:$4 sm:$0xff]   ;;  %v10707_v9 = vld [vmem:[%s11613_s20 + $0x1690] ss:$8 sps:$4 sm:$0xff]   ;;  %v12616_v52 = vrot.slane %v301_v3, %v11680_v50 }
 0x347   : > { %7812 = vmatpush1.bf16.msra.mxu1 %v10632_v39  ;;  %v7479_v33 = vpop.f32.mrf.mxu0  ;;  %7772 = vmatprep.subr.bf16.mxu0 %v10637_v10  ;;  %v10712_v39 = vld [vmem:[%s11613_s20 + $0x1794] ss:$8 sps:$4 sm:$0xff]   ;;  %v10710_v10 = vld [vmem:[%s11613_s20 + $0x1790] ss:$8 sps:$4 sm:$0xff]   ;;  %v10718_v12 = vld [vmem:[%s11613_s20 + $0x1784] ss:$8 sps:$4 sm:$0xff]   ;;  %v12619_v13 = vrot.slane %v1549_v41, %v11680_v50 }
 0x348   : > { %v7520_v19 = vpop.f32.mrf.mxu1  ;;  %7813 = vmatprep.subr.bf16.mxu1 %v10640_v48  ;;  %v10715_v48 = vld [vmem:[%s11613_s20 + $0x1684] ss:$8 sps:$4 sm:$0xff]   ;;  %v10722_v33 = vld [vmem:[%s11613_s20 + $0x1874] ss:$8 sps:$4 sm:$0xff]   ;;  %v10762_v3 = vld [vmem:[%s11613_s20 + $0x1800] ss:$8 sps:$4 sm:$0xff]  }
 0x349   : > { %v10725_v19 = vld [vmem:[%s11613_s20 + $0x1974] ss:$8 sps:$4 sm:$0xff]   ;;  %v10771_v41 = vld [vmem:[%s11613_s20 + $0x19f0] ss:$8 sps:$4 sm:$0xff]  }
 0x34a   : > { %7773 = vmatpush1.bf16.msra.mxu0 %v10635_v18  ;;  %v10713_v18 = vld [vmem:[%s11613_s20 + $0x1680] ss:$8 sps:$4 sm:$0xff]  }
 0x34b   : > { %7814 = vmatpush1.bf16.msra.mxu1 %v10638_v32  ;;  %7774 = vmatprep.subr.bf16.mxu0 %v10643_v55  ;;  %v10716_v32 = vld [vmem:[%s11613_s20 + $0x1780] ss:$8 sps:$4 sm:$0xff]   ;;  %v1564_v55 = vcombine.high %v12616_v52, %v12616_v52 }
 0x34c   : > { %7815 = vmatprep.subr.bf16.mxu1 %v10646_v20  ;;  %v1565_v20 = vcombine.high %v12619_v13, %v12619_v13 }
 0x34e   : > { %7775 = vmatpush1.bf16.msra.mxu0 %v10641_v21  ;;  %v1725_v21 = vpack.c.bf16 %v12531_v22, %v12531_v22 }
 0x34f   : > { %7816 = vmatpush1.bf16.msra.mxu1 %v10644_v23  ;;  %7776 = vmatprep.subr.bf16.mxu0 %v10649_v26  ;;  %v1727_v23 = vpack.c.bf16 %v12534_v54, %v12534_v54  ;;  %v10720_v26 = vld [vmem:[%s11613_s20 + $0x1870] ss:$8 sps:$4 sm:$0xff]   ;;  %v10726_v54 = vld [vmem:[%s11613_s20 + $0x1860] ss:$8 sps:$4 sm:$0xff]  }
 0x350   : > { %7817 = vmatprep.subr.bf16.mxu1 %v10652_v45  ;;  %v10723_v45 = vld [vmem:[%s11613_s20 + $0x1970] ss:$8 sps:$4 sm:$0xff]  }
 0x352   : > { %7777 = vmatpush1.bf16.msra.mxu0 %v10647_v46  ;;  %v10728_v46 = vld [vmem:[%s11613_s20 + $0x1864] ss:$8 sps:$4 sm:$0xff]  }
 0x353   : > { %7818 = vmatpush1.bf16.msra.mxu1 %v10650_v27  ;;  %7778 = vmatprep.subr.bf16.mxu0 %v10655_v15  ;;  %v10731_v27 = vld [vmem:[%s11613_s20 + $0x1964] ss:$8 sps:$4 sm:$0xff]   ;;  %v1730_v15 = vpack.c.bf16 %v1564_v55, %v1564_v55 }
 0x354   : > { %7819 = vmatprep.subr.bf16.mxu1 %v10658_v28  ;;  %v1732_v28 = vpack.c.bf16 %v1565_v20, %v1565_v20  ;;  %v10788_v55 = vld [vmem:[%s11613_s20 + $0x18c4] ss:$8 sps:$4 sm:$0xff]  }
 0x355   : > { %v10791_v20 = vld [vmem:[%s11613_s20 + $0x19c4] ss:$8 sps:$4 sm:$0xff]  }
 0x356   : > { %7779 = vmatpush1.bf16.msra.mxu0 %v10653_v29 }
 0x357   : > { %7820 = vmatpush1.bf16.msra.mxu1 %v10656_v31  ;;  %7780 = vmatprep.subr.bf16.mxu0 %v10661_v4  ;;  %v10729_v4 = vld [vmem:[%s11613_s20 + $0x1960] ss:$8 sps:$4 sm:$0xff]  }
 0x358   : > { %7821 = vmatprep.subr.bf16.mxu1 %v10664_v34 }
 0x35a   : > { %7781 = vmatpush1.bf16.msra.mxu0 %v10659_v58 }
 0x35b   : > { %7822 = vmatpush1.bf16.msra.mxu1 %v10662_v35  ;;  %7782 = vmatprep.subr.bf16.mxu0 %v10667_v8  ;;  %v10734_v35 = vld [vmem:[%s11613_s20 + $0x1854] ss:$8 sps:$4 sm:$0xff]  }
 0x35c   : > { %7823 = vmatprep.subr.bf16.mxu1 %v10670_v37  ;;  %v10737_v8 = vld [vmem:[%s11613_s20 + $0x1954] ss:$8 sps:$4 sm:$0xff]  }
 0x35e   : > { %7783 = vmatpush1.bf16.msra.mxu0 %v10665_v38 }
 0x35f   : > { %7824 = vmatpush1.bf16.msra.mxu1 %v10668_v43  ;;  %7784 = vmatprep.subr.bf16.mxu0 %v10673_v62 }
 0x360   : > { %7825 = vmatprep.subr.bf16.mxu1 %v10676_v63  ;;  %v10732_v63 = vld [vmem:[%s11613_s20 + $0x1850] ss:$8 sps:$4 sm:$0xff]  }
 0x362   : > { %7785 = vmatpush2.bf16.msra.mxu0 %v10671_v42  ;;  %v10735_v42 = vld [vmem:[%s11613_s20 + $0x1950] ss:$8 sps:$4 sm:$0xff]  }
 0x363   : > { %7826 = vmatpush2.bf16.msra.mxu1 %v10674_v47  ;;  %7786 = vmatprep.subr.bf16.mxu0 %v10679_v49 }
 0x364   : > { %7827 = vmatprep.subr.bf16.mxu1 %v10682_v51  ;;  %v10743_v51 = vld [vmem:[%s11613_s20 + $0x1944] ss:$8 sps:$4 sm:$0xff]  }
 0x366   : > { %7787 = vmatpush2.bf16.msra.mxu0 %v10677_v14  ;;  %v10738_v14 = vld [vmem:[%s11613_s20 + $0x1840] ss:$8 sps:$4 sm:$0xff]  }
 0x367   : > { %7828 = vmatpush2.bf16.msra.mxu1 %v10680_v53  ;;  %7788 = vmatprep.subr.bf16.mxu0 %v10685_v56  ;;  %v10741_v53 = vld [vmem:[%s11613_s20 + $0x1940] ss:$8 sps:$4 sm:$0xff]   ;;  %v10746_v56 = vld [vmem:[%s11613_s20 + $0x1834] ss:$8 sps:$4 sm:$0xff]  }
 0x368   : > { %7829 = vmatprep.subr.bf16.mxu1 %v10688_v6  ;;  %v10749_v6 = vld [vmem:[%s11613_s20 + $0x1934] ss:$8 sps:$4 sm:$0xff]  }
 0x36a   : > { %7789 = vmatpush2.bf16.msra.mxu0 %v10683_v7  ;;  %v10744_v7 = vld [vmem:[%s11613_s20 + $0x1830] ss:$8 sps:$4 sm:$0xff]  }
 0x36b   : > { %7830 = vmatpush2.bf16.msra.mxu1 %v10686_v36  ;;  %7790 = vmatprep.subr.bf16.mxu0 %v10691_v25  ;;  %v10747_v36 = vld [vmem:[%s11613_s20 + $0x1930] ss:$8 sps:$4 sm:$0xff]   ;;  %v10752_v25 = vld [vmem:[%s11613_s20 + $0x1824] ss:$8 sps:$4 sm:$0xff]  }
 0x36c   : > { %7831 = vmatprep.subr.bf16.mxu1 %v10694_v59  ;;  %v10755_v59 = vld [vmem:[%s11613_s20 + $0x1924] ss:$8 sps:$4 sm:$0xff]  }
 0x36e   : > { %7791 = vmatpush2.bf16.msra.mxu0 %v10689_v40  ;;  %v10750_v40 = vld [vmem:[%s11613_s20 + $0x1820] ss:$8 sps:$4 sm:$0xff]  }
 0x36f   : > { %7832 = vmatpush2.bf16.msra.mxu1 %v10692_v61  ;;  %7792 = vmatprep.subr.bf16.mxu0 %v10697_v30  ;;  %v10753_v61 = vld [vmem:[%s11613_s20 + $0x1920] ss:$8 sps:$4 sm:$0xff]   ;;  %v10758_v30 = vld [vmem:[%s11613_s20 + $0x1814] ss:$8 sps:$4 sm:$0xff]  }
 0x370   : > { %7833 = vmatprep.subr.bf16.mxu1 %v10700_v0  ;;  %v10761_v0 = vld [vmem:[%s11613_s20 + $0x1914] ss:$8 sps:$4 sm:$0xff]  }
 0x372   : > { %7793 = vmatpush2.bf16.msra.mxu0 %v10695_v16  ;;  %v10756_v16 = vld [vmem:[%s11613_s20 + $0x1810] ss:$8 sps:$4 sm:$0xff]  }
 0x373   : > { %7834 = vmatpush2.bf16.msra.mxu1 %v10698_v1  ;;  %7794 = vmatprep.subr.bf16.mxu0 %v10703_v57  ;;  %v10759_v1 = vld [vmem:[%s11613_s20 + $0x1910] ss:$8 sps:$4 sm:$0xff]   ;;  %v10764_v57 = vld [vmem:[%s11613_s20 + $0x1804] ss:$8 sps:$4 sm:$0xff]  }
 0x374   : > { %7835 = vmatprep.subr.bf16.mxu1 %v10706_v2  ;;  %v10767_v2 = vld [vmem:[%s11613_s20 + $0x1904] ss:$8 sps:$4 sm:$0xff]  }
 0x376   : > { %7795 = vmatpush2.bf16.msra.mxu0 %v10701_v5  ;;  %v10765_v5 = vld [vmem:[%s11613_s20 + $0x1900] ss:$8 sps:$4 sm:$0xff]  }
 0x377   : > { %7836 = vmatpush2.bf16.msra.mxu1 %v10704_v60  ;;  %7796 = vmatprep.subr.bf16.mxu0 %v10709_v24  ;;  %v10770_v60 = vld [vmem:[%s11613_s20 + $0x18f4] ss:$8 sps:$4 sm:$0xff]  }
 0x378   : > { %7837 = vmatprep.subr.bf16.mxu1 %v10712_v39  ;;  %v10773_v24 = vld [vmem:[%s11613_s20 + $0x19f4] ss:$8 sps:$4 sm:$0xff]   ;;  %v10768_v39 = vld [vmem:[%s11613_s20 + $0x18f0] ss:$8 sps:$4 sm:$0xff]  }
 0x37a   : > { %7797 = vmatpush2.bf16.msra.mxu0 %v10707_v9  ;;  %v10776_v9 = vld [vmem:[%s11613_s20 + $0x18e4] ss:$8 sps:$4 sm:$0xff]  }
 0x37b   : > { %7838 = vmatpush2.bf16.msra.mxu1 %v10710_v10  ;;  %7798 = vmatprep.subr.bf16.mxu0 %v10715_v48  ;;  %v10779_v10 = vld [vmem:[%s11613_s20 + $0x19e4] ss:$8 sps:$4 sm:$0xff]   ;;  %v10774_v48 = vld [vmem:[%s11613_s20 + $0x18e0] ss:$8 sps:$4 sm:$0xff]  }
 0x37c   : > { %7839 = vmatprep.subr.bf16.mxu1 %v10718_v12  ;;  %v10777_v12 = vld [vmem:[%s11613_s20 + $0x19e0] ss:$8 sps:$4 sm:$0xff]  }
 0x37e   : > { %7799 = vmatpush2.bf16.msra.mxu0 %v10713_v18  ;;  %v10782_v18 = vld [vmem:[%s11613_s20 + $0x18d4] ss:$8 sps:$4 sm:$0xff]  }
 0x37f   : > { %7840 = vmatpush2.bf16.msra.mxu1 %v10716_v32  ;;  %7850 = vmatprep.subr.bf16.mxu0 %v10722_v33  ;;  %v10785_v32 = vld [vmem:[%s11613_s20 + $0x19d4] ss:$8 sps:$4 sm:$0xff]   ;;  %v10780_v33 = vld [vmem:[%s11613_s20 + $0x18d0] ss:$8 sps:$4 sm:$0xff]  }
 0x380   : > { %7891 = vmatprep.subr.bf16.mxu1 %v10725_v19  ;;  %v10783_v19 = vld [vmem:[%s11613_s20 + $0x19d0] ss:$8 sps:$4 sm:$0xff]  }
 0x381   : > { %v7556_v29 = vpop.f32.mrf.mxu0  ;;  %7801 = vmatmul.mubr.bf16.vlgmr.msra.gmra.mxu0 %v1725_v21  ;;  %v10786_v21 = vld [vmem:[%s11613_s20 + $0x18c0] ss:$8 sps:$4 sm:$0xff]  }
 0x382   : > { %v7597_v31 = vpop.f32.mrf.mxu1  ;;  %7842 = vmatmul.mubr.bf16.vlgmr.msra.gmra.mxu1 %v1727_v23  ;;  %v7557_v22 = vadd.f32 %v7556_v29, %v12557_v11  ;;  %7851 = vmatpush1.bf16.msra.mxu0 %v10720_v26  ;;  %v10789_v23 = vld [vmem:[%s11613_s20 + $0x19c0] ss:$8 sps:$4 sm:$0xff]   ;;  %v10794_v26 = vld [vmem:[%s11613_s20 + $0x18b4] ss:$8 sps:$4 sm:$0xff]  }
 0x383   : > { %7892 = vmatpush1.bf16.msra.mxu1 %v10723_v45  ;;  %v7558_v34 = vpop.f32.mrf.mxu0  ;;  %7852 = vmatprep.subr.bf16.mxu0 %v10728_v46  ;;  %v10797_v45 = vld [vmem:[%s11613_s20 + $0x19b4] ss:$8 sps:$4 sm:$0xff]   ;;  %v10792_v46 = vld [vmem:[%s11613_s20 + $0x18b0] ss:$8 sps:$4 sm:$0xff]   ;;  %v302_v29 = vld [vmem:[%s11605_s29 + $0x68] sm:$0xff] }
 0x384   : > { %v7599_v58 = vpop.f32.mrf.mxu1  ;;  %7893 = vmatprep.subr.bf16.mxu1 %v10731_v27  ;;  %v12642_v37 = vadd.f32 %v7597_v31, %v7557_v22  ;;  %v7559_v38 = vadd.f32 %v7558_v34, %v12560_v17  ;;  %7882 = vmatprep.mubr.bf16.mxu0 %v1730_v15  ;;  %v10740_v17 = vld [vmem:[%s11613_s20 + $0x1844] ss:$8 sps:$4 sm:$0xff]   ;;  %v10795_v27 = vld [vmem:[%s11613_s20 + $0x19b0] ss:$8 sps:$4 sm:$0xff]   ;;  %v10798_v31 = vld [vmem:[%s11613_s20 + $0x18a0] ss:$8 sps:$4 sm:$0xff]   ;;  %v1566_v34 = vcombine.high %v302_v29, %v302_v29 }
 0x385   : > { %7923 = vmatprep.mubr.bf16.mxu1 %v1732_v28  ;;  %v7560_v11 = vpop.f32.mrf.mxu0  ;;  %v10800_v15 = vld [vmem:[%s11613_s20 + $0x18a4] ss:$8 sps:$4 sm:$0xff]   ;;  %v10801_v22 = vld [vmem:[%s11613_s20 + $0x19a0] ss:$8 sps:$4 sm:$0xff]  }
 0x386   : > { %v7601_v43 = vpop.f32.mrf.mxu1  ;;  %v12645_v62 = vadd.f32 %v7599_v58, %v7559_v38  ;;  %7853 = vmatpush1.bf16.msra.mxu0 %v10726_v54  ;;  %v10803_v28 = vld [vmem:[%s11613_s20 + $0x19a4] ss:$8 sps:$4 sm:$0xff]   ;;  %v10806_v54 = vld [vmem:[%s11613_s20 + $0x1894] ss:$8 sps:$4 sm:$0xff]   ;;  %v10804_v58 = vld [vmem:[%s11613_s20 + $0x1890] ss:$8 sps:$4 sm:$0xff]   ;;  %v12701_v11 = vrot.slane %v302_v29, %v11680_v50 }
 0x387   : > { %7894 = vmatpush1.bf16.msra.mxu1 %v10729_v4  ;;  %v7561_v47 = vpop.f32.mrf.mxu0  ;;  %7854 = vmatprep.subr.bf16.mxu0 %v10734_v35  ;;  %v10809_v4 = vld [vmem:[%s11613_s20 + $0x1994] ss:$8 sps:$4 sm:$0xff]   ;;  %v10807_v35 = vld [vmem:[%s11613_s20 + $0x1990] ss:$8 sps:$4 sm:$0xff]   ;;  %v10815_v38 = vld [vmem:[%s11613_s20 + $0x1984] ss:$8 sps:$4 sm:$0xff]   ;;  %v12704_v43 = vrot.slane %v1566_v34, %v11680_v50 }
 0x388   : > { %v7602_v49 = vpop.f32.mrf.mxu1  ;;  %7895 = vmatprep.subr.bf16.mxu1 %v10737_v8  ;;  %v10812_v8 = vld [vmem:[%s11613_s20 + $0x1884] ss:$8 sps:$4 sm:$0xff]   ;;  %v10819_v47 = vld [vmem:[%s11613_s20 + $0x1a74] ss:$8 sps:$4 sm:$0xff]   ;;  %v10859_v29 = vld [vmem:[%s11613_s20 + $0x1a00] ss:$8 sps:$4 sm:$0xff]  }
 0x389   : > { %v10822_v49 = vld [vmem:[%s11613_s20 + $0x1b74] ss:$8 sps:$4 sm:$0xff]   ;;  %v10868_v34 = vld [vmem:[%s11613_s20 + $0x1bf0] ss:$8 sps:$4 sm:$0xff]  }
 0x38a   : > { %7855 = vmatpush1.bf16.msra.mxu0 %v10732_v63  ;;  %v10810_v63 = vld [vmem:[%s11613_s20 + $0x1880] ss:$8 sps:$4 sm:$0xff]  }
 0x38b   : > { %7896 = vmatpush1.bf16.msra.mxu1 %v10735_v42  ;;  %7856 = vmatprep.subr.bf16.mxu0 %v10740_v17  ;;  %v10813_v42 = vld [vmem:[%s11613_s20 + $0x1980] ss:$8 sps:$4 sm:$0xff]   ;;  %v1581_v17 = vcombine.high %v12701_v11, %v12701_v11 }
 0x38c   : > { %7897 = vmatprep.subr.bf16.mxu1 %v10743_v51  ;;  %v1582_v51 = vcombine.high %v12704_v43, %v12704_v43 }
 0x38e   : > { %7857 = vmatpush1.bf16.msra.mxu0 %v10738_v14  ;;  %v1729_v14 = vpack.c.bf16 %v12616_v52, %v12616_v52 }
 0x38f   : > { %7898 = vmatpush1.bf16.msra.mxu1 %v10741_v53  ;;  %7858 = vmatprep.subr.bf16.mxu0 %v10746_v56  ;;  %v1731_v53 = vpack.c.bf16 %v12619_v13, %v12619_v13  ;;  %v10817_v56 = vld [vmem:[%s11613_s20 + $0x1a70] ss:$8 sps:$4 sm:$0xff]   ;;  %v10823_v13 = vld [vmem:[%s11613_s20 + $0x1a60] ss:$8 sps:$4 sm:$0xff]  }
 0x390   : > { %7899 = vmatprep.subr.bf16.mxu1 %v10749_v6  ;;  %v10820_v6 = vld [vmem:[%s11613_s20 + $0x1b70] ss:$8 sps:$4 sm:$0xff]  }
 0x392   : > { %7859 = vmatpush1.bf16.msra.mxu0 %v10744_v7  ;;  %v10825_v7 = vld [vmem:[%s11613_s20 + $0x1a64] ss:$8 sps:$4 sm:$0xff]  }
 0x393   : > { %7900 = vmatpush1.bf16.msra.mxu1 %v10747_v36  ;;  %7860 = vmatprep.subr.bf16.mxu0 %v10752_v25  ;;  %v10828_v36 = vld [vmem:[%s11613_s20 + $0x1b64] ss:$8 sps:$4 sm:$0xff]   ;;  %v1734_v25 = vpack.c.bf16 %v1581_v17, %v1581_v17 }
 0x394   : > { %7901 = vmatprep.subr.bf16.mxu1 %v10755_v59  ;;  %v1736_v59 = vpack.c.bf16 %v1582_v51, %v1582_v51  ;;  %v10885_v17 = vld [vmem:[%s11613_s20 + $0x1ac4] ss:$8 sps:$4 sm:$0xff]  }
 0x395   : > { %v10888_v51 = vld [vmem:[%s11613_s20 + $0x1bc4] ss:$8 sps:$4 sm:$0xff]  }
 0x396   : > { %7861 = vmatpush1.bf16.msra.mxu0 %v10750_v40 }
 0x397   : > { %7902 = vmatpush1.bf16.msra.mxu1 %v10753_v61  ;;  %7862 = vmatprep.subr.bf16.mxu0 %v10758_v30  ;;  %v10826_v30 = vld [vmem:[%s11613_s20 + $0x1b60] ss:$8 sps:$4 sm:$0xff]  }
 0x398   : > { %7903 = vmatprep.subr.bf16.mxu1 %v10761_v0 }
 0x39a   : > { %7863 = vmatpush1.bf16.msra.mxu0 %v10756_v16 }
 0x39b   : > { %7904 = vmatpush1.bf16.msra.mxu1 %v10759_v1  ;;  %7864 = vmatprep.subr.bf16.mxu0 %v10764_v57  ;;  %v10831_v1 = vld [vmem:[%s11613_s20 + $0x1a54] ss:$8 sps:$4 sm:$0xff]  }
 0x39c   : > { %7905 = vmatprep.subr.bf16.mxu1 %v10767_v2  ;;  %v10834_v57 = vld [vmem:[%s11613_s20 + $0x1b54] ss:$8 sps:$4 sm:$0xff]  }
 0x39e   : > { %7865 = vmatpush1.bf16.msra.mxu0 %v10762_v3 }
 0x39f   : > { %7906 = vmatpush1.bf16.msra.mxu1 %v10765_v5  ;;  %7866 = vmatprep.subr.bf16.mxu0 %v10770_v60 }
 0x3a0   : > { %7907 = vmatprep.subr.bf16.mxu1 %v10773_v24  ;;  %v10829_v24 = vld [vmem:[%s11613_s20 + $0x1a50] ss:$8 sps:$4 sm:$0xff]  }
 0x3a2   : > { %7867 = vmatpush2.bf16.msra.mxu0 %v10768_v39  ;;  %v10832_v39 = vld [vmem:[%s11613_s20 + $0x1b50] ss:$8 sps:$4 sm:$0xff]  }
 0x3a3   : > { %7908 = vmatpush2.bf16.msra.mxu1 %v10771_v41  ;;  %7868 = vmatprep.subr.bf16.mxu0 %v10776_v9 }
 0x3a4   : > { %7909 = vmatprep.subr.bf16.mxu1 %v10779_v10  ;;  %v10840_v10 = vld [vmem:[%s11613_s20 + $0x1b44] ss:$8 sps:$4 sm:$0xff]  }
 0x3a6   : > { %7869 = vmatpush2.bf16.msra.mxu0 %v10774_v48  ;;  %v10835_v48 = vld [vmem:[%s11613_s20 + $0x1a40] ss:$8 sps:$4 sm:$0xff]  }
 0x3a7   : > { %7910 = vmatpush2.bf16.msra.mxu1 %v10777_v12  ;;  %7870 = vmatprep.subr.bf16.mxu0 %v10782_v18  ;;  %v10838_v12 = vld [vmem:[%s11613_s20 + $0x1b40] ss:$8 sps:$4 sm:$0xff]   ;;  %v10843_v18 = vld [vmem:[%s11613_s20 + $0x1a34] ss:$8 sps:$4 sm:$0xff]  }
 0x3a8   : > { %7911 = vmatprep.subr.bf16.mxu1 %v10785_v32  ;;  %v10846_v32 = vld [vmem:[%s11613_s20 + $0x1b34] ss:$8 sps:$4 sm:$0xff]  }
 0x3aa   : > { %7871 = vmatpush2.bf16.msra.mxu0 %v10780_v33  ;;  %v10841_v33 = vld [vmem:[%s11613_s20 + $0x1a30] ss:$8 sps:$4 sm:$0xff]  }
 0x3ab   : > { %7912 = vmatpush2.bf16.msra.mxu1 %v10783_v19  ;;  %7872 = vmatprep.subr.bf16.mxu0 %v10788_v55  ;;  %v10844_v19 = vld [vmem:[%s11613_s20 + $0x1b30] ss:$8 sps:$4 sm:$0xff]   ;;  %v10849_v55 = vld [vmem:[%s11613_s20 + $0x1a24] ss:$8 sps:$4 sm:$0xff]  }
 0x3ac   : > { %7913 = vmatprep.subr.bf16.mxu1 %v10791_v20  ;;  %v10852_v20 = vld [vmem:[%s11613_s20 + $0x1b24] ss:$8 sps:$4 sm:$0xff]  }
 0x3ae   : > { %7873 = vmatpush2.bf16.msra.mxu0 %v10786_v21  ;;  %v10847_v21 = vld [vmem:[%s11613_s20 + $0x1a20] ss:$8 sps:$4 sm:$0xff]  }
 0x3af   : > { %7914 = vmatpush2.bf16.msra.mxu1 %v10789_v23  ;;  %7874 = vmatprep.subr.bf16.mxu0 %v10794_v26  ;;  %v10850_v23 = vld [vmem:[%s11613_s20 + $0x1b20] ss:$8 sps:$4 sm:$0xff]   ;;  %v10855_v26 = vld [vmem:[%s11613_s20 + $0x1a14] ss:$8 sps:$4 sm:$0xff]  }
 0x3b0   : > { %7915 = vmatprep.subr.bf16.mxu1 %v10797_v45  ;;  %v10858_v45 = vld [vmem:[%s11613_s20 + $0x1b14] ss:$8 sps:$4 sm:$0xff]  }
 0x3b2   : > { %7875 = vmatpush2.bf16.msra.mxu0 %v10792_v46  ;;  %v10853_v46 = vld [vmem:[%s11613_s20 + $0x1a10] ss:$8 sps:$4 sm:$0xff]  }
 0x3b3   : > { %7916 = vmatpush2.bf16.msra.mxu1 %v10795_v27  ;;  %7876 = vmatprep.subr.bf16.mxu0 %v10800_v15  ;;  %v10856_v27 = vld [vmem:[%s11613_s20 + $0x1b10] ss:$8 sps:$4 sm:$0xff]   ;;  %v10861_v15 = vld [vmem:[%s11613_s20 + $0x1a04] ss:$8 sps:$4 sm:$0xff]  }
 0x3b4   : > { %7917 = vmatprep.subr.bf16.mxu1 %v10803_v28  ;;  %v10864_v28 = vld [vmem:[%s11613_s20 + $0x1b04] ss:$8 sps:$4 sm:$0xff]  }
 0x3b6   : > { %7877 = vmatpush2.bf16.msra.mxu0 %v10798_v31  ;;  %v10862_v31 = vld [vmem:[%s11613_s20 + $0x1b00] ss:$8 sps:$4 sm:$0xff]  }
 0x3b7   : > { %7918 = vmatpush2.bf16.msra.mxu1 %v10801_v22  ;;  %7878 = vmatprep.subr.bf16.mxu0 %v10806_v54  ;;  %v10867_v22 = vld [vmem:[%s11613_s20 + $0x1af4] ss:$8 sps:$4 sm:$0xff]  }
 0x3b8   : > { %7919 = vmatprep.subr.bf16.mxu1 %v10809_v4  ;;  %v10870_v54 = vld [vmem:[%s11613_s20 + $0x1bf4] ss:$8 sps:$4 sm:$0xff]   ;;  %v10865_v4 = vld [vmem:[%s11613_s20 + $0x1af0] ss:$8 sps:$4 sm:$0xff]  }
 0x3ba   : > { %7879 = vmatpush2.bf16.msra.mxu0 %v10804_v58  ;;  %v10873_v58 = vld [vmem:[%s11613_s20 + $0x1ae4] ss:$8 sps:$4 sm:$0xff]  }
 0x3bb   : > { %7920 = vmatpush2.bf16.msra.mxu1 %v10807_v35  ;;  %7880 = vmatprep.subr.bf16.mxu0 %v10812_v8  ;;  %v10876_v35 = vld [vmem:[%s11613_s20 + $0x1be4] ss:$8 sps:$4 sm:$0xff]   ;;  %v10871_v8 = vld [vmem:[%s11613_s20 + $0x1ae0] ss:$8 sps:$4 sm:$0xff]  }
 0x3bc   : > { %7921 = vmatprep.subr.bf16.mxu1 %v10815_v38  ;;  %v10874_v38 = vld [vmem:[%s11613_s20 + $0x1be0] ss:$8 sps:$4 sm:$0xff]  }
 0x3be   : > { %7881 = vmatpush2.bf16.msra.mxu0 %v10810_v63  ;;  %v10879_v63 = vld [vmem:[%s11613_s20 + $0x1ad4] ss:$8 sps:$4 sm:$0xff]  }
 0x3bf   : > { %7922 = vmatpush2.bf16.msra.mxu1 %v10813_v42  ;;  %7932 = vmatprep.subr.bf16.mxu0 %v10819_v47  ;;  %v10882_v42 = vld [vmem:[%s11613_s20 + $0x1bd4] ss:$8 sps:$4 sm:$0xff]   ;;  %v10877_v47 = vld [vmem:[%s11613_s20 + $0x1ad0] ss:$8 sps:$4 sm:$0xff]  }
 0x3c0   : > { %7973 = vmatprep.subr.bf16.mxu1 %v10822_v49  ;;  %v10880_v49 = vld [vmem:[%s11613_s20 + $0x1bd0] ss:$8 sps:$4 sm:$0xff]  }
 0x3c1   : > { %v7638_v40 = vpop.f32.mrf.mxu0  ;;  %7883 = vmatmul.mubr.bf16.vlgmr.msra.gmra.mxu0 %v1729_v14  ;;  %v10883_v14 = vld [vmem:[%s11613_s20 + $0x1ac0] ss:$8 sps:$4 sm:$0xff]  }
 0x3c2   : > { %v7679_v61 = vpop.f32.mrf.mxu1  ;;  %7924 = vmatmul.mubr.bf16.vlgmr.msra.gmra.mxu1 %v1731_v53  ;;  %v7639_v52 = vadd.f32 %v7638_v40, %v12642_v37  ;;  %7933 = vmatpush1.bf16.msra.mxu0 %v10817_v56  ;;  %v10886_v53 = vld [vmem:[%s11613_s20 + $0x1bc0] ss:$8 sps:$4 sm:$0xff]   ;;  %v10891_v56 = vld [vmem:[%s11613_s20 + $0x1ab4] ss:$8 sps:$4 sm:$0xff]  }
 0x3c3   : > { %7974 = vmatpush1.bf16.msra.mxu1 %v10820_v6  ;;  %v7640_v0 = vpop.f32.mrf.mxu0  ;;  %7934 = vmatprep.subr.bf16.mxu0 %v10825_v7  ;;  %v10894_v6 = vld [vmem:[%s11613_s20 + $0x1bb4] ss:$8 sps:$4 sm:$0xff]   ;;  %v10889_v7 = vld [vmem:[%s11613_s20 + $0x1ab0] ss:$8 sps:$4 sm:$0xff]  }
 0x3c4   : > { %v7681_v16 = vpop.f32.mrf.mxu1  ;;  %7975 = vmatprep.subr.bf16.mxu1 %v10828_v36  ;;  %v12727_v2 = vadd.f32 %v7679_v61, %v7639_v52  ;;  %v7641_v3 = vadd.f32 %v7640_v0, %v12645_v62  ;;  %7964 = vmatprep.mubr.bf16.mxu0 %v1734_v25  ;;  %v10837_v62 = vld [vmem:[%s11613_s20 + $0x1a44] ss:$8 sps:$4 sm:$0xff]   ;;  %v10892_v36 = vld [vmem:[%s11613_s20 + $0x1bb0] ss:$8 sps:$4 sm:$0xff]   ;;  %v10895_v61 = vld [vmem:[%s11613_s20 + $0x1aa0] ss:$8 sps:$4 sm:$0xff]  }
 0x3c5   : > { %8005 = vmatprep.mubr.bf16.mxu1 %v1736_v59  ;;  %v7642_v37 = vpop.f32.mrf.mxu0  ;;  %v10897_v25 = vld [vmem:[%s11613_s20 + $0x1aa4] ss:$8 sps:$4 sm:$0xff]   ;;  %v303_v40 = vld [vmem:[%s11605_s29 + $0x70] sm:$0xff]  ;;  %v10898_v52 = vld [vmem:[%s11613_s20 + $0x1ba0] ss:$8 sps:$4 sm:$0xff]  }
 0x3c6   : > { %v7683_v5 = vpop.f32.mrf.mxu1  ;;  %v12730_v60 = vadd.f32 %v7681_v16, %v7641_v3  ;;  %7935 = vmatpush1.bf16.msra.mxu0 %v10823_v13  ;;  %v10900_v59 = vld [vmem:[%s11613_s20 + $0x1ba4] ss:$8 sps:$4 sm:$0xff]   ;;  %v10903_v13 = vld [vmem:[%s11613_s20 + $0x1a94] ss:$8 sps:$4 sm:$0xff]   ;;  %v1583_v0 = vcombine.high %v303_v40, %v303_v40  ;;  %v10901_v16 = vld [vmem:[%s11613_s20 + $0x1a90] ss:$8 sps:$4 sm:$0xff]   ;;  %v12786_v37 = vrot.slane %v303_v40, %v11680_v50 }
 0x3c7   : > { %7976 = vmatpush1.bf16.msra.mxu1 %v10826_v30  ;;  %v7643_v41 = vpop.f32.mrf.mxu0  ;;  %7936 = vmatprep.subr.bf16.mxu0 %v10831_v1  ;;  %v10906_v30 = vld [vmem:[%s11613_s20 + $0x1b94] ss:$8 sps:$4 sm:$0xff]   ;;  %v10904_v1 = vld [vmem:[%s11613_s20 + $0x1b90] ss:$8 sps:$4 sm:$0xff]   ;;  %v10912_v3 = vld [vmem:[%s11613_s20 + $0x1b84] ss:$8 sps:$4 sm:$0xff]  }
 0x3c8   : > { %v7684_v9 = vpop.f32.mrf.mxu1  ;;  %7977 = vmatprep.subr.bf16.mxu1 %v10834_v57  ;;  %v10909_v57 = vld [vmem:[%s11613_s20 + $0x1a84] ss:$8 sps:$4 sm:$0xff]   ;;  %v12789_v5 = vrot.slane %v1583_v0, %v11680_v50  ;;  %v10916_v41 = vld [vmem:[%s11613_s20 + $0x1c74] ss:$8 sps:$4 sm:$0xff]   ;;  %v10956_v40 = vld [vmem:[%s11613_s20 + $0x1c00] ss:$8 sps:$4 sm:$0xff]  }
 0x3c9   : > { %v10919_v9 = vld [vmem:[%s11613_s20 + $0x1d74] ss:$8 sps:$4 sm:$0xff]   ;;  %v10965_v0 = vld [vmem:[%s11613_s20 + $0x1df0] ss:$8 sps:$4 sm:$0xff]  }
 0x3ca   : > { %7937 = vmatpush1.bf16.msra.mxu0 %v10829_v24  ;;  %v10907_v24 = vld [vmem:[%s11613_s20 + $0x1a80] ss:$8 sps:$4 sm:$0xff]  }
 0x3cb   : > { %7978 = vmatpush1.bf16.msra.mxu1 %v10832_v39  ;;  %7938 = vmatprep.subr.bf16.mxu0 %v10837_v62  ;;  %v10910_v39 = vld [vmem:[%s11613_s20 + $0x1b80] ss:$8 sps:$4 sm:$0xff]   ;;  %v1598_v62 = vcombine.high %v12786_v37, %v12786_v37 }
 0x3cc   : > { %7979 = vmatprep.subr.bf16.mxu1 %v10840_v10  ;;  %v1599_v10 = vcombine.high %v12789_v5, %v12789_v5 }
 0x3ce   : > { %7939 = vmatpush1.bf16.msra.mxu0 %v10835_v48  ;;  %v1733_v48 = vpack.c.bf16 %v12701_v11, %v12701_v11 }
 0x3cf   : > { %7980 = vmatpush1.bf16.msra.mxu1 %v10838_v12  ;;  %7940 = vmatprep.subr.bf16.mxu0 %v10843_v18  ;;  %v1735_v12 = vpack.c.bf16 %v12704_v43, %v12704_v43  ;;  %v10914_v18 = vld [vmem:[%s11613_s20 + $0x1c70] ss:$8 sps:$4 sm:$0xff]   ;;  %v10920_v43 = vld [vmem:[%s11613_s20 + $0x1c60] ss:$8 sps:$4 sm:$0xff]  }
 0x3d0   : > { %7981 = vmatprep.subr.bf16.mxu1 %v10846_v32  ;;  %v10917_v32 = vld [vmem:[%s11613_s20 + $0x1d70] ss:$8 sps:$4 sm:$0xff]  }
 0x3d2   : > { %7941 = vmatpush1.bf16.msra.mxu0 %v10841_v33  ;;  %v10922_v33 = vld [vmem:[%s11613_s20 + $0x1c64] ss:$8 sps:$4 sm:$0xff]  }
 0x3d3   : > { %7982 = vmatpush1.bf16.msra.mxu1 %v10844_v19  ;;  %7942 = vmatprep.subr.bf16.mxu0 %v10849_v55  ;;  %v10925_v19 = vld [vmem:[%s11613_s20 + $0x1d64] ss:$8 sps:$4 sm:$0xff]   ;;  %v1738_v55 = vpack.c.bf16 %v1598_v62, %v1598_v62 }
 0x3d4   : > { %7983 = vmatprep.subr.bf16.mxu1 %v10852_v20  ;;  %v1740_v20 = vpack.c.bf16 %v1599_v10, %v1599_v10  ;;  %v10982_v62 = vld [vmem:[%s11613_s20 + $0x1cc4] ss:$8 sps:$4 sm:$0xff]  }
 0x3d5   : > { %v10985_v10 = vld [vmem:[%s11613_s20 + $0x1dc4] ss:$8 sps:$4 sm:$0xff]  }
 0x3d6   : > { %7943 = vmatpush1.bf16.msra.mxu0 %v10847_v21 }
 0x3d7   : > { %7984 = vmatpush1.bf16.msra.mxu1 %v10850_v23  ;;  %7944 = vmatprep.subr.bf16.mxu0 %v10855_v26  ;;  %v10923_v26 = vld [vmem:[%s11613_s20 + $0x1d60] ss:$8 sps:$4 sm:$0xff]  }
 0x3d8   : > { %7985 = vmatprep.subr.bf16.mxu1 %v10858_v45 }
 0x3da   : > { %7945 = vmatpush1.bf16.msra.mxu0 %v10853_v46 }
 0x3db   : > { %7986 = vmatpush1.bf16.msra.mxu1 %v10856_v27  ;;  %7946 = vmatprep.subr.bf16.mxu0 %v10861_v15  ;;  %v10928_v27 = vld [vmem:[%s11613_s20 + $0x1c54] ss:$8 sps:$4 sm:$0xff]  }
 0x3dc   : > { %7987 = vmatprep.subr.bf16.mxu1 %v10864_v28  ;;  %v10931_v15 = vld [vmem:[%s11613_s20 + $0x1d54] ss:$8 sps:$4 sm:$0xff]  }
 0x3de   : > { %7947 = vmatpush1.bf16.msra.mxu0 %v10859_v29 }
 0x3df   : > { %7988 = vmatpush1.bf16.msra.mxu1 %v10862_v31  ;;  %7948 = vmatprep.subr.bf16.mxu0 %v10867_v22 }
 0x3e0   : > { %7989 = vmatprep.subr.bf16.mxu1 %v10870_v54  ;;  %v10926_v54 = vld [vmem:[%s11613_s20 + $0x1c50] ss:$8 sps:$4 sm:$0xff]  }
 0x3e2   : > { %7949 = vmatpush2.bf16.msra.mxu0 %v10865_v4  ;;  %v10929_v4 = vld [vmem:[%s11613_s20 + $0x1d50] ss:$8 sps:$4 sm:$0xff]  }
 0x3e3   : > { %7990 = vmatpush2.bf16.msra.mxu1 %v10868_v34  ;;  %7950 = vmatprep.subr.bf16.mxu0 %v10873_v58 }
 0x3e4   : > { %7991 = vmatprep.subr.bf16.mxu1 %v10876_v35  ;;  %v10937_v35 = vld [vmem:[%s11613_s20 + $0x1d44] ss:$8 sps:$4 sm:$0xff]  }
 0x3e6   : > { %7951 = vmatpush2.bf16.msra.mxu0 %v10871_v8  ;;  %v10932_v8 = vld [vmem:[%s11613_s20 + $0x1c40] ss:$8 sps:$4 sm:$0xff]  }
 0x3e7   : > { %7992 = vmatpush2.bf16.msra.mxu1 %v10874_v38  ;;  %7952 = vmatprep.subr.bf16.mxu0 %v10879_v63  ;;  %v10935_v38 = vld [vmem:[%s11613_s20 + $0x1d40] ss:$8 sps:$4 sm:$0xff]   ;;  %v10940_v63 = vld [vmem:[%s11613_s20 + $0x1c34] ss:$8 sps:$4 sm:$0xff]  }
 0x3e8   : > { %7993 = vmatprep.subr.bf16.mxu1 %v10882_v42  ;;  %v10943_v42 = vld [vmem:[%s11613_s20 + $0x1d34] ss:$8 sps:$4 sm:$0xff]  }
 0x3ea   : > { %7953 = vmatpush2.bf16.msra.mxu0 %v10877_v47  ;;  %v10938_v47 = vld [vmem:[%s11613_s20 + $0x1c30] ss:$8 sps:$4 sm:$0xff]  }
 0x3eb   : > { %7994 = vmatpush2.bf16.msra.mxu1 %v10880_v49  ;;  %7954 = vmatprep.subr.bf16.mxu0 %v10885_v17  ;;  %v10941_v49 = vld [vmem:[%s11613_s20 + $0x1d30] ss:$8 sps:$4 sm:$0xff]   ;;  %v10946_v17 = vld [vmem:[%s11613_s20 + $0x1c24] ss:$8 sps:$4 sm:$0xff]  }
 0x3ec   : > { %7995 = vmatprep.subr.bf16.mxu1 %v10888_v51  ;;  %v10949_v51 = vld [vmem:[%s11613_s20 + $0x1d24] ss:$8 sps:$4 sm:$0xff]  }
 0x3ee   : > { %7955 = vmatpush2.bf16.msra.mxu0 %v10883_v14  ;;  %v10944_v14 = vld [vmem:[%s11613_s20 + $0x1c20] ss:$8 sps:$4 sm:$0xff]  }
 0x3ef   : > { %7996 = vmatpush2.bf16.msra.mxu1 %v10886_v53  ;;  %7956 = vmatprep.subr.bf16.mxu0 %v10891_v56  ;;  %v10947_v53 = vld [vmem:[%s11613_s20 + $0x1d20] ss:$8 sps:$4 sm:$0xff]   ;;  %v10952_v56 = vld [vmem:[%s11613_s20 + $0x1c14] ss:$8 sps:$4 sm:$0xff]  }
 0x3f0   : > { %7997 = vmatprep.subr.bf16.mxu1 %v10894_v6  ;;  %v10955_v6 = vld [vmem:[%s11613_s20 + $0x1d14] ss:$8 sps:$4 sm:$0xff]  }
 0x3f2   : > { %7957 = vmatpush2.bf16.msra.mxu0 %v10889_v7  ;;  %v10950_v7 = vld [vmem:[%s11613_s20 + $0x1c10] ss:$8 sps:$4 sm:$0xff]  }
 0x3f3   : > { %7998 = vmatpush2.bf16.msra.mxu1 %v10892_v36  ;;  %7958 = vmatprep.subr.bf16.mxu0 %v10897_v25  ;;  %v10953_v36 = vld [vmem:[%s11613_s20 + $0x1d10] ss:$8 sps:$4 sm:$0xff]   ;;  %v10958_v25 = vld [vmem:[%s11613_s20 + $0x1c04] ss:$8 sps:$4 sm:$0xff]  }
 0x3f4   : > { %7999 = vmatprep.subr.bf16.mxu1 %v10900_v59  ;;  %v10961_v59 = vld [vmem:[%s11613_s20 + $0x1d04] ss:$8 sps:$4 sm:$0xff]  }
 0x3f6   : > { %7959 = vmatpush2.bf16.msra.mxu0 %v10895_v61  ;;  %v10959_v61 = vld [vmem:[%s11613_s20 + $0x1d00] ss:$8 sps:$4 sm:$0xff]  }
 0x3f7   : > { %8000 = vmatpush2.bf16.msra.mxu1 %v10898_v52  ;;  %7960 = vmatprep.subr.bf16.mxu0 %v10903_v13  ;;  %v10964_v52 = vld [vmem:[%s11613_s20 + $0x1cf4] ss:$8 sps:$4 sm:$0xff]  }
 0x3f8   : > { %8001 = vmatprep.subr.bf16.mxu1 %v10906_v30  ;;  %v10967_v13 = vld [vmem:[%s11613_s20 + $0x1df4] ss:$8 sps:$4 sm:$0xff]   ;;  %v10962_v30 = vld [vmem:[%s11613_s20 + $0x1cf0] ss:$8 sps:$4 sm:$0xff]  }
 0x3fa   : > { %7961 = vmatpush2.bf16.msra.mxu0 %v10901_v16  ;;  %v10970_v16 = vld [vmem:[%s11613_s20 + $0x1ce4] ss:$8 sps:$4 sm:$0xff]  }
 0x3fb   : > { %8002 = vmatpush2.bf16.msra.mxu1 %v10904_v1  ;;  %7962 = vmatprep.subr.bf16.mxu0 %v10909_v57  ;;  %v10973_v1 = vld [vmem:[%s11613_s20 + $0x1de4] ss:$8 sps:$4 sm:$0xff]   ;;  %v10968_v57 = vld [vmem:[%s11613_s20 + $0x1ce0] ss:$8 sps:$4 sm:$0xff]  }
 0x3fc   : > { %8003 = vmatprep.subr.bf16.mxu1 %v10912_v3  ;;  %v10971_v3 = vld [vmem:[%s11613_s20 + $0x1de0] ss:$8 sps:$4 sm:$0xff]  }
 0x3fe   : > { %7963 = vmatpush2.bf16.msra.mxu0 %v10907_v24  ;;  %v10976_v24 = vld [vmem:[%s11613_s20 + $0x1cd4] ss:$8 sps:$4 sm:$0xff]  }
 0x3ff   : > { %8004 = vmatpush2.bf16.msra.mxu1 %v10910_v39  ;;  %8014 = vmatprep.subr.bf16.mxu0 %v10916_v41  ;;  %v10979_v39 = vld [vmem:[%s11613_s20 + $0x1dd4] ss:$8 sps:$4 sm:$0xff]   ;;  %v10974_v41 = vld [vmem:[%s11613_s20 + $0x1cd0] ss:$8 sps:$4 sm:$0xff]  }
 0x400   : > { %8055 = vmatprep.subr.bf16.mxu1 %v10919_v9  ;;  %v10977_v9 = vld [vmem:[%s11613_s20 + $0x1dd0] ss:$8 sps:$4 sm:$0xff]  }
 0x401   : > { %v7720_v21 = vpop.f32.mrf.mxu0  ;;  %7965 = vmatmul.mubr.bf16.vlgmr.msra.gmra.mxu0 %v1733_v48  ;;  %v10980_v48 = vld [vmem:[%s11613_s20 + $0x1cc0] ss:$8 sps:$4 sm:$0xff]  }
 0x402   : > { %v7761_v23 = vpop.f32.mrf.mxu1  ;;  %8006 = vmatmul.mubr.bf16.vlgmr.msra.gmra.mxu1 %v1735_v12  ;;  %v7721_v11 = vadd.f32 %v7720_v21, %v12727_v2  ;;  %8015 = vmatpush1.bf16.msra.mxu0 %v10914_v18  ;;  %v10983_v12 = vld [vmem:[%s11613_s20 + $0x1dc0] ss:$8 sps:$4 sm:$0xff]   ;;  %v10988_v18 = vld [vmem:[%s11613_s20 + $0x1cb4] ss:$8 sps:$4 sm:$0xff]  }
 0x403   : > { %8056 = vmatpush1.bf16.msra.mxu1 %v10917_v32  ;;  %v7722_v45 = vpop.f32.mrf.mxu0  ;;  %8016 = vmatprep.subr.bf16.mxu0 %v10922_v33  ;;  %v10991_v32 = vld [vmem:[%s11613_s20 + $0x1db4] ss:$8 sps:$4 sm:$0xff]   ;;  %v10986_v33 = vld [vmem:[%s11613_s20 + $0x1cb0] ss:$8 sps:$4 sm:$0xff]  }
 0x404   : > { %v7763_v46 = vpop.f32.mrf.mxu1  ;;  %8057 = vmatprep.subr.bf16.mxu1 %v10925_v19  ;;  %v12812_v28 = vadd.f32 %v7761_v23, %v7721_v11  ;;  %v7723_v29 = vadd.f32 %v7722_v45, %v12730_v60  ;;  %8046 = vmatprep.mubr.bf16.mxu0 %v1738_v55  ;;  %v10934_v60 = vld [vmem:[%s11613_s20 + $0x1c44] ss:$8 sps:$4 sm:$0xff]   ;;  %v10989_v19 = vld [vmem:[%s11613_s20 + $0x1db0] ss:$8 sps:$4 sm:$0xff]   ;;  %v10992_v23 = vld [vmem:[%s11613_s20 + $0x1ca0] ss:$8 sps:$4 sm:$0xff]  }
 0x405   : > { %8087 = vmatprep.mubr.bf16.mxu1 %v1740_v20  ;;  %v7724_v2 = vpop.f32.mrf.mxu0  ;;  %v10994_v55 = vld [vmem:[%s11613_s20 + $0x1ca4] ss:$8 sps:$4 sm:$0xff]   ;;  %v304_v21 = vld [vmem:[%s11605_s29 + $0x78] sm:$0xff]  ;;  %v10995_v11 = vld [vmem:[%s11613_s20 + $0x1da0] ss:$8 sps:$4 sm:$0xff]  }
 0x406   : > { %v7765_v31 = vpop.f32.mrf.mxu1  ;;  %v12815_v22 = vadd.f32 %v7763_v46, %v7723_v29  ;;  %8017 = vmatpush1.bf16.msra.mxu0 %v10920_v43  ;;  %v10997_v20 = vld [vmem:[%s11613_s20 + $0x1da4] ss:$8 sps:$4 sm:$0xff]   ;;  %v11000_v43 = vld [vmem:[%s11613_s20 + $0x1c94] ss:$8 sps:$4 sm:$0xff]   ;;  %v1600_v45 = vcombine.high %v304_v21, %v304_v21  ;;  %v10998_v46 = vld [vmem:[%s11613_s20 + $0x1c90] ss:$8 sps:$4 sm:$0xff]   ;;  %v12871_v2 = vrot.slane %v304_v21, %v11680_v50 }
 0x407   : > { %8058 = vmatpush1.bf16.msra.mxu1 %v10923_v26  ;;  %v7725_v34 = vpop.f32.mrf.mxu0  ;;  %8018 = vmatprep.subr.bf16.mxu0 %v10928_v27  ;;  %v11003_v26 = vld [vmem:[%s11613_s20 + $0x1d94] ss:$8 sps:$4 sm:$0xff]   ;;  %v11001_v27 = vld [vmem:[%s11613_s20 + $0x1d90] ss:$8 sps:$4 sm:$0xff]   ;;  %v11009_v29 = vld [vmem:[%s11613_s20 + $0x1d84] ss:$8 sps:$4 sm:$0xff]  }
 0x408   : > { %v7766_v58 = vpop.f32.mrf.mxu1  ;;  %8059 = vmatprep.subr.bf16.mxu1 %v10931_v15  ;;  %v11006_v15 = vld [vmem:[%s11613_s20 + $0x1c84] ss:$8 sps:$4 sm:$0xff]   ;;  %v12874_v31 = vrot.slane %v1600_v45, %v11680_v50  ;;  %v11013_v34 = vld [vmem:[%s11613_s20 + $0x1e74] ss:$8 sps:$4 sm:$0xff]   ;;  %v11053_v21 = vld [vmem:[%s11613_s20 + $0x1e00] ss:$8 sps:$4 sm:$0xff]  }
 0x409   : > { %v11016_v58 = vld [vmem:[%s11613_s20 + $0x1f74] ss:$8 sps:$4 sm:$0xff]   ;;  %v11062_v45 = vld [vmem:[%s11613_s20 + $0x1ff0] ss:$8 sps:$4 sm:$0xff]  }
 0x40a   : > { %8019 = vmatpush1.bf16.msra.mxu0 %v10926_v54  ;;  %v11004_v54 = vld [vmem:[%s11613_s20 + $0x1c80] ss:$8 sps:$4 sm:$0xff]  }
 0x40b   : > { %8060 = vmatpush1.bf16.msra.mxu1 %v10929_v4  ;;  %8020 = vmatprep.subr.bf16.mxu0 %v10934_v60  ;;  %v11007_v4 = vld [vmem:[%s11613_s20 + $0x1d80] ss:$8 sps:$4 sm:$0xff]   ;;  %v1615_v60 = vcombine.high %v12871_v2, %v12871_v2 }
 0x40c   : > { %8061 = vmatprep.subr.bf16.mxu1 %v10937_v35  ;;  %v1616_v35 = vcombine.high %v12874_v31, %v12874_v31 }
 0x40e   : > { %8021 = vmatpush1.bf16.msra.mxu0 %v10932_v8  ;;  %v1737_v8 = vpack.c.bf16 %v12786_v37, %v12786_v37 }
 0x40f   : > { %8062 = vmatpush1.bf16.msra.mxu1 %v10935_v38  ;;  %8022 = vmatprep.subr.bf16.mxu0 %v10940_v63  ;;  %v1739_v38 = vpack.c.bf16 %v12789_v5, %v12789_v5  ;;  %v11011_v63 = vld [vmem:[%s11613_s20 + $0x1e70] ss:$8 sps:$4 sm:$0xff]   ;;  %v11017_v5 = vld [vmem:[%s11613_s20 + $0x1e60] ss:$8 sps:$4 sm:$0xff]  }
 0x410   : > { %8063 = vmatprep.subr.bf16.mxu1 %v10943_v42  ;;  %v11014_v42 = vld [vmem:[%s11613_s20 + $0x1f70] ss:$8 sps:$4 sm:$0xff]  }
 0x412   : > { %8023 = vmatpush1.bf16.msra.mxu0 %v10938_v47  ;;  %v11019_v47 = vld [vmem:[%s11613_s20 + $0x1e64] ss:$8 sps:$4 sm:$0xff]  }
 0x413   : > { %8064 = vmatpush1.bf16.msra.mxu1 %v10941_v49  ;;  %8024 = vmatprep.subr.bf16.mxu0 %v10946_v17  ;;  %v11022_v49 = vld [vmem:[%s11613_s20 + $0x1f64] ss:$8 sps:$4 sm:$0xff]   ;;  %v1742_v17 = vpack.c.bf16 %v1615_v60, %v1615_v60 }
 0x414   : > { %8065 = vmatprep.subr.bf16.mxu1 %v10949_v51  ;;  %v1744_v51 = vpack.c.bf16 %v1616_v35, %v1616_v35  ;;  %v11079_v60 = vld [vmem:[%s11613_s20 + $0x1ec4] ss:$8 sps:$4 sm:$0xff]  }
 0x415   : > { %v11082_v35 = vld [vmem:[%s11613_s20 + $0x1fc4] ss:$8 sps:$4 sm:$0xff]  }
 0x416   : > { %8025 = vmatpush1.bf16.msra.mxu0 %v10944_v14 }
 0x417   : > { %8066 = vmatpush1.bf16.msra.mxu1 %v10947_v53  ;;  %8026 = vmatprep.subr.bf16.mxu0 %v10952_v56  ;;  %v11020_v56 = vld [vmem:[%s11613_s20 + $0x1f60] ss:$8 sps:$4 sm:$0xff]  }
 0x418   : > { %8067 = vmatprep.subr.bf16.mxu1 %v10955_v6 }
 0x41a   : > { %8027 = vmatpush1.bf16.msra.mxu0 %v10950_v7 }
 0x41b   : > { %8068 = vmatpush1.bf16.msra.mxu1 %v10953_v36  ;;  %8028 = vmatprep.subr.bf16.mxu0 %v10958_v25  ;;  %v11025_v36 = vld [vmem:[%s11613_s20 + $0x1e54] ss:$8 sps:$4 sm:$0xff]  }
 0x41c   : > { %8069 = vmatprep.subr.bf16.mxu1 %v10961_v59  ;;  %v11028_v25 = vld [vmem:[%s11613_s20 + $0x1f54] ss:$8 sps:$4 sm:$0xff]  }
 0x41e   : > { %8029 = vmatpush1.bf16.msra.mxu0 %v10956_v40 }
 0x41f   : > { %8070 = vmatpush1.bf16.msra.mxu1 %v10959_v61  ;;  %8030 = vmatprep.subr.bf16.mxu0 %v10964_v52 }
 0x420   : > { %8071 = vmatprep.subr.bf16.mxu1 %v10967_v13  ;;  %v11023_v13 = vld [vmem:[%s11613_s20 + $0x1e50] ss:$8 sps:$4 sm:$0xff]  }
 0x422   : > { %8031 = vmatpush2.bf16.msra.mxu0 %v10962_v30  ;;  %v11026_v30 = vld [vmem:[%s11613_s20 + $0x1f50] ss:$8 sps:$4 sm:$0xff]  }
 0x423   : > { %8072 = vmatpush2.bf16.msra.mxu1 %v10965_v0  ;;  %8032 = vmatprep.subr.bf16.mxu0 %v10970_v16 }
 0x424   : > { %8073 = vmatprep.subr.bf16.mxu1 %v10973_v1  ;;  %v11034_v1 = vld [vmem:[%s11613_s20 + $0x1f44] ss:$8 sps:$4 sm:$0xff]  }
 0x426   : > { %8033 = vmatpush2.bf16.msra.mxu0 %v10968_v57  ;;  %v11029_v57 = vld [vmem:[%s11613_s20 + $0x1e40] ss:$8 sps:$4 sm:$0xff]  }
 0x427   : > { %8074 = vmatpush2.bf16.msra.mxu1 %v10971_v3  ;;  %8034 = vmatprep.subr.bf16.mxu0 %v10976_v24  ;;  %v11032_v3 = vld [vmem:[%s11613_s20 + $0x1f40] ss:$8 sps:$4 sm:$0xff]   ;;  %v11037_v24 = vld [vmem:[%s11613_s20 + $0x1e34] ss:$8 sps:$4 sm:$0xff]  }
 0x428   : > { %8075 = vmatprep.subr.bf16.mxu1 %v10979_v39  ;;  %v11040_v39 = vld [vmem:[%s11613_s20 + $0x1f34] ss:$8 sps:$4 sm:$0xff]  }
 0x42a   : > { %8035 = vmatpush2.bf16.msra.mxu0 %v10974_v41  ;;  %v11035_v41 = vld [vmem:[%s11613_s20 + $0x1e30] ss:$8 sps:$4 sm:$0xff]  }
 0x42b   : > { %8076 = vmatpush2.bf16.msra.mxu1 %v10977_v9  ;;  %8036 = vmatprep.subr.bf16.mxu0 %v10982_v62  ;;  %v11038_v9 = vld [vmem:[%s11613_s20 + $0x1f30] ss:$8 sps:$4 sm:$0xff]   ;;  %v11043_v62 = vld [vmem:[%s11613_s20 + $0x1e24] ss:$8 sps:$4 sm:$0xff]  }
 0x42c   : > { %8077 = vmatprep.subr.bf16.mxu1 %v10985_v10  ;;  %v11046_v10 = vld [vmem:[%s11613_s20 + $0x1f24] ss:$8 sps:$4 sm:$0xff]  }
 0x42e   : > { %8037 = vmatpush2.bf16.msra.mxu0 %v10980_v48  ;;  %v11041_v48 = vld [vmem:[%s11613_s20 + $0x1e20] ss:$8 sps:$4 sm:$0xff]  }
 0x42f   : > { %8078 = vmatpush2.bf16.msra.mxu1 %v10983_v12  ;;  %8038 = vmatprep.subr.bf16.mxu0 %v10988_v18  ;;  %v11044_v12 = vld [vmem:[%s11613_s20 + $0x1f20] ss:$8 sps:$4 sm:$0xff]   ;;  %v11049_v18 = vld [vmem:[%s11613_s20 + $0x1e14] ss:$8 sps:$4 sm:$0xff]  }
 0x430   : > { %8079 = vmatprep.subr.bf16.mxu1 %v10991_v32  ;;  %v11052_v32 = vld [vmem:[%s11613_s20 + $0x1f14] ss:$8 sps:$4 sm:$0xff]  }
 0x432   : > { %8039 = vmatpush2.bf16.msra.mxu0 %v10986_v33  ;;  %v11047_v33 = vld [vmem:[%s11613_s20 + $0x1e10] ss:$8 sps:$4 sm:$0xff]  }
 0x433   : > { %8080 = vmatpush2.bf16.msra.mxu1 %v10989_v19  ;;  %8040 = vmatprep.subr.bf16.mxu0 %v10994_v55  ;;  %v11050_v19 = vld [vmem:[%s11613_s20 + $0x1f10] ss:$8 sps:$4 sm:$0xff]   ;;  %v11055_v55 = vld [vmem:[%s11613_s20 + $0x1e04] ss:$8 sps:$4 sm:$0xff]  }
 0x434   : > { %8081 = vmatprep.subr.bf16.mxu1 %v10997_v20  ;;  %v11058_v20 = vld [vmem:[%s11613_s20 + $0x1f04] ss:$8 sps:$4 sm:$0xff]  }
 0x436   : > { %8041 = vmatpush2.bf16.msra.mxu0 %v10992_v23  ;;  %v11056_v23 = vld [vmem:[%s11613_s20 + $0x1f00] ss:$8 sps:$4 sm:$0xff]  }
 0x437   : > { %8082 = vmatpush2.bf16.msra.mxu1 %v10995_v11  ;;  %8042 = vmatprep.subr.bf16.mxu0 %v11000_v43  ;;  %v11061_v11 = vld [vmem:[%s11613_s20 + $0x1ef4] ss:$8 sps:$4 sm:$0xff]  }
 0x438   : > { %8083 = vmatprep.subr.bf16.mxu1 %v11003_v26  ;;  %v11064_v43 = vld [vmem:[%s11613_s20 + $0x1ff4] ss:$8 sps:$4 sm:$0xff]   ;;  %v11059_v26 = vld [vmem:[%s11613_s20 + $0x1ef0] ss:$8 sps:$4 sm:$0xff]  }
 0x43a   : > { %8043 = vmatpush2.bf16.msra.mxu0 %v10998_v46  ;;  %v11067_v46 = vld [vmem:[%s11613_s20 + $0x1ee4] ss:$8 sps:$4 sm:$0xff]  }
 0x43b   : > { %8084 = vmatpush2.bf16.msra.mxu1 %v11001_v27  ;;  %8044 = vmatprep.subr.bf16.mxu0 %v11006_v15  ;;  %v11070_v27 = vld [vmem:[%s11613_s20 + $0x1fe4] ss:$8 sps:$4 sm:$0xff]   ;;  %v11065_v15 = vld [vmem:[%s11613_s20 + $0x1ee0] ss:$8 sps:$4 sm:$0xff]  }
 0x43c   : > { %8085 = vmatprep.subr.bf16.mxu1 %v11009_v29  ;;  %v11068_v29 = vld [vmem:[%s11613_s20 + $0x1fe0] ss:$8 sps:$4 sm:$0xff]  }
 0x43e   : > { %8045 = vmatpush2.bf16.msra.mxu0 %v11004_v54  ;;  %v11073_v54 = vld [vmem:[%s11613_s20 + $0x1ed4] ss:$8 sps:$4 sm:$0xff]  }
 0x43f   : > { %8086 = vmatpush2.bf16.msra.mxu1 %v11007_v4  ;;  %8096 = vmatprep.subr.bf16.mxu0 %v11013_v34  ;;  %v11076_v4 = vld [vmem:[%s11613_s20 + $0x1fd4] ss:$8 sps:$4 sm:$0xff]   ;;  %v11071_v34 = vld [vmem:[%s11613_s20 + $0x1ed0] ss:$8 sps:$4 sm:$0xff]  }
 0x440   : > { %8137 = vmatprep.subr.bf16.mxu1 %v11016_v58  ;;  %v11074_v58 = vld [vmem:[%s11613_s20 + $0x1fd0] ss:$8 sps:$4 sm:$0xff]  }
 0x441   : > { %v7802_v14 = vpop.f32.mrf.mxu0  ;;  %8047 = vmatmul.mubr.bf16.vlgmr.msra.gmra.mxu0 %v1737_v8  ;;  %v11077_v8 = vld [vmem:[%s11613_s20 + $0x1ec0] ss:$8 sps:$4 sm:$0xff]  }
 0x442   : > { %v7843_v53 = vpop.f32.mrf.mxu1  ;;  %8088 = vmatmul.mubr.bf16.vlgmr.msra.gmra.mxu1 %v1739_v38  ;;  %v7803_v37 = vadd.f32 %v7802_v14, %v12812_v28  ;;  %8097 = vmatpush1.bf16.msra.mxu0 %v11011_v63  ;;  %v11080_v38 = vld [vmem:[%s11613_s20 + $0x1fc0] ss:$8 sps:$4 sm:$0xff]   ;;  %v11085_v63 = vld [vmem:[%s11613_s20 + $0x1eb4] ss:$8 sps:$4 sm:$0xff]  }
 0x443   : > { %8138 = vmatpush1.bf16.msra.mxu1 %v11014_v42  ;;  %v7804_v6 = vpop.f32.mrf.mxu0  ;;  %8098 = vmatprep.subr.bf16.mxu0 %v11019_v47  ;;  %v11088_v42 = vld [vmem:[%s11613_s20 + $0x1fb4] ss:$8 sps:$4 sm:$0xff]   ;;  %v11083_v47 = vld [vmem:[%s11613_s20 + $0x1eb0] ss:$8 sps:$4 sm:$0xff]   ;;  %v11089_v14 = vld [vmem:[%s11613_s20 + $0x1ea0] ss:$8 sps:$4 sm:$0xff]  }
 0x444   : > { %v7845_v7 = vpop.f32.mrf.mxu1  ;;  %8139 = vmatprep.subr.bf16.mxu1 %v11022_v49  ;;  %v12897_v59 = vadd.f32 %v7843_v53, %v7803_v37  ;;  %v7805_v40 = vadd.f32 %v7804_v6, %v12815_v22  ;;  %8128 = vmatprep.mubr.bf16.mxu0 %v1742_v17  ;;  %v11031_v22 = vld [vmem:[%s11613_s20 + $0x1e44] ss:$8 sps:$4 sm:$0xff]   ;;  %v11086_v49 = vld [vmem:[%s11613_s20 + $0x1fb0] ss:$8 sps:$4 sm:$0xff]   ;;  %v11092_v53 = vld [vmem:[%s11613_s20 + $0x1fa0] ss:$8 sps:$4 sm:$0xff]  }
 0x445   : > { %8169 = vmatprep.mubr.bf16.mxu1 %v1744_v51  ;;  %v7806_v28 = vpop.f32.mrf.mxu0  ;;  %v11091_v17 = vld [vmem:[%s11613_s20 + $0x1ea4] ss:$8 sps:$4 sm:$0xff]   ;;  %v11097_v37 = vld [vmem:[%s11613_s20 + $0x1e94] ss:$8 sps:$4 sm:$0xff]   ;;  %v11098_v6 = vld [vmem:[%s11613_s20 + $0x1f90] ss:$8 sps:$4 sm:$0xff]  }
 0x446   : > { %v7847_v61 = vpop.f32.mrf.mxu1  ;;  %v12900_v52 = vadd.f32 %v7845_v7, %v7805_v40  ;;  %8099 = vmatpush1.bf16.msra.mxu0 %v11017_v5  ;;  %v11094_v51 = vld [vmem:[%s11613_s20 + $0x1fa4] ss:$8 sps:$4 sm:$0xff]   ;;  %v11100_v5 = vld [vmem:[%s11613_s20 + $0x1f94] ss:$8 sps:$4 sm:$0xff]   ;;  %v11104_v40 = vld [vmem:[%s11613_s20 + $0x1f80] ss:$8 sps:$4 sm:$0xff]   ;;  %v1741_v28 = vpack.c.bf16 %v12871_v2, %v12871_v2 }
 0x447   : > { %8140 = vmatpush1.bf16.msra.mxu1 %v11020_v56  ;;  %v7807_v0 = vpop.f32.mrf.mxu0  ;;  %8100 = vmatprep.subr.bf16.mxu0 %v11025_v36  ;;  %v11095_v56 = vld [vmem:[%s11613_s20 + $0x1e90] ss:$8 sps:$4 sm:$0xff]   ;;  %v11103_v7 = vld [vmem:[%s11613_s20 + $0x1e84] ss:$8 sps:$4 sm:$0xff]   ;;  %v1743_v61 = vpack.c.bf16 %v12874_v31, %v12874_v31 }
 0x448   : > { %v7848_v16 = vpop.f32.mrf.mxu1  ;;  %8141 = vmatprep.subr.bf16.mxu1 %v11028_v25  ;;  %v11106_v36 = vld [vmem:[%s11613_s20 + $0x1f84] ss:$8 sps:$4 sm:$0xff]   ;;  %v11101_v25 = vld [vmem:[%s11613_s20 + $0x1e80] ss:$8 sps:$4 sm:$0xff]  }
 0x44a   : > { %8101 = vmatpush1.bf16.msra.mxu0 %v11023_v13 }
 0x44b   : > { %8142 = vmatpush1.bf16.msra.mxu1 %v11026_v30  ;;  %8102 = vmatprep.subr.bf16.mxu0 %v11031_v22 }
 0x44c   : > { %8143 = vmatprep.subr.bf16.mxu1 %v11034_v1 }
 0x44e   : > { %8103 = vmatpush1.bf16.msra.mxu0 %v11029_v57 }
 0x44f   : > { %8144 = vmatpush1.bf16.msra.mxu1 %v11032_v3  ;;  %8104 = vmatprep.subr.bf16.mxu0 %v11037_v24 }
 0x450   : > { %8145 = vmatprep.subr.bf16.mxu1 %v11040_v39 }
 0x452   : > { %8105 = vmatpush1.bf16.msra.mxu0 %v11035_v41 }
 0x453   : > { %8146 = vmatpush1.bf16.msra.mxu1 %v11038_v9  ;;  %8106 = vmatprep.subr.bf16.mxu0 %v11043_v62 }
 0x454   : > { %8147 = vmatprep.subr.bf16.mxu1 %v11046_v10 }
 0x456   : > { %8107 = vmatpush1.bf16.msra.mxu0 %v11041_v48 }
 0x457   : > { %8148 = vmatpush1.bf16.msra.mxu1 %v11044_v12  ;;  %8108 = vmatprep.subr.bf16.mxu0 %v11049_v18 }
 0x458   : > { %8149 = vmatprep.subr.bf16.mxu1 %v11052_v32 }
 0x45a   : > { %8109 = vmatpush1.bf16.msra.mxu0 %v11047_v33 }
 0x45b   : > { %8150 = vmatpush1.bf16.msra.mxu1 %v11050_v19  ;;  %8110 = vmatprep.subr.bf16.mxu0 %v11055_v55 }
 0x45c   : > { %8151 = vmatprep.subr.bf16.mxu1 %v11058_v20 }
 0x45e   : > { %8111 = vmatpush1.bf16.msra.mxu0 %v11053_v21 }
 0x45f   : > { %8152 = vmatpush1.bf16.msra.mxu1 %v11056_v23  ;;  %8112 = vmatprep.subr.bf16.mxu0 %v11061_v11 }
 0x460   : > { %8153 = vmatprep.subr.bf16.mxu1 %v11064_v43 }
 0x462   : > { %8113 = vmatpush2.bf16.msra.mxu0 %v11059_v26 }
 0x463   : > { %8154 = vmatpush2.bf16.msra.mxu1 %v11062_v45  ;;  %8114 = vmatprep.subr.bf16.mxu0 %v11067_v46 }
 0x464   : > { %8155 = vmatprep.subr.bf16.mxu1 %v11070_v27 }
 0x466   : > { %8115 = vmatpush2.bf16.msra.mxu0 %v11065_v15 }
 0x467   : > { %8156 = vmatpush2.bf16.msra.mxu1 %v11068_v29  ;;  %8116 = vmatprep.subr.bf16.mxu0 %v11073_v54 }
 0x468   : > { %8157 = vmatprep.subr.bf16.mxu1 %v11076_v4 }
 0x46a   : > { %8117 = vmatpush2.bf16.msra.mxu0 %v11071_v34 }
 0x46b   : > { %8158 = vmatpush2.bf16.msra.mxu1 %v11074_v58  ;;  %8118 = vmatprep.subr.bf16.mxu0 %v11079_v60 }
 0x46c   : > { %8159 = vmatprep.subr.bf16.mxu1 %v11082_v35 }
 0x46e   : > { %8119 = vmatpush2.bf16.msra.mxu0 %v11077_v8 }
 0x46f   : > { %8160 = vmatpush2.bf16.msra.mxu1 %v11080_v38  ;;  %8120 = vmatprep.subr.bf16.mxu0 %v11085_v63 }
 0x470   : > { %8161 = vmatprep.subr.bf16.mxu1 %v11088_v42 }
 0x472   : > { %8121 = vmatpush2.bf16.msra.mxu0 %v11083_v47 }
 0x473   : > { %8162 = vmatpush2.bf16.msra.mxu1 %v11086_v49  ;;  %8122 = vmatprep.subr.bf16.mxu0 %v11091_v17 }
 0x474   : > { %8163 = vmatprep.subr.bf16.mxu1 %v11094_v51  ;;  %v1745_v51 = vld [vmem:[#allocation2] sm:$0xf] }
 0x476   : > { %8123 = vmatpush2.bf16.msra.mxu0 %v11089_v14 }
 0x477   : > { %8164 = vmatpush2.bf16.msra.mxu1 %v11092_v53  ;;  %8124 = vmatprep.subr.bf16.mxu0 %v11097_v37 }
 0x478   : > { %8165 = vmatprep.subr.bf16.mxu1 %v11100_v5 }
 0x47a   : > { %8125 = vmatpush2.bf16.msra.mxu0 %v11095_v56 }
 0x47b   : > { %8166 = vmatpush2.bf16.msra.mxu1 %v11098_v6  ;;  %8126 = vmatprep.subr.bf16.mxu0 %v11103_v7 }
 0x47c   : > { %8167 = vmatprep.subr.bf16.mxu1 %v11106_v36 }
 0x47e   : > { %8127 = vmatpush2.bf16.msra.mxu0 %v11101_v25 }
 0x47f   : > { %8168 = vmatpush2.bf16.msra.mxu1 %v11104_v40 }
 0x481   : > { %v7884_v13 = vpop.f32.mrf.mxu0  ;;  %8129 = vmatmul.mubr.bf16.vlgmr.msra.gmra.mxu0 %v1741_v28 }
 0x482   : > { %v7925_v30 = vpop.f32.mrf.mxu1  ;;  %8170 = vmatmul.mubr.bf16.vlgmr.msra.gmra.mxu1 %v1743_v61  ;;  %v7885_v0 = vadd.f32 %v7884_v13, %v12897_v59 }
 0x483   : > { %v7886_v16 = vpop.f32.mrf.mxu0 }
 0x484   : > { %v7927_v22 = vpop.f32.mrf.mxu1  ;;  %v7926_v1 = vadd.f32 %v7925_v30, %v7885_v0  ;;  %v7887_v57 = vadd.f32 %v7886_v16, %v12900_v52 }
 0x485   : > { %v7888_v3 = vpop.f32.mrf.mxu0 }
 0x486   : > { %v7929_v24 = vpop.f32.mrf.mxu1  ;;  %v7928_v39 = vadd.f32 %v7927_v22, %v7887_v57 }
 0x487   : > { %v7889_v2 = vpop.f32.mrf.mxu0 }
 0x488   : > { %v7930_v41 = vpop.f32.mrf.mxu1 }
 0x4c1   : > { %v7966_v9 = vpop.f32.mrf.mxu0 }
 0x4c2   : > { %v8007_v31 = vpop.f32.mrf.mxu1  ;;  %v7967_v62 = vadd.f32 %v7966_v9, %v7926_v1 }
 0x4c3   : > { %v7968_v10 = vpop.f32.mrf.mxu0 }
 0x4c4   : > { %v8009_v48 = vpop.f32.mrf.mxu1  ;;  %v8008_v12 = vadd.f32 %v8007_v31, %v7967_v62  ;;  %v7969_v18 = vadd.f32 %v7968_v10, %v7928_v39 }
 0x4c5   : > { %v7970_v32 = vpop.f32.mrf.mxu0 }
 0x4c6   : > { %v8011_v33 = vpop.f32.mrf.mxu1  ;;  %v8010_v59 = vadd.f32 %v8009_v48, %v7969_v18 }
 0x4c7   : > { %v7971_v19 = vpop.f32.mrf.mxu0 }
 0x4c8   : > { %v8012_v55 = vpop.f32.mrf.mxu1 }
 0x501   : > { %v8048_v20 = vpop.f32.mrf.mxu0 }
 0x502   : > { %v8089_v21 = vpop.f32.mrf.mxu1  ;;  %v8049_v52 = vadd.f32 %v8048_v20, %v8008_v12 }
 0x503   : > { %v8050_v23 = vpop.f32.mrf.mxu0 }
 0x504   : > { %v8091_v11 = vpop.f32.mrf.mxu1  ;;  %v8090_v43 = vadd.f32 %v8089_v21, %v8049_v52  ;;  %v8051_v15 = vadd.f32 %v8050_v23, %v8010_v59 }
 0x505   : > { %v8052_v26 = vpop.f32.mrf.mxu0 }
 0x506   : > { %v8093_v45 = vpop.f32.mrf.mxu1  ;;  %v8092_v4 = vadd.f32 %v8091_v11, %v8051_v15 }
 0x507   : > { %v8053_v46 = vpop.f32.mrf.mxu0 }
 0x508   : > { %v8094_v27 = vpop.f32.mrf.mxu1 }
 0x541   : > { %v8130_v29 = vpop.f32.mrf.mxu0 }
 0x542   : > { %v8171_v54 = vpop.f32.mrf.mxu1  ;;  %v8131_v34 = vadd.f32 %v8130_v29, %v8090_v43 }
 0x543   : > { %v8132_v58 = vpop.f32.mrf.mxu0 }
 0x544   : > { %v8173_v60 = vpop.f32.mrf.mxu1  ;;  %v8133_v35 = vadd.f32 %v8132_v58, %v8092_v4  ;;  %v8172_v63 = vadd.f32 %v8171_v54, %v8131_v34 }
 0x545   : > { %v8134_v8 = vpop.f32.mrf.mxu0 }
 0x546   : > { %v8175_v38 = vpop.f32.mrf.mxu1  ;;  %v8174_v42 = vadd.f32 %v8173_v60, %v8133_v35 }
 0x547   : > { %v8135_v47 = vpop.f32.mrf.mxu0 }
 0x548   : > { %v8176_v49 = vpop.f32.mrf.mxu1  ;;  %v8180_v17 = vcombine.low %v8172_v63, %v8174_v42 }
 0x54a   : > { %v8187_v14 = vrot.slane %v8180_v17, %v11680_v50  ;;  %8194 = sbr.rel (%p9405_p13) target bundleno = 1372 (0x55c), region = 52 }
 0x54c   : > { %v8189_v53 = vadd.f32 %v8187_v14, %v1745_v51 }
 0x54e   : > { %8190 = vst [vmem:[#allocation2] sm:$0xf] %v8189_v53 }
 0x54f   : > { %v8196_v37 = vld [vmem:[%s11623_s26] sm:$0x3]  ;;  %v8200_v5 = vsub.s32 0, %v11672_v44  ;;  %v8204_v56 = vsub.s32 1, %v11672_v44 }
 0x551   : > { %v8201_v6 = vrot.slane %v8196_v37, %v8200_v5  ;;  %v8205_v7 = vrot.slane %v8196_v37, %v8204_v56 }
 0x553   : > { %v8206_v36 = vcombine.low %v8201_v6, %v8205_v7 }
 0x555   : > { %v8195_v25 = vld [vmem:[#allocation2] sm:$0xf]  ;;  %v8213_v40 = vrot.slane %v8206_v36, %v11680_v50 }
 0x557   : > { %v8215_v28 = vadd.f32 %v8213_v40, %v8195_v25 }
 0x559   : > { %v8216_v61 = vmax.f32 %v8215_v28, 0.0 }
 0x55b   : > { %8217 = vst [vmem:[%s11630_s10] sm:$0xf] %v8216_v61 }
 0x55c PF: > { %s13080_s6 = sld [smem:[#allocation16_spill]]  ;;  %s8233_s0 = sshll.u32 %s11630_s10, 4  ;;  %s8234_s0 = int_to_ptr.vmem [resolvable:$true] %s8233_s0 }
 0x55d   : > { %s13081_s27 = sld [smem:[#allocation23_spill]]  ;;  %s8219_s3 = scalar_lea.sflag [#allocation5], %s11620_s1 }
 0x55e   : > { %s11192_s24 = scalar_lea.vmem %s8234_s0, 64  ;;  %p13082_p5 = scmp.ne.s32.totalorder %s13074_s22, 0 }
 0x55f   : > { %p11193_p1 = scmp.ne.s32.totalorder %s8234_s0, %s11192_s24  ;;  %s11354_s8 = smov [#allocation9]  }
 0x560   : > { %s11196_s20 = sshll.u32 %s11354_s8, 4  ;;  %s11197_s20 = int_to_ptr.vmem [resolvable:$false] %s11196_s20 }
 0x561   : > { %p11194_p6 = pnand %p11193_p1, %p13082_p5  ;;  %s11198_s4 = scalar_lea.vmem %s11197_s20, 128 }
 0x562   : > { %s9414_s7 = sshll.u32 %s13080_s6, 6  ;;  %p11199_p2 = scmp.lt.s32.totalorder %s8234_s0, %s11197_s20 }
 0x563   : > { %s8231_s29 = scalar_lea.hbm %s13081_s27, %s9414_s7  ;;  %p11195_p8 = pneg %p11194_p6 }
 0x564   : > { %p11200_p0 = scmp.lt.s32.totalorder %s11198_s4, %s11192_s24 }
 0x566   : > { %p11201_p12 = por %p11200_p0, %p11199_p2 }
 0x568   : > { %p11202_p9 = pnand %p11201_p12, %p11195_p8 }
 0x56a   : > { %11205 = shalt.err (!%p11202_p9)
}
 0x56b   : > { %s11206_s26 = scalar_lea.hbm %s8231_s29, 64  ;;  %s11210_s10 = scalar_lea.hbm %s13081_s27, 128 }
 0x56c   : > { %p11207_p10 = scmp.ne.s32.totalorder %s8231_s29, %s11206_s26  ;;  %p11211_p4 = scmp.lt.s32.totalorder %s8231_s29, %s13081_s27 }
 0x56d   : > { %p11212_p7 = scmp.lt.s32.totalorder %s11210_s10, %s11206_s26 }
 0x56e   : > { %p11208_p11 = pnand %p11207_p10, %p13082_p5 }
 0x56f   : > { %p11213_p13 = por %p11212_p7, %p11211_p4 }
 0x570   : > { %p11209_p3 = pneg %p11208_p11 }
 0x572   : > { %p11214_p1 = pnand %p11213_p13, %p11209_p3 }
 0x574   : > { %11217 = shalt.err (!%p11214_p1)
}
 0x575   : > { %9421 = dma.vmem_to_hbm [thread:$0]  (%p13082_p5), %s8234_s0, 64, %s8231_s29, %s8219_s3  }
 0x576 PF: > { %p9438_p6 = scmp.ge.s32.totalorder %s11344_s25, 2  ;;  %s8245_s6 = sand.u32 1, %s11292_s12  }
 0x577   : > { %p13083_p8 = scmp.ne.s32.totalorder %s13075_s5, 0  ;;  %s8246_s7 = scalar_lea.sflag [#allocation5], %s8245_s6 }
 0x579   : > { %p9434_p2 = pnand %p9438_p6, %p13083_p8 }
 0x57b   : > { %p9435_p0 = pneg %p9434_p2 }
 0x57d   : > { %11287 = dma.done.wait (%p9435_p0), %s8246_s7, 64  }
 0x57e   : > { %11289 = vsyncadd (%p9435_p0), %s8246_s7, 4294967232  ;;  %s22_s25 = sadd.s32 1, %s11344_s25   ;;  %s13085_s22 = sld [smem:[#allocation14_spill]] }
 0x57f   : > { %p12992_p12 = scmp.ge.s32.totalorder %s22_s25, 18   ;;  %s13086_s20 = sld [smem:[#allocation20_spill]] }
 0x580   : > { %s13087_s5 = sld [smem:[#allocation17_spill]]  ;;  %s13090_s12 = smov %s11296_s13 }
 0x581   : > { %s13088_s29 = sld [smem:[#allocation18_spill]]  ;;  %s13091_s13 = smov %s11300_s14 }
 0x582   : > { %s13089_s24 = sld [smem:[#allocation19_spill]]  ;;  %s13092_s14 = smov %s11559_s18 }
 0x583   : > { %s13093_s15 = smov %s11308_s16  ;;  %s13094_s16 = smov %s11312_s17 }
 0x584   : > { %s13095_s17 = smov %s11536_s11  ;;  %s13096_s18 = smov %s11320_s19 }
 0x585   : > { %s13097_s19 = smov %s13085_s22  ;;  %s13098_s21 = smov %s11336_s23 }
 0x586   : > { %s13099_s22 = smov %s13087_s5  ;;  %21 = sbr.rel (!%p12992_p12) target bundleno = 16 (0x10), region = 109 }
 0x587   : > { %s13100_s23 = smov %s13088_s29 }
 0x58b   :  { %8251 = vsyncpa [#allocation4], 1 }
 0x58c   :  { %8253 = vsyncpa [#allocation4 + $0x1], 1 }
 0x58d   :  { %8254 = vsyncpa [#allocation7], 1 }
 0x58e   :  { %8256 = vsyncpa [#allocation7 + $0x1], 1 }
 0x58f   :  { %8257 = vsyncpa [#allocation5], 1 }
 0x590   :  { %8259 = vsyncpa [#allocation5 + $0x1], 1 }

</bundles_post_ra>
